<compile_context>
chip_gen: v5e
topology: v5e:2x2
jax: 0.10.0
libtpu: 0.0.40
codegen_flags: <defaults>
</compile_context>

<pallas_src>
import functools

import jax
import jax.numpy as jnp
from jax import lax
from jax.experimental import pallas as pl
from jax.experimental.pallas import tpu as pltpu


def _round_up(x, m):
    return ((x + m - 1) // m) * m


# --------------------------------------------------------------------------- #
# Fused bidirectional single-layer GRU kernel
# --------------------------------------------------------------------------- #
def _bigru_layer_kernel(x_ref, w_ih_ref, whh_f_ref, whh_b_ref,
                        b_ih_ref, b_hh_ref,
                        out_ref, hN_ref,
                        gi_f_scr, gi_b_scr,
                        *, seq_len, batch_pad, H_pad):
    """One bidirectional GRU layer over the full sequence.

    x_ref    : (seq, batch_pad, in_dim)        VMEM
    w_ih_ref : (in_dim, 6*H_pad)               VMEM  [fwd gates r,z,n | bwd gates r,z,n]
    whh_f_ref: (H_pad, 3*H_pad)                VMEM
    whh_b_ref: (H_pad, 3*H_pad)                VMEM
    b_ih_ref : (1, 6*H_pad)                    VMEM
    b_hh_ref : (2, 3*H_pad)                    VMEM  row0=fwd, row1=bwd
    out_ref  : (seq, batch_pad, 2*H_pad)       VMEM  [fwd | bwd] lanes
    hN_ref   : (2, batch_pad, H_pad)           VMEM  final hidden (fwd, bwd)
    gi_*_scr : (seq, batch_pad, 3*H_pad)       VMEM scratch (hoisted input proj)
    """
    H3 = 3 * H_pad
    in_dim = x_ref.shape[-1]

    # ---- hoisted input projection: one big MXU matmul for both directions ----
    x_flat = x_ref[...].reshape(seq_len * batch_pad, in_dim)
    gi_all = jnp.dot(x_flat, w_ih_ref[...],
                     preferred_element_type=jnp.float32) + b_ih_ref[...]
    gi_f_scr[...] = gi_all[:, 0:H3].reshape(seq_len, batch_pad, H3)
    gi_b_scr[...] = gi_all[:, H3:2 * H3].reshape(seq_len, batch_pad, H3)

    # ---- hoisted loop-invariant loads / broadcasts ----
    whh_f = whh_f_ref[...]
    whh_b = whh_b_ref[...]
    b_hh = jnp.concatenate(
        [jnp.broadcast_to(b_hh_ref[0:1, :], (batch_pad, H3)),
         jnp.broadcast_to(b_hh_ref[1:2, :], (batch_pad, H3))], axis=0)

    h0 = jnp.zeros((2 * batch_pad, H_pad), jnp.float32)   # [fwd rows ; bwd rows]

    def step(t, h):
        rt = seq_len - 1 - t
        # input-projection gates for this step (fwd at time t, bwd at time rt)
        gi = jnp.concatenate([gi_f_scr[t], gi_b_scr[rt]], axis=0)  # (2B, 3Hp)

        # recurrent matmuls (the only MXU work on the serial path)
        gh_f = jnp.dot(h[0:batch_pad], whh_f,
                       preferred_element_type=jnp.float32)
        gh_b = jnp.dot(h[batch_pad:2 * batch_pad], whh_b,
                       preferred_element_type=jnp.float32)
        gh = jnp.concatenate([gh_f, gh_b], axis=0) + b_hh           # (2B, 3Hp)

        # PyTorch GRU gate math (gate order r, z, n); all f32 on VPU/EUP
        r = jax.nn.sigmoid(gi[:, 0:H_pad] + gh[:, 0:H_pad])
        z = jax.nn.sigmoid(gi[:, H_pad:2 * H_pad] + gh[:, H_pad:2 * H_pad])
        n = jnp.tanh(gi[:, 2 * H_pad:3 * H_pad] + r * gh[:, 2 * H_pad:3 * H_pad])
        h_new = (1.0 - z) * n + z * h

        # lane-dense 128-lane stores
        out_ref[t, :, 0:H_pad] = h_new[0:batch_pad]
        out_ref[rt, :, H_pad:2 * H_pad] = h_new[batch_pad:2 * batch_pad]
        return h_new

    unroll = True if seq_len <= 16 else 8
    h_last = lax.fori_loop(0, seq_len, step, h0, unroll=unroll)

    hN_ref[0] = h_last[0:batch_pad]
    hN_ref[1] = h_last[batch_pad:2 * batch_pad]


def bigru_layer(x_pad, w_ih_both, whh_f, whh_b, b_ih_both, b_hh_both,
                *, H_pad):
    """Run one fused bidirectional GRU layer with a single pallas_call."""
    seq_len, batch_pad, in_dim = x_pad.shape
    H3 = 3 * H_pad

    kernel = functools.partial(_bigru_layer_kernel,
                               seq_len=seq_len, batch_pad=batch_pad, H_pad=H_pad)

    # explicit VMEM budget (2x for double buffering + headroom), capped.
    elems = (seq_len * batch_pad * in_dim
             + in_dim * 2 * H3
             + 2 * H_pad * H3
             + 2 * H3 + 2 * H3
             + seq_len * batch_pad * 2 * H_pad
             + 2 * batch_pad * H_pad
             + 2 * seq_len * batch_pad * H3)
    vmem_limit = min(elems * 4 * 2 + (4 << 20), 64 << 20)

    out, hN = pl.pallas_call(
        kernel,
        out_shape=(
            jax.ShapeDtypeStruct((seq_len, batch_pad, 2 * H_pad), jnp.float32),
            jax.ShapeDtypeStruct((2, batch_pad, H_pad), jnp.float32),
        ),
        grid=(1,),
        in_specs=[
            pl.BlockSpec((seq_len, batch_pad, in_dim), lambda i: (0, 0, 0)),
            pl.BlockSpec((in_dim, 2 * H3), lambda i: (0, 0)),
            pl.BlockSpec((H_pad, H3), lambda i: (0, 0)),
            pl.BlockSpec((H_pad, H3), lambda i: (0, 0)),
            pl.BlockSpec((1, 2 * H3), lambda i: (0, 0)),
            pl.BlockSpec((2, H3), lambda i: (0, 0)),
        ],
        out_specs=(
            pl.BlockSpec((seq_len, batch_pad, 2 * H_pad), lambda i: (0, 0, 0)),
            pl.BlockSpec((2, batch_pad, H_pad), lambda i: (0, 0, 0)),
        ),
        scratch_shapes=[
            pltpu.VMEM((seq_len, batch_pad, H3), jnp.float32),
            pltpu.VMEM((seq_len, batch_pad, H3), jnp.float32),
        ],
        compiler_params=pltpu.CompilerParams(
            dimension_semantics=("arbitrary",),
            vmem_limit_bytes=vmem_limit),
    )(x_pad, w_ih_both, whh_f, whh_b, b_ih_both, b_hh_both)
    return out, hN


# --------------------------------------------------------------------------- #
# Weight packing (PyTorch layout -> padded, lane-aligned kernel layout)
# --------------------------------------------------------------------------- #
def _pad_gate_cols(w, hidden, H_pad):
    """(rows, 3*hidden) -> (rows, 3*H_pad) with each gate block padded to H_pad lanes."""
    rows = w.shape[0]
    out = jnp.zeros((rows, 3 * H_pad), w.dtype)
    for g in range(3):
        out = out.at[:, g * H_pad:g * H_pad + hidden].set(
            w[:, g * hidden:(g + 1) * hidden])
    return out


def _pack_ih(w_ih, hidden, H_pad, layer):
    """w_ih (3*hidden, in_dim) PyTorch layout -> (in_dim_pad, 3*H_pad)."""
    w_t = _pad_gate_cols(w_ih.T, hidden, H_pad)        # (in_dim, 3*H_pad)
    if layer == 0:
        return w_t                                     # rows = embedding dim
    # layer > 0: input lanes are [fwd 0:H | pad | bwd H_pad:H_pad+H | pad]
    out = jnp.zeros((2 * H_pad, 3 * H_pad), w_t.dtype)
    out = out.at[0:hidden].set(w_t[0:hidden])
    out = out.at[H_pad:H_pad + hidden].set(w_t[hidden:2 * hidden])
    return out


def _pack_hh(w_hh, hidden, H_pad):
    """w_hh (3*hidden, hidden) -> (H_pad, 3*H_pad)."""
    w_t = _pad_gate_cols(w_hh.T, hidden, H_pad)        # (hidden, 3*H_pad)
    out = jnp.zeros((H_pad, 3 * H_pad), w_t.dtype)
    return out.at[0:hidden].set(w_t)


def _pack_bias(b, hidden, H_pad):
    """(3*hidden,) -> (3*H_pad,)."""
    return _pad_gate_cols(b[None, :], hidden, H_pad)[0]


def _pack_layer(raw_layer, hidden, H_pad, layer):
    w_ih_f, w_hh_f, b_ih_f, b_hh_f = raw_layer["fwd"]
    w_ih_b, w_hh_b, b_ih_b, b_hh_b = raw_layer["bwd"]
    w_ih_both = jnp.concatenate(
        [_pack_ih(w_ih_f, hidden, H_pad, layer),
         _pack_ih(w_ih_b, hidden, H_pad, layer)], axis=1)          # (in_dim, 6*H_pad)
    whh_f = _pack_hh(w_hh_f, hidden, H_pad)
    whh_b = _pack_hh(w_hh_b, hidden, H_pad)
    b_ih_both = jnp.concatenate(
        [_pack_bias(b_ih_f, hidden, H_pad),
         _pack_bias(b_ih_b, hidden, H_pad)])[None, :]              # (1, 6*H_pad)
    b_hh_both = jnp.stack(
        [_pack_bias(b_hh_f, hidden, H_pad),
         _pack_bias(b_hh_b, hidden, H_pad)], axis=0)               # (2, 3*H_pad)
    return (w_ih_both, whh_f, whh_b, b_ih_both, b_hh_both)


def init_encoder_params(key, input_size, hidden_size, num_layers):
    """Deterministic parameter init (PyTorch shapes), returns (packed, raw)."""
    H = hidden_size
    H_pad = _round_up(H, 128)
    keys = jax.random.split(key, 1 + num_layers * 2 * 4)
    kiter = iter(keys)
    scale = hidden_size ** -0.5

    embedding = jax.random.normal(next(kiter), (input_size, H), jnp.float32)
    raw = {"embedding": embedding, "gru": []}
    packed = {"embedding": embedding, "gru": []}
    for layer in range(num_layers):
        in_dim = H if layer == 0 else 2 * H
        raw_layer = {}
        for dname in ("fwd", "bwd"):
            w_ih = jax.random.uniform(next(kiter), (3 * H, in_dim),
                                      jnp.float32, -scale, scale)
            w_hh = jax.random.uniform(next(kiter), (3 * H, H),
                                      jnp.float32, -scale, scale)
            b_ih = jax.random.uniform(next(kiter), (3 * H,),
                                      jnp.float32, -scale, scale)
            b_hh = jax.random.uniform(next(kiter), (3 * H,),
                                      jnp.float32, -scale, scale)
            raw_layer[dname] = (w_ih, w_hh, b_ih, b_hh)
        raw["gru"].append(raw_layer)
        packed["gru"].append(_pack_layer(raw_layer, H, H_pad, layer))
    return packed, raw


# --------------------------------------------------------------------------- #
# Encoder forward
# --------------------------------------------------------------------------- #
def encoder_forward(params, x_tokens, *, num_layers, hidden_size):
    """Encoder forward pass.

    x_tokens: (batch, seq) int32 token ids.
    returns:
      outputs: (batch, seq, 2*hidden)              [fwd | bwd] concat
      hidden : (2*num_layers, batch, hidden)       (l0_fwd, l0_bwd, l1_fwd, ...)
    """
    H = hidden_size
    H_pad = _round_up(H, 128)
    batch, seq = x_tokens.shape
    batch_pad = _round_up(batch, 8)

    # Embedding lookup (pure gather) kept as plain-JAX glue; dropout = identity (eval).
    embedded = params["embedding"][x_tokens]                  # (batch, seq, H)
    x_tm = jnp.transpose(embedded, (1, 0, 2))                 # (seq, batch, H)
    x_tm = jnp.pad(x_tm, ((0, 0), (0, batch_pad - batch), (0, 0)))

    layer_in = x_tm
    h_finals = []
    out_pad = None
    for layer in range(num_layers):
        lw = params["gru"][layer]
        out_pad, hN_pad = bigru_layer(layer_in, *lw, H_pad=H_pad)
        layer_in = out_pad            # padded layout feeds the next layer directly
        h_finals.append(hN_pad[0, :batch, :H])
        h_finals.append(hN_pad[1, :batch, :H])
        # inter-layer GRU dropout: identity in eval mode.

    out_f = out_pad[:, :batch, 0:H]
    out_b = out_pad[:, :batch, H_pad:H_pad + H]
    outputs = jnp.transpose(jnp.concatenate([out_f, out_b], axis=-1), (1, 0, 2))
    hidden = jnp.stack(h_finals, axis=0)
    return outputs, hidden


# --------------------------------------------------------------------------- #
# Pure-JAX reference (for correctness check against the padded/fused kernel)
# --------------------------------------------------------------------------- #
def _gru_ref_direction(x_tm, w_ih, w_hh, b_ih, b_hh, reverse):
    seq_len, batch, _ = x_tm.shape
    H = w_hh.shape[1]
    hp = jax.lax.Precision.HIGHEST
    idxs = range(seq_len - 1, -1, -1) if reverse else range(seq_len)
    h = jnp.zeros((batch, H), jnp.float32)
    outs = [None] * seq_len
    for t in idxs:
        gi = jnp.dot(x_tm[t], w_ih.T, precision=hp) + b_ih
        gh = jnp.dot(h, w_hh.T, precision=hp) + b_hh
        i_r, i_z, i_n = jnp.split(gi, 3, axis=-1)
        h_r, h_z, h_n = jnp.split(gh, 3, axis=-1)
        r = jax.nn.sigmoid(i_r + h_r)
        z = jax.nn.sigmoid(i_z + h_z)
        n = jnp.tanh(i_n + r * h_n)
        h = (1.0 - z) * n + z * h
        outs[t] = h
    return jnp.stack(outs, axis=0), h


def encoder_forward_ref(raw, x_tokens):
    embedded = raw["embedding"][x_tokens]
    x = jnp.transpose(embedded, (1, 0, 2)).astype(jnp.float32)
    h_finals = []
    for layer_raw in raw["gru"]:
        outs = []
        for dname, reverse in (("fwd", False), ("bwd", True)):
            w_ih, w_hh, b_ih, b_hh = layer_raw[dname]
            o, h = _gru_ref_direction(x, w_ih, w_hh, b_ih, b_hh, reverse)
            outs.append(o)
            h_finals.append(h)
        x = jnp.concatenate(outs, axis=-1)
    return jnp.transpose(x, (1, 0, 2)), jnp.stack(h_finals, axis=0)


# --------------------------------------------------------------------------- #
if __name__ == "__main__":
    input_size = 20      # vocab size
    hidden_size = 32
    num_layers = 2
    batch = 2
    seq = 8

    root = jax.random.PRNGKey(0)
    k_param, k_tok = jax.random.split(root)

    params, raw = init_encoder_params(k_param, input_size, hidden_size, num_layers)
    x = jax.random.randint(k_tok, (batch, seq), 0, input_size, dtype=jnp.int32)

    outputs, hidden = encoder_forward(params, x, num_layers=num_layers,
                                      hidden_size=hidden_size)
    outputs = jax.block_until_ready(outputs)
    hidden = jax.block_until_ready(hidden)

    assert outputs.shape == (batch, seq, 2 * hidden_size), outputs.shape
    assert hidden.shape == (2 * num_layers, batch, hidden_size), hidden.shape
    assert bool(jnp.all(jnp.isfinite(outputs))) and bool(jnp.all(jnp.isfinite(hidden)))

    ref_out, ref_hid = encoder_forward_ref(raw, x)
    assert jnp.allclose(outputs, ref_out, atol=1e-3, rtol=1e-3), \
        float(jnp.max(jnp.abs(outputs - ref_out)))
    assert jnp.allclose(hidden, ref_hid, atol=1e-3, rtol=1e-3), \
        float(jnp.max(jnp.abs(hidden - ref_hid)))

    print("KERNEL_OK")
</pallas_src>

<mosaic_0001>
module attributes {stable_mosaic.version = 11 : i64} {
  func.func @_bigru_layer_kernel(%arg0: i32, %arg1: memref<8x8x32xf32, #tpu.memory_space<vmem>>, %arg2: memref<32x768xf32, #tpu.memory_space<vmem>>, %arg3: memref<128x384xf32, #tpu.memory_space<vmem>>, %arg4: memref<128x384xf32, #tpu.memory_space<vmem>>, %arg5: memref<1x768xf32, #tpu.memory_space<vmem>>, %arg6: memref<2x384xf32, #tpu.memory_space<vmem>>, %arg7: memref<8x8x256xf32, #tpu.memory_space<vmem>>, %arg8: memref<2x8x128xf32, #tpu.memory_space<vmem>>, %arg9: memref<8x8x384xf32, #tpu.memory_space<vmem>>, %arg10: memref<8x8x384xf32, #tpu.memory_space<vmem>>) attributes {dimension_semantics = [#tpu.dimension_semantics<arbitrary>], iteration_bounds = array<i64: 1>, scalar_prefetch = 0 : i64, scratch_operands = 2 : i64, tpu.core_type = #tpu.core_type<tc>, window_params = [{pipeline_mode = #tpu.pipeline_mode<synchronous>, transform_indices = @transform_0, window_bounds = array<i64: 8, 8, 32>}, {pipeline_mode = #tpu.pipeline_mode<synchronous>, transform_indices = @transform_1, window_bounds = array<i64: 32, 768>}, {pipeline_mode = #tpu.pipeline_mode<synchronous>, transform_indices = @transform_2, window_bounds = array<i64: 128, 384>}, {pipeline_mode = #tpu.pipeline_mode<synchronous>, transform_indices = @transform_3, window_bounds = array<i64: 128, 384>}, {pipeline_mode = #tpu.pipeline_mode<synchronous>, transform_indices = @transform_4, window_bounds = array<i64: 1, 768>}, {pipeline_mode = #tpu.pipeline_mode<synchronous>, transform_indices = @transform_5, window_bounds = array<i64: 2, 384>}, {pipeline_mode = #tpu.pipeline_mode<synchronous>, transform_indices = @transform_6, window_bounds = array<i64: 8, 8, 256>}, {pipeline_mode = #tpu.pipeline_mode<synchronous>, transform_indices = @transform_7, window_bounds = array<i64: 2, 8, 128>}]} {
    %c0 = arith.constant 0 : index
    %c0_0 = arith.constant 0 : index
    %c0_1 = arith.constant 0 : index
    %0 = vector.load %arg1[%c0, %c0_0, %c0_1] : memref<8x8x32xf32, #tpu.memory_space<vmem>>, vector<8x8x32xf32>
    %1 = vector.shape_cast %0 : vector<8x8x32xf32> to vector<64x32xf32>
    %c0_2 = arith.constant 0 : index
    %c0_3 = arith.constant 0 : index
    %2 = vector.load %arg2[%c0_2, %c0_3] : memref<32x768xf32, #tpu.memory_space<vmem>>, vector<32x768xf32>
    %cst = arith.constant dense<0.000000e+00> : vector<64x768xf32>
    %3 = tpu.matmul %1, %2, %cst {dimension_numbers = #tpu.dot_dimension_numbers<[1], [0], [0], [1], [0, 0, 1, 1], [], []>} : vector<64x32xf32>, vector<32x768xf32>, vector<64x768xf32> -> vector<64x768xf32>
    %c0_4 = arith.constant 0 : index
    %c0_5 = arith.constant 0 : index
    %4 = vector.load %arg5[%c0_4, %c0_5] : memref<1x768xf32, #tpu.memory_space<vmem>>, vector<1x768xf32>
    %5 = vector.broadcast %4 : vector<1x768xf32> to vector<64x768xf32>
    %6 = arith.addf %3, %5 : vector<64x768xf32>
    %7 = vector.extract_strided_slice %6 {offsets = [0, 0], sizes = [64, 384], strides = [1, 1]} : vector<64x768xf32> to vector<64x384xf32>
    %8 = vector.shape_cast %7 : vector<64x384xf32> to vector<8x8x384xf32>
    %c0_6 = arith.constant 0 : index
    %c0_7 = arith.constant 0 : index
    %c0_8 = arith.constant 0 : index
    %9 = vector.load %arg9[%c0_6, %c0_7, %c0_8] : memref<8x8x384xf32, #tpu.memory_space<vmem>>, vector<8x8x384xf32>
    tpu.vector_store %arg9[%c0_6, %c0_7, %c0_8], %8 {strides = array<i32>} : memref<8x8x384xf32, #tpu.memory_space<vmem>>, vector<8x8x384xf32>,
    %10 = vector.extract_strided_slice %6 {offsets = [0, 384], sizes = [64, 384], strides = [1, 1]} : vector<64x768xf32> to vector<64x384xf32>
    %11 = vector.shape_cast %10 : vector<64x384xf32> to vector<8x8x384xf32>
    %c0_9 = arith.constant 0 : index
    %c0_10 = arith.constant 0 : index
    %c0_11 = arith.constant 0 : index
    %12 = vector.load %arg10[%c0_9, %c0_10, %c0_11] : memref<8x8x384xf32, #tpu.memory_space<vmem>>, vector<8x8x384xf32>
    tpu.vector_store %arg10[%c0_9, %c0_10, %c0_11], %11 {strides = array<i32>} : memref<8x8x384xf32, #tpu.memory_space<vmem>>, vector<8x8x384xf32>,
    %c0_12 = arith.constant 0 : index
    %c0_13 = arith.constant 0 : index
    %13 = vector.load %arg3[%c0_12, %c0_13] : memref<128x384xf32, #tpu.memory_space<vmem>>, vector<128x384xf32>
    %c0_14 = arith.constant 0 : index
    %c0_15 = arith.constant 0 : index
    %14 = vector.load %arg4[%c0_14, %c0_15] : memref<128x384xf32, #tpu.memory_space<vmem>>, vector<128x384xf32>
    %c0_16 = arith.constant 0 : index
    %c0_17 = arith.constant 0 : index
    %15 = vector.load %arg6[%c0_16, %c0_17] : memref<2x384xf32, #tpu.memory_space<vmem>>, vector<1x384xf32>
    %16 = vector.shape_cast %15 : vector<1x384xf32> to vector<1x384xf32>
    %17 = vector.broadcast %16 : vector<1x384xf32> to vector<8x384xf32>
    %c1 = arith.constant 1 : index
    %c0_18 = arith.constant 0 : index
    %18 = vector.load %arg6[%c1, %c0_18] : memref<2x384xf32, #tpu.memory_space<vmem>>, vector<1x384xf32>
    %19 = vector.shape_cast %18 : vector<1x384xf32> to vector<1x384xf32>
    %20 = vector.broadcast %19 : vector<1x384xf32> to vector<8x384xf32>
    %21 = tpu.concatenate %17, %20 in 0 : vector<8x384xf32>, vector<8x384xf32> -> vector<16x384xf32>
    %cst_19 = arith.constant 0.000000e+00 : f32
    %22 = vector.broadcast %cst_19 : f32 to vector<16x128xf32>
    %c0_i32 = arith.constant 0 : i32
    %c7_i32 = arith.constant 7 : i32
    %23 = arith.subi %c7_i32, %c0_i32 : i32
    %24 = arith.index_cast %c0_i32 : i32 to index
    %c0_20 = arith.constant 0 : index
    %c0_21 = arith.constant 0 : index
    %25 = vector.load %arg9[%24, %c0_20, %c0_21] : memref<8x8x384xf32, #tpu.memory_space<vmem>>, vector<1x8x384xf32>
    %26 = vector.shape_cast %25 : vector<1x8x384xf32> to vector<8x384xf32>
    %27 = arith.index_cast %23 : i32 to index
    %c0_22 = arith.constant 0 : index
    %c0_23 = arith.constant 0 : index
    %28 = vector.load %arg10[%27, %c0_22, %c0_23] : memref<8x8x384xf32, #tpu.memory_space<vmem>>, vector<1x8x384xf32>
    %29 = vector.shape_cast %28 : vector<1x8x384xf32> to vector<8x384xf32>
    %30 = tpu.concatenate %26, %29 in 0 : vector<8x384xf32>, vector<8x384xf32> -> vector<16x384xf32>
    %31 = vector.extract_strided_slice %22 {offsets = [0, 0], sizes = [8, 128], strides = [1, 1]} : vector<16x128xf32> to vector<8x128xf32>
    %cst_24 = arith.constant dense<0.000000e+00> : vector<8x384xf32>
    %32 = tpu.matmul %31, %13, %cst_24 {dimension_numbers = #tpu.dot_dimension_numbers<[1], [0], [0], [1], [0, 0, 1, 1], [], []>} : vector<8x128xf32>, vector<128x384xf32>, vector<8x384xf32> -> vector<8x384xf32>
    %33 = vector.extract_strided_slice %22 {offsets = [8, 0], sizes = [8, 128], strides = [1, 1]} : vector<16x128xf32> to vector<8x128xf32>
    %cst_25 = arith.constant dense<0.000000e+00> : vector<8x384xf32>
    %34 = tpu.matmul %33, %14, %cst_25 {dimension_numbers = #tpu.dot_dimension_numbers<[1], [0], [0], [1], [0, 0, 1, 1], [], []>} : vector<8x128xf32>, vector<128x384xf32>, vector<8x384xf32> -> vector<8x384xf32>
    %35 = tpu.concatenate %32, %34 in 0 : vector<8x384xf32>, vector<8x384xf32> -> vector<16x384xf32>
    %36 = arith.addf %35, %21 : vector<16x384xf32>
    %37 = vector.extract_strided_slice %30 {offsets = [0, 0], sizes = [16, 128], strides = [1, 1]} : vector<16x384xf32> to vector<16x128xf32>
    %38 = vector.extract_strided_slice %36 {offsets = [0, 0], sizes = [16, 128], strides = [1, 1]} : vector<16x384xf32> to vector<16x128xf32>
    %39 = arith.addf %37, %38 : vector<16x128xf32>
    %40 = arith.negf %39 : vector<16x128xf32>
    %41 = math.exp %40 : vector<16x128xf32>
    %cst_26 = arith.constant 1.000000e+00 : f32
    %42 = vector.broadcast %cst_26 : f32 to vector<16x128xf32>
    %43 = arith.addf %42, %41 : vector<16x128xf32>
    %44 = arith.divf %42, %43 : vector<16x128xf32>
    %45 = vector.extract_strided_slice %30 {offsets = [0, 128], sizes = [16, 128], strides = [1, 1]} : vector<16x384xf32> to vector<16x128xf32>
    %46 = vector.extract_strided_slice %36 {offsets = [0, 128], sizes = [16, 128], strides = [1, 1]} : vector<16x384xf32> to vector<16x128xf32>
    %47 = arith.addf %45, %46 : vector<16x128xf32>
    %48 = arith.negf %47 : vector<16x128xf32>
    %49 = math.exp %48 : vector<16x128xf32>
    %cst_27 = arith.constant 1.000000e+00 : f32
    %50 = vector.broadcast %cst_27 : f32 to vector<16x128xf32>
    %51 = arith.addf %50, %49 : vector<16x128xf32>
    %52 = arith.divf %50, %51 : vector<16x128xf32>
    %53 = vector.extract_strided_slice %30 {offsets = [0, 256], sizes = [16, 128], strides = [1, 1]} : vector<16x384xf32> to vector<16x128xf32>
    %54 = vector.extract_strided_slice %36 {offsets = [0, 256], sizes = [16, 128], strides = [1, 1]} : vector<16x384xf32> to vector<16x128xf32>
    %55 = arith.mulf %44, %54 : vector<16x128xf32>
    %56 = arith.addf %53, %55 : vector<16x128xf32>
    %57 = math.tanh %56 : vector<16x128xf32>
    %cst_28 = arith.constant 1.000000e+00 : f32
    %58 = vector.broadcast %cst_28 : f32 to vector<16x128xf32>
    %59 = arith.subf %58, %52 : vector<16x128xf32>
    %60 = arith.mulf %59, %57 : vector<16x128xf32>
    %61 = arith.mulf %52, %22 : vector<16x128xf32>
    %62 = arith.addf %60, %61 : vector<16x128xf32>
    %63 = vector.extract_strided_slice %62 {offsets = [0, 0], sizes = [8, 128], strides = [1, 1]} : vector<16x128xf32> to vector<8x128xf32>
    %64 = arith.index_cast %c0_i32 : i32 to index
    %c0_29 = arith.constant 0 : index
    %c0_30 = arith.constant 0 : index
    %65 = vector.load %arg7[%64, %c0_29, %c0_30] : memref<8x8x256xf32, #tpu.memory_space<vmem>>, vector<1x8x128xf32>
    %66 = vector.shape_cast %65 : vector<1x8x128xf32> to vector<8x128xf32>
    %67 = vector.shape_cast %63 : vector<8x128xf32> to vector<1x8x128xf32>
    tpu.vector_store %arg7[%64, %c0_29, %c0_30], %67 {strides = array<i32>} : memref<8x8x256xf32, #tpu.memory_space<vmem>>, vector<1x8x128xf32>,
    %68 = vector.extract_strided_slice %62 {offsets = [8, 0], sizes = [8, 128], strides = [1, 1]} : vector<16x128xf32> to vector<8x128xf32>
    %69 = arith.index_cast %23 : i32 to index
    %c0_31 = arith.constant 0 : index
    %c128 = arith.constant 128 : index
    %70 = vector.load %arg7[%69, %c0_31, %c128] : memref<8x8x256xf32, #tpu.memory_space<vmem>>, vector<1x8x128xf32>
    %71 = vector.shape_cast %70 : vector<1x8x128xf32> to vector<8x128xf32>
    %72 = vector.shape_cast %68 : vector<8x128xf32> to vector<1x8x128xf32>
    tpu.vector_store %arg7[%69, %c0_31, %c128], %72 {strides = array<i32>} : memref<8x8x256xf32, #tpu.memory_space<vmem>>, vector<1x8x128xf32>,
    %c1_i32 = arith.constant 1 : i32
    %c7_i32_32 = arith.constant 7 : i32
    %73 = arith.subi %c7_i32_32, %c1_i32 : i32
    %74 = arith.index_cast %c1_i32 : i32 to index
    %c0_33 = arith.constant 0 : index
    %c0_34 = arith.constant 0 : index
    %75 = vector.load %arg9[%74, %c0_33, %c0_34] : memref<8x8x384xf32, #tpu.memory_space<vmem>>, vector<1x8x384xf32>
    %76 = vector.shape_cast %75 : vector<1x8x384xf32> to vector<8x384xf32>
    %77 = arith.index_cast %73 : i32 to index
    %c0_35 = arith.constant 0 : index
    %c0_36 = arith.constant 0 : index
    %78 = vector.load %arg10[%77, %c0_35, %c0_36] : memref<8x8x384xf32, #tpu.memory_space<vmem>>, vector<1x8x384xf32>
    %79 = vector.shape_cast %78 : vector<1x8x384xf32> to vector<8x384xf32>
    %80 = tpu.concatenate %76, %79 in 0 : vector<8x384xf32>, vector<8x384xf32> -> vector<16x384xf32>
    %81 = vector.extract_strided_slice %62 {offsets = [0, 0], sizes = [8, 128], strides = [1, 1]} : vector<16x128xf32> to vector<8x128xf32>
    %cst_37 = arith.constant dense<0.000000e+00> : vector<8x384xf32>
    %82 = tpu.matmul %81, %13, %cst_37 {dimension_numbers = #tpu.dot_dimension_numbers<[1], [0], [0], [1], [0, 0, 1, 1], [], []>} : vector<8x128xf32>, vector<128x384xf32>, vector<8x384xf32> -> vector<8x384xf32>
    %83 = vector.extract_strided_slice %62 {offsets = [8, 0], sizes = [8, 128], strides = [1, 1]} : vector<16x128xf32> to vector<8x128xf32>
    %cst_38 = arith.constant dense<0.000000e+00> : vector<8x384xf32>
    %84 = tpu.matmul %83, %14, %cst_38 {dimension_numbers = #tpu.dot_dimension_numbers<[1], [0], [0], [1], [0, 0, 1, 1], [], []>} : vector<8x128xf32>, vector<128x384xf32>, vector<8x384xf32> -> vector<8x384xf32>
    %85 = tpu.concatenate %82, %84 in 0 : vector<8x384xf32>, vector<8x384xf32> -> vector<16x384xf32>
    %86 = arith.addf %85, %21 : vector<16x384xf32>
    %87 = vector.extract_strided_slice %80 {offsets = [0, 0], sizes = [16, 128], strides = [1, 1]} : vector<16x384xf32> to vector<16x128xf32>
    %88 = vector.extract_strided_slice %86 {offsets = [0, 0], sizes = [16, 128], strides = [1, 1]} : vector<16x384xf32> to vector<16x128xf32>
    %89 = arith.addf %87, %88 : vector<16x128xf32>
    %90 = arith.negf %89 : vector<16x128xf32>
    %91 = math.exp %90 : vector<16x128xf32>
    %cst_39 = arith.constant 1.000000e+00 : f32
    %92 = vector.broadcast %cst_39 : f32 to vector<16x128xf32>
    %93 = arith.addf %92, %91 : vector<16x128xf32>
    %94 = arith.divf %92, %93 : vector<16x128xf32>
    %95 = vector.extract_strided_slice %80 {offsets = [0, 128], sizes = [16, 128], strides = [1, 1]} : vector<16x384xf32> to vector<16x128xf32>
    %96 = vector.extract_strided_slice %86 {offsets = [0, 128], sizes = [16, 128], strides = [1, 1]} : vector<16x384xf32> to vector<16x128xf32>
    %97 = arith.addf %95, %96 : vector<16x128xf32>
    %98 = arith.negf %97 : vector<16x128xf32>
    %99 = math.exp %98 : vector<16x128xf32>
    %cst_40 = arith.constant 1.000000e+00 : f32
    %100 = vector.broadcast %cst_40 : f32 to vector<16x128xf32>
    %101 = arith.addf %100, %99 : vector<16x128xf32>
    %102 = arith.divf %100, %101 : vector<16x128xf32>
    %103 = vector.extract_strided_slice %80 {offsets = [0, 256], sizes = [16, 128], strides = [1, 1]} : vector<16x384xf32> to vector<16x128xf32>
    %104 = vector.extract_strided_slice %86 {offsets = [0, 256], sizes = [16, 128], strides = [1, 1]} : vector<16x384xf32> to vector<16x128xf32>
    %105 = arith.mulf %94, %104 : vector<16x128xf32>
    %106 = arith.addf %103, %105 : vector<16x128xf32>
    %107 = math.tanh %106 : vector<16x128xf32>
    %cst_41 = arith.constant 1.000000e+00 : f32
    %108 = vector.broadcast %cst_41 : f32 to vector<16x128xf32>
    %109 = arith.subf %108, %102 : vector<16x128xf32>
    %110 = arith.mulf %109, %107 : vector<16x128xf32>
    %111 = arith.mulf %102, %62 : vector<16x128xf32>
    %112 = arith.addf %110, %111 : vector<16x128xf32>
    %113 = vector.extract_strided_slice %112 {offsets = [0, 0], sizes = [8, 128], strides = [1, 1]} : vector<16x128xf32> to vector<8x128xf32>
    %114 = arith.index_cast %c1_i32 : i32 to index
    %c0_42 = arith.constant 0 : index
    %c0_43 = arith.constant 0 : index
    %115 = vector.load %arg7[%114, %c0_42, %c0_43] : memref<8x8x256xf32, #tpu.memory_space<vmem>>, vector<1x8x128xf32>
    %116 = vector.shape_cast %115 : vector<1x8x128xf32> to vector<8x128xf32>
    %117 = vector.shape_cast %113 : vector<8x128xf32> to vector<1x8x128xf32>
    tpu.vector_store %arg7[%114, %c0_42, %c0_43], %117 {strides = array<i32>} : memref<8x8x256xf32, #tpu.memory_space<vmem>>, vector<1x8x128xf32>,
    %118 = vector.extract_strided_slice %112 {offsets = [8, 0], sizes = [8, 128], strides = [1, 1]} : vector<16x128xf32> to vector<8x128xf32>
    %119 = arith.index_cast %73 : i32 to index
    %c0_44 = arith.constant 0 : index
    %c128_45 = arith.constant 128 : index
    %120 = vector.load %arg7[%119, %c0_44, %c128_45] : memref<8x8x256xf32, #tpu.memory_space<vmem>>, vector<1x8x128xf32>
    %121 = vector.shape_cast %120 : vector<1x8x128xf32> to vector<8x128xf32>
    %122 = vector.shape_cast %118 : vector<8x128xf32> to vector<1x8x128xf32>
    tpu.vector_store %arg7[%119, %c0_44, %c128_45], %122 {strides = array<i32>} : memref<8x8x256xf32, #tpu.memory_space<vmem>>, vector<1x8x128xf32>,
    %c2_i32 = arith.constant 2 : i32
    %c7_i32_46 = arith.constant 7 : i32
    %123 = arith.subi %c7_i32_46, %c2_i32 : i32
    %124 = arith.index_cast %c2_i32 : i32 to index
    %c0_47 = arith.constant 0 : index
    %c0_48 = arith.constant 0 : index
    %125 = vector.load %arg9[%124, %c0_47, %c0_48] : memref<8x8x384xf32, #tpu.memory_space<vmem>>, vector<1x8x384xf32>
    %126 = vector.shape_cast %125 : vector<1x8x384xf32> to vector<8x384xf32>
    %127 = arith.index_cast %123 : i32 to index
    %c0_49 = arith.constant 0 : index
    %c0_50 = arith.constant 0 : index
    %128 = vector.load %arg10[%127, %c0_49, %c0_50] : memref<8x8x384xf32, #tpu.memory_space<vmem>>, vector<1x8x384xf32>
    %129 = vector.shape_cast %128 : vector<1x8x384xf32> to vector<8x384xf32>
    %130 = tpu.concatenate %126, %129 in 0 : vector<8x384xf32>, vector<8x384xf32> -> vector<16x384xf32>
    %131 = vector.extract_strided_slice %112 {offsets = [0, 0], sizes = [8, 128], strides = [1, 1]} : vector<16x128xf32> to vector<8x128xf32>
    %cst_51 = arith.constant dense<0.000000e+00> : vector<8x384xf32>
    %132 = tpu.matmul %131, %13, %cst_51 {dimension_numbers = #tpu.dot_dimension_numbers<[1], [0], [0], [1], [0, 0, 1, 1], [], []>} : vector<8x128xf32>, vector<128x384xf32>, vector<8x384xf32> -> vector<8x384xf32>
    %133 = vector.extract_strided_slice %112 {offsets = [8, 0], sizes = [8, 128], strides = [1, 1]} : vector<16x128xf32> to vector<8x128xf32>
    %cst_52 = arith.constant dense<0.000000e+00> : vector<8x384xf32>
    %134 = tpu.matmul %133, %14, %cst_52 {dimension_numbers = #tpu.dot_dimension_numbers<[1], [0], [0], [1], [0, 0, 1, 1], [], []>} : vector<8x128xf32>, vector<128x384xf32>, vector<8x384xf32> -> vector<8x384xf32>
    %135 = tpu.concatenate %132, %134 in 0 : vector<8x384xf32>, vector<8x384xf32> -> vector<16x384xf32>
    %136 = arith.addf %135, %21 : vector<16x384xf32>
    %137 = vector.extract_strided_slice %130 {offsets = [0, 0], sizes = [16, 128], strides = [1, 1]} : vector<16x384xf32> to vector<16x128xf32>
    %138 = vector.extract_strided_slice %136 {offsets = [0, 0], sizes = [16, 128], strides = [1, 1]} : vector<16x384xf32> to vector<16x128xf32>
    %139 = arith.addf %137, %138 : vector<16x128xf32>
    %140 = arith.negf %139 : vector<16x128xf32>
    %141 = math.exp %140 : vector<16x128xf32>
    %cst_53 = arith.constant 1.000000e+00 : f32
    %142 = vector.broadcast %cst_53 : f32 to vector<16x128xf32>
    %143 = arith.addf %142, %141 : vector<16x128xf32>
    %144 = arith.divf %142, %143 : vector<16x128xf32>
    %145 = vector.extract_strided_slice %130 {offsets = [0, 128], sizes = [16, 128], strides = [1, 1]} : vector<16x384xf32> to vector<16x128xf32>
    %146 = vector.extract_strided_slice %136 {offsets = [0, 128], sizes = [16, 128], strides = [1, 1]} : vector<16x384xf32> to vector<16x128xf32>
    %147 = arith.addf %145, %146 : vector<16x128xf32>
    %148 = arith.negf %147 : vector<16x128xf32>
    %149 = math.exp %148 : vector<16x128xf32>
    %cst_54 = arith.constant 1.000000e+00 : f32
    %150 = vector.broadcast %cst_54 : f32 to vector<16x128xf32>
    %151 = arith.addf %150, %149 : vector<16x128xf32>
    %152 = arith.divf %150, %151 : vector<16x128xf32>
    %153 = vector.extract_strided_slice %130 {offsets = [0, 256], sizes = [16, 128], strides = [1, 1]} : vector<16x384xf32> to vector<16x128xf32>
    %154 = vector.extract_strided_slice %136 {offsets = [0, 256], sizes = [16, 128], strides = [1, 1]} : vector<16x384xf32> to vector<16x128xf32>
    %155 = arith.mulf %144, %154 : vector<16x128xf32>
    %156 = arith.addf %153, %155 : vector<16x128xf32>
    %157 = math.tanh %156 : vector<16x128xf32>
    %cst_55 = arith.constant 1.000000e+00 : f32
    %158 = vector.broadcast %cst_55 : f32 to vector<16x128xf32>
    %159 = arith.subf %158, %152 : vector<16x128xf32>
    %160 = arith.mulf %159, %157 : vector<16x128xf32>
    %161 = arith.mulf %152, %112 : vector<16x128xf32>
    %162 = arith.addf %160, %161 : vector<16x128xf32>
    %163 = vector.extract_strided_slice %162 {offsets = [0, 0], sizes = [8, 128], strides = [1, 1]} : vector<16x128xf32> to vector<8x128xf32>
    %164 = arith.index_cast %c2_i32 : i32 to index
    %c0_56 = arith.constant 0 : index
    %c0_57 = arith.constant 0 : index
    %165 = vector.load %arg7[%164, %c0_56, %c0_57] : memref<8x8x256xf32, #tpu.memory_space<vmem>>, vector<1x8x128xf32>
    %166 = vector.shape_cast %165 : vector<1x8x128xf32> to vector<8x128xf32>
    %167 = vector.shape_cast %163 : vector<8x128xf32> to vector<1x8x128xf32>
    tpu.vector_store %arg7[%164, %c0_56, %c0_57], %167 {strides = array<i32>} : memref<8x8x256xf32, #tpu.memory_space<vmem>>, vector<1x8x128xf32>,
    %168 = vector.extract_strided_slice %162 {offsets = [8, 0], sizes = [8, 128], strides = [1, 1]} : vector<16x128xf32> to vector<8x128xf32>
    %169 = arith.index_cast %123 : i32 to index
    %c0_58 = arith.constant 0 : index
    %c128_59 = arith.constant 128 : index
    %170 = vector.load %arg7[%169, %c0_58, %c128_59] : memref<8x8x256xf32, #tpu.memory_space<vmem>>, vector<1x8x128xf32>
    %171 = vector.shape_cast %170 : vector<1x8x128xf32> to vector<8x128xf32>
    %172 = vector.shape_cast %168 : vector<8x128xf32> to vector<1x8x128xf32>
    tpu.vector_store %arg7[%169, %c0_58, %c128_59], %172 {strides = array<i32>} : memref<8x8x256xf32, #tpu.memory_space<vmem>>, vector<1x8x128xf32>,
    %c3_i32 = arith.constant 3 : i32
    %c7_i32_60 = arith.constant 7 : i32
    %173 = arith.subi %c7_i32_60, %c3_i32 : i32
    %174 = arith.index_cast %c3_i32 : i32 to index
    %c0_61 = arith.constant 0 : index
    %c0_62 = arith.constant 0 : index
    %175 = vector.load %arg9[%174, %c0_61, %c0_62] : memref<8x8x384xf32, #tpu.memory_space<vmem>>, vector<1x8x384xf32>
    %176 = vector.shape_cast %175 : vector<1x8x384xf32> to vector<8x384xf32>
    %177 = arith.index_cast %173 : i32 to index
    %c0_63 = arith.constant 0 : index
    %c0_64 = arith.constant 0 : index
    %178 = vector.load %arg10[%177, %c0_63, %c0_64] : memref<8x8x384xf32, #tpu.memory_space<vmem>>, vector<1x8x384xf32>
    %179 = vector.shape_cast %178 : vector<1x8x384xf32> to vector<8x384xf32>
    %180 = tpu.concatenate %176, %179 in 0 : vector<8x384xf32>, vector<8x384xf32> -> vector<16x384xf32>
    %181 = vector.extract_strided_slice %162 {offsets = [0, 0], sizes = [8, 128], strides = [1, 1]} : vector<16x128xf32> to vector<8x128xf32>
    %cst_65 = arith.constant dense<0.000000e+00> : vector<8x384xf32>
    %182 = tpu.matmul %181, %13, %cst_65 {dimension_numbers = #tpu.dot_dimension_numbers<[1], [0], [0], [1], [0, 0, 1, 1], [], []>} : vector<8x128xf32>, vector<128x384xf32>, vector<8x384xf32> -> vector<8x384xf32>
    %183 = vector.extract_strided_slice %162 {offsets = [8, 0], sizes = [8, 128], strides = [1, 1]} : vector<16x128xf32> to vector<8x128xf32>
    %cst_66 = arith.constant dense<0.000000e+00> : vector<8x384xf32>
    %184 = tpu.matmul %183, %14, %cst_66 {dimension_numbers = #tpu.dot_dimension_numbers<[1], [0], [0], [1], [0, 0, 1, 1], [], []>} : vector<8x128xf32>, vector<128x384xf32>, vector<8x384xf32> -> vector<8x384xf32>
    %185 = tpu.concatenate %182, %184 in 0 : vector<8x384xf32>, vector<8x384xf32> -> vector<16x384xf32>
    %186 = arith.addf %185, %21 : vector<16x384xf32>
    %187 = vector.extract_strided_slice %180 {offsets = [0, 0], sizes = [16, 128], strides = [1, 1]} : vector<16x384xf32> to vector<16x128xf32>
    %188 = vector.extract_strided_slice %186 {offsets = [0, 0], sizes = [16, 128], strides = [1, 1]} : vector<16x384xf32> to vector<16x128xf32>
    %189 = arith.addf %187, %188 : vector<16x128xf32>
    %190 = arith.negf %189 : vector<16x128xf32>
    %191 = math.exp %190 : vector<16x128xf32>
    %cst_67 = arith.constant 1.000000e+00 : f32
    %192 = vector.broadcast %cst_67 : f32 to vector<16x128xf32>
    %193 = arith.addf %192, %191 : vector<16x128xf32>
    %194 = arith.divf %192, %193 : vector<16x128xf32>
    %195 = vector.extract_strided_slice %180 {offsets = [0, 128], sizes = [16, 128], strides = [1, 1]} : vector<16x384xf32> to vector<16x128xf32>
    %196 = vector.extract_strided_slice %186 {offsets = [0, 128], sizes = [16, 128], strides = [1, 1]} : vector<16x384xf32> to vector<16x128xf32>
    %197 = arith.addf %195, %196 : vector<16x128xf32>
    %198 = arith.negf %197 : vector<16x128xf32>
    %199 = math.exp %198 : vector<16x128xf32>
    %cst_68 = arith.constant 1.000000e+00 : f32
    %200 = vector.broadcast %cst_68 : f32 to vector<16x128xf32>
    %201 = arith.addf %200, %199 : vector<16x128xf32>
    %202 = arith.divf %200, %201 : vector<16x128xf32>
    %203 = vector.extract_strided_slice %180 {offsets = [0, 256], sizes = [16, 128], strides = [1, 1]} : vector<16x384xf32> to vector<16x128xf32>
    %204 = vector.extract_strided_slice %186 {offsets = [0, 256], sizes = [16, 128], strides = [1, 1]} : vector<16x384xf32> to vector<16x128xf32>
    %205 = arith.mulf %194, %204 : vector<16x128xf32>
    %206 = arith.addf %203, %205 : vector<16x128xf32>
    %207 = math.tanh %206 : vector<16x128xf32>
    %cst_69 = arith.constant 1.000000e+00 : f32
    %208 = vector.broadcast %cst_69 : f32 to vector<16x128xf32>
    %209 = arith.subf %208, %202 : vector<16x128xf32>
    %210 = arith.mulf %209, %207 : vector<16x128xf32>
    %211 = arith.mulf %202, %162 : vector<16x128xf32>
    %212 = arith.addf %210, %211 : vector<16x128xf32>
    %213 = vector.extract_strided_slice %212 {offsets = [0, 0], sizes = [8, 128], strides = [1, 1]} : vector<16x128xf32> to vector<8x128xf32>
    %214 = arith.index_cast %c3_i32 : i32 to index
    %c0_70 = arith.constant 0 : index
    %c0_71 = arith.constant 0 : index
    %215 = vector.load %arg7[%214, %c0_70, %c0_71] : memref<8x8x256xf32, #tpu.memory_space<vmem>>, vector<1x8x128xf32>
    %216 = vector.shape_cast %215 : vector<1x8x128xf32> to vector<8x128xf32>
    %217 = vector.shape_cast %213 : vector<8x128xf32> to vector<1x8x128xf32>
    tpu.vector_store %arg7[%214, %c0_70, %c0_71], %217 {strides = array<i32>} : memref<8x8x256xf32, #tpu.memory_space<vmem>>, vector<1x8x128xf32>,
    %218 = vector.extract_strided_slice %212 {offsets = [8, 0], sizes = [8, 128], strides = [1, 1]} : vector<16x128xf32> to vector<8x128xf32>
    %219 = arith.index_cast %173 : i32 to index
    %c0_72 = arith.constant 0 : index
    %c128_73 = arith.constant 128 : index
    %220 = vector.load %arg7[%219, %c0_72, %c128_73] : memref<8x8x256xf32, #tpu.memory_space<vmem>>, vector<1x8x128xf32>
    %221 = vector.shape_cast %220 : vector<1x8x128xf32> to vector<8x128xf32>
    %222 = vector.shape_cast %218 : vector<8x128xf32> to vector<1x8x128xf32>
    tpu.vector_store %arg7[%219, %c0_72, %c128_73], %222 {strides = array<i32>} : memref<8x8x256xf32, #tpu.memory_space<vmem>>, vector<1x8x128xf32>,
    %c4_i32 = arith.constant 4 : i32
    %c7_i32_74 = arith.constant 7 : i32
    %223 = arith.subi %c7_i32_74, %c4_i32 : i32
    %224 = arith.index_cast %c4_i32 : i32 to index
    %c0_75 = arith.constant 0 : index
    %c0_76 = arith.constant 0 : index
    %225 = vector.load %arg9[%224, %c0_75, %c0_76] : memref<8x8x384xf32, #tpu.memory_space<vmem>>, vector<1x8x384xf32>
    %226 = vector.shape_cast %225 : vector<1x8x384xf32> to vector<8x384xf32>
    %227 = arith.index_cast %223 : i32 to index
    %c0_77 = arith.constant 0 : index
    %c0_78 = arith.constant 0 : index
    %228 = vector.load %arg10[%227, %c0_77, %c0_78] : memref<8x8x384xf32, #tpu.memory_space<vmem>>, vector<1x8x384xf32>
    %229 = vector.shape_cast %228 : vector<1x8x384xf32> to vector<8x384xf32>
    %230 = tpu.concatenate %226, %229 in 0 : vector<8x384xf32>, vector<8x384xf32> -> vector<16x384xf32>
    %231 = vector.extract_strided_slice %212 {offsets = [0, 0], sizes = [8, 128], strides = [1, 1]} : vector<16x128xf32> to vector<8x128xf32>
    %cst_79 = arith.constant dense<0.000000e+00> : vector<8x384xf32>
    %232 = tpu.matmul %231, %13, %cst_79 {dimension_numbers = #tpu.dot_dimension_numbers<[1], [0], [0], [1], [0, 0, 1, 1], [], []>} : vector<8x128xf32>, vector<128x384xf32>, vector<8x384xf32> -> vector<8x384xf32>
    %233 = vector.extract_strided_slice %212 {offsets = [8, 0], sizes = [8, 128], strides = [1, 1]} : vector<16x128xf32> to vector<8x128xf32>
    %cst_80 = arith.constant dense<0.000000e+00> : vector<8x384xf32>
    %234 = tpu.matmul %233, %14, %cst_80 {dimension_numbers = #tpu.dot_dimension_numbers<[1], [0], [0], [1], [0, 0, 1, 1], [], []>} : vector<8x128xf32>, vector<128x384xf32>, vector<8x384xf32> -> vector<8x384xf32>
    %235 = tpu.concatenate %232, %234 in 0 : vector<8x384xf32>, vector<8x384xf32> -> vector<16x384xf32>
    %236 = arith.addf %235, %21 : vector<16x384xf32>
    %237 = vector.extract_strided_slice %230 {offsets = [0, 0], sizes = [16, 128], strides = [1, 1]} : vector<16x384xf32> to vector<16x128xf32>
    %238 = vector.extract_strided_slice %236 {offsets = [0, 0], sizes = [16, 128], strides = [1, 1]} : vector<16x384xf32> to vector<16x128xf32>
    %239 = arith.addf %237, %238 : vector<16x128xf32>
    %240 = arith.negf %239 : vector<16x128xf32>
    %241 = math.exp %240 : vector<16x128xf32>
    %cst_81 = arith.constant 1.000000e+00 : f32
    %242 = vector.broadcast %cst_81 : f32 to vector<16x128xf32>
    %243 = arith.addf %242, %241 : vector<16x128xf32>
    %244 = arith.divf %242, %243 : vector<16x128xf32>
    %245 = vector.extract_strided_slice %230 {offsets = [0, 128], sizes = [16, 128], strides = [1, 1]} : vector<16x384xf32> to vector<16x128xf32>
    %246 = vector.extract_strided_slice %236 {offsets = [0, 128], sizes = [16, 128], strides = [1, 1]} : vector<16x384xf32> to vector<16x128xf32>
    %247 = arith.addf %245, %246 : vector<16x128xf32>
    %248 = arith.negf %247 : vector<16x128xf32>
    %249 = math.exp %248 : vector<16x128xf32>
    %cst_82 = arith.constant 1.000000e+00 : f32
    %250 = vector.broadcast %cst_82 : f32 to vector<16x128xf32>
    %251 = arith.addf %250, %249 : vector<16x128xf32>
    %252 = arith.divf %250, %251 : vector<16x128xf32>
    %253 = vector.extract_strided_slice %230 {offsets = [0, 256], sizes = [16, 128], strides = [1, 1]} : vector<16x384xf32> to vector<16x128xf32>
    %254 = vector.extract_strided_slice %236 {offsets = [0, 256], sizes = [16, 128], strides = [1, 1]} : vector<16x384xf32> to vector<16x128xf32>
    %255 = arith.mulf %244, %254 : vector<16x128xf32>
    %256 = arith.addf %253, %255 : vector<16x128xf32>
    %257 = math.tanh %256 : vector<16x128xf32>
    %cst_83 = arith.constant 1.000000e+00 : f32
    %258 = vector.broadcast %cst_83 : f32 to vector<16x128xf32>
    %259 = arith.subf %258, %252 : vector<16x128xf32>
    %260 = arith.mulf %259, %257 : vector<16x128xf32>
    %261 = arith.mulf %252, %212 : vector<16x128xf32>
    %262 = arith.addf %260, %261 : vector<16x128xf32>
    %263 = vector.extract_strided_slice %262 {offsets = [0, 0], sizes = [8, 128], strides = [1, 1]} : vector<16x128xf32> to vector<8x128xf32>
    %264 = arith.index_cast %c4_i32 : i32 to index
    %c0_84 = arith.constant 0 : index
    %c0_85 = arith.constant 0 : index
    %265 = vector.load %arg7[%264, %c0_84, %c0_85] : memref<8x8x256xf32, #tpu.memory_space<vmem>>, vector<1x8x128xf32>
    %266 = vector.shape_cast %265 : vector<1x8x128xf32> to vector<8x128xf32>
    %267 = vector.shape_cast %263 : vector<8x128xf32> to vector<1x8x128xf32>
    tpu.vector_store %arg7[%264, %c0_84, %c0_85], %267 {strides = array<i32>} : memref<8x8x256xf32, #tpu.memory_space<vmem>>, vector<1x8x128xf32>,
    %268 = vector.extract_strided_slice %262 {offsets = [8, 0], sizes = [8, 128], strides = [1, 1]} : vector<16x128xf32> to vector<8x128xf32>
    %269 = arith.index_cast %223 : i32 to index
    %c0_86 = arith.constant 0 : index
    %c128_87 = arith.constant 128 : index
    %270 = vector.load %arg7[%269, %c0_86, %c128_87] : memref<8x8x256xf32, #tpu.memory_space<vmem>>, vector<1x8x128xf32>
    %271 = vector.shape_cast %270 : vector<1x8x128xf32> to vector<8x128xf32>
    %272 = vector.shape_cast %268 : vector<8x128xf32> to vector<1x8x128xf32>
    tpu.vector_store %arg7[%269, %c0_86, %c128_87], %272 {strides = array<i32>} : memref<8x8x256xf32, #tpu.memory_space<vmem>>, vector<1x8x128xf32>,
    %c5_i32 = arith.constant 5 : i32
    %c7_i32_88 = arith.constant 7 : i32
    %273 = arith.subi %c7_i32_88, %c5_i32 : i32
    %274 = arith.index_cast %c5_i32 : i32 to index
    %c0_89 = arith.constant 0 : index
    %c0_90 = arith.constant 0 : index
    %275 = vector.load %arg9[%274, %c0_89, %c0_90] : memref<8x8x384xf32, #tpu.memory_space<vmem>>, vector<1x8x384xf32>
    %276 = vector.shape_cast %275 : vector<1x8x384xf32> to vector<8x384xf32>
    %277 = arith.index_cast %273 : i32 to index
    %c0_91 = arith.constant 0 : index
    %c0_92 = arith.constant 0 : index
    %278 = vector.load %arg10[%277, %c0_91, %c0_92] : memref<8x8x384xf32, #tpu.memory_space<vmem>>, vector<1x8x384xf32>
    %279 = vector.shape_cast %278 : vector<1x8x384xf32> to vector<8x384xf32>
    %280 = tpu.concatenate %276, %279 in 0 : vector<8x384xf32>, vector<8x384xf32> -> vector<16x384xf32>
    %281 = vector.extract_strided_slice %262 {offsets = [0, 0], sizes = [8, 128], strides = [1, 1]} : vector<16x128xf32> to vector<8x128xf32>
    %cst_93 = arith.constant dense<0.000000e+00> : vector<8x384xf32>
    %282 = tpu.matmul %281, %13, %cst_93 {dimension_numbers = #tpu.dot_dimension_numbers<[1], [0], [0], [1], [0, 0, 1, 1], [], []>} : vector<8x128xf32>, vector<128x384xf32>, vector<8x384xf32> -> vector<8x384xf32>
    %283 = vector.extract_strided_slice %262 {offsets = [8, 0], sizes = [8, 128], strides = [1, 1]} : vector<16x128xf32> to vector<8x128xf32>
    %cst_94 = arith.constant dense<0.000000e+00> : vector<8x384xf32>
    %284 = tpu.matmul %283, %14, %cst_94 {dimension_numbers = #tpu.dot_dimension_numbers<[1], [0], [0], [1], [0, 0, 1, 1], [], []>} : vector<8x128xf32>, vector<128x384xf32>, vector<8x384xf32> -> vector<8x384xf32>
    %285 = tpu.concatenate %282, %284 in 0 : vector<8x384xf32>, vector<8x384xf32> -> vector<16x384xf32>
    %286 = arith.addf %285, %21 : vector<16x384xf32>
    %287 = vector.extract_strided_slice %280 {offsets = [0, 0], sizes = [16, 128], strides = [1, 1]} : vector<16x384xf32> to vector<16x128xf32>
    %288 = vector.extract_strided_slice %286 {offsets = [0, 0], sizes = [16, 128], strides = [1, 1]} : vector<16x384xf32> to vector<16x128xf32>
    %289 = arith.addf %287, %288 : vector<16x128xf32>
    %290 = arith.negf %289 : vector<16x128xf32>
    %291 = math.exp %290 : vector<16x128xf32>
    %cst_95 = arith.constant 1.000000e+00 : f32
    %292 = vector.broadcast %cst_95 : f32 to vector<16x128xf32>
    %293 = arith.addf %292, %291 : vector<16x128xf32>
    %294 = arith.divf %292, %293 : vector<16x128xf32>
    %295 = vector.extract_strided_slice %280 {offsets = [0, 128], sizes = [16, 128], strides = [1, 1]} : vector<16x384xf32> to vector<16x128xf32>
    %296 = vector.extract_strided_slice %286 {offsets = [0, 128], sizes = [16, 128], strides = [1, 1]} : vector<16x384xf32> to vector<16x128xf32>
    %297 = arith.addf %295, %296 : vector<16x128xf32>
    %298 = arith.negf %297 : vector<16x128xf32>
    %299 = math.exp %298 : vector<16x128xf32>
    %cst_96 = arith.constant 1.000000e+00 : f32
    %300 = vector.broadcast %cst_96 : f32 to vector<16x128xf32>
    %301 = arith.addf %300, %299 : vector<16x128xf32>
    %302 = arith.divf %300, %301 : vector<16x128xf32>
    %303 = vector.extract_strided_slice %280 {offsets = [0, 256], sizes = [16, 128], strides = [1, 1]} : vector<16x384xf32> to vector<16x128xf32>
    %304 = vector.extract_strided_slice %286 {offsets = [0, 256], sizes = [16, 128], strides = [1, 1]} : vector<16x384xf32> to vector<16x128xf32>
    %305 = arith.mulf %294, %304 : vector<16x128xf32>
    %306 = arith.addf %303, %305 : vector<16x128xf32>
    %307 = math.tanh %306 : vector<16x128xf32>
    %cst_97 = arith.constant 1.000000e+00 : f32
    %308 = vector.broadcast %cst_97 : f32 to vector<16x128xf32>
    %309 = arith.subf %308, %302 : vector<16x128xf32>
    %310 = arith.mulf %309, %307 : vector<16x128xf32>
    %311 = arith.mulf %302, %262 : vector<16x128xf32>
    %312 = arith.addf %310, %311 : vector<16x128xf32>
    %313 = vector.extract_strided_slice %312 {offsets = [0, 0], sizes = [8, 128], strides = [1, 1]} : vector<16x128xf32> to vector<8x128xf32>
    %314 = arith.index_cast %c5_i32 : i32 to index
    %c0_98 = arith.constant 0 : index
    %c0_99 = arith.constant 0 : index
    %315 = vector.load %arg7[%314, %c0_98, %c0_99] : memref<8x8x256xf32, #tpu.memory_space<vmem>>, vector<1x8x128xf32>
    %316 = vector.shape_cast %315 : vector<1x8x128xf32> to vector<8x128xf32>
    %317 = vector.shape_cast %313 : vector<8x128xf32> to vector<1x8x128xf32>
    tpu.vector_store %arg7[%314, %c0_98, %c0_99], %317 {strides = array<i32>} : memref<8x8x256xf32, #tpu.memory_space<vmem>>, vector<1x8x128xf32>,
    %318 = vector.extract_strided_slice %312 {offsets = [8, 0], sizes = [8, 128], strides = [1, 1]} : vector<16x128xf32> to vector<8x128xf32>
    %319 = arith.index_cast %273 : i32 to index
    %c0_100 = arith.constant 0 : index
    %c128_101 = arith.constant 128 : index
    %320 = vector.load %arg7[%319, %c0_100, %c128_101] : memref<8x8x256xf32, #tpu.memory_space<vmem>>, vector<1x8x128xf32>
    %321 = vector.shape_cast %320 : vector<1x8x128xf32> to vector<8x128xf32>
    %322 = vector.shape_cast %318 : vector<8x128xf32> to vector<1x8x128xf32>
    tpu.vector_store %arg7[%319, %c0_100, %c128_101], %322 {strides = array<i32>} : memref<8x8x256xf32, #tpu.memory_space<vmem>>, vector<1x8x128xf32>,
    %c6_i32 = arith.constant 6 : i32
    %c7_i32_102 = arith.constant 7 : i32
    %323 = arith.subi %c7_i32_102, %c6_i32 : i32
    %324 = arith.index_cast %c6_i32 : i32 to index
    %c0_103 = arith.constant 0 : index
    %c0_104 = arith.constant 0 : index
    %325 = vector.load %arg9[%324, %c0_103, %c0_104] : memref<8x8x384xf32, #tpu.memory_space<vmem>>, vector<1x8x384xf32>
    %326 = vector.shape_cast %325 : vector<1x8x384xf32> to vector<8x384xf32>
    %327 = arith.index_cast %323 : i32 to index
    %c0_105 = arith.constant 0 : index
    %c0_106 = arith.constant 0 : index
    %328 = vector.load %arg10[%327, %c0_105, %c0_106] : memref<8x8x384xf32, #tpu.memory_space<vmem>>, vector<1x8x384xf32>
    %329 = vector.shape_cast %328 : vector<1x8x384xf32> to vector<8x384xf32>
    %330 = tpu.concatenate %326, %329 in 0 : vector<8x384xf32>, vector<8x384xf32> -> vector<16x384xf32>
    %331 = vector.extract_strided_slice %312 {offsets = [0, 0], sizes = [8, 128], strides = [1, 1]} : vector<16x128xf32> to vector<8x128xf32>
    %cst_107 = arith.constant dense<0.000000e+00> : vector<8x384xf32>
    %332 = tpu.matmul %331, %13, %cst_107 {dimension_numbers = #tpu.dot_dimension_numbers<[1], [0], [0], [1], [0, 0, 1, 1], [], []>} : vector<8x128xf32>, vector<128x384xf32>, vector<8x384xf32> -> vector<8x384xf32>
    %333 = vector.extract_strided_slice %312 {offsets = [8, 0], sizes = [8, 128], strides = [1, 1]} : vector<16x128xf32> to vector<8x128xf32>
    %cst_108 = arith.constant dense<0.000000e+00> : vector<8x384xf32>
    %334 = tpu.matmul %333, %14, %cst_108 {dimension_numbers = #tpu.dot_dimension_numbers<[1], [0], [0], [1], [0, 0, 1, 1], [], []>} : vector<8x128xf32>, vector<128x384xf32>, vector<8x384xf32> -> vector<8x384xf32>
    %335 = tpu.concatenate %332, %334 in 0 : vector<8x384xf32>, vector<8x384xf32> -> vector<16x384xf32>
    %336 = arith.addf %335, %21 : vector<16x384xf32>
    %337 = vector.extract_strided_slice %330 {offsets = [0, 0], sizes = [16, 128], strides = [1, 1]} : vector<16x384xf32> to vector<16x128xf32>
    %338 = vector.extract_strided_slice %336 {offsets = [0, 0], sizes = [16, 128], strides = [1, 1]} : vector<16x384xf32> to vector<16x128xf32>
    %339 = arith.addf %337, %338 : vector<16x128xf32>
    %340 = arith.negf %339 : vector<16x128xf32>
    %341 = math.exp %340 : vector<16x128xf32>
    %cst_109 = arith.constant 1.000000e+00 : f32
    %342 = vector.broadcast %cst_109 : f32 to vector<16x128xf32>
    %343 = arith.addf %342, %341 : vector<16x128xf32>
    %344 = arith.divf %342, %343 : vector<16x128xf32>
    %345 = vector.extract_strided_slice %330 {offsets = [0, 128], sizes = [16, 128], strides = [1, 1]} : vector<16x384xf32> to vector<16x128xf32>
    %346 = vector.extract_strided_slice %336 {offsets = [0, 128], sizes = [16, 128], strides = [1, 1]} : vector<16x384xf32> to vector<16x128xf32>
    %347 = arith.addf %345, %346 : vector<16x128xf32>
    %348 = arith.negf %347 : vector<16x128xf32>
    %349 = math.exp %348 : vector<16x128xf32>
    %cst_110 = arith.constant 1.000000e+00 : f32
    %350 = vector.broadcast %cst_110 : f32 to vector<16x128xf32>
    %351 = arith.addf %350, %349 : vector<16x128xf32>
    %352 = arith.divf %350, %351 : vector<16x128xf32>
    %353 = vector.extract_strided_slice %330 {offsets = [0, 256], sizes = [16, 128], strides = [1, 1]} : vector<16x384xf32> to vector<16x128xf32>
    %354 = vector.extract_strided_slice %336 {offsets = [0, 256], sizes = [16, 128], strides = [1, 1]} : vector<16x384xf32> to vector<16x128xf32>
    %355 = arith.mulf %344, %354 : vector<16x128xf32>
    %356 = arith.addf %353, %355 : vector<16x128xf32>
    %357 = math.tanh %356 : vector<16x128xf32>
    %cst_111 = arith.constant 1.000000e+00 : f32
    %358 = vector.broadcast %cst_111 : f32 to vector<16x128xf32>
    %359 = arith.subf %358, %352 : vector<16x128xf32>
    %360 = arith.mulf %359, %357 : vector<16x128xf32>
    %361 = arith.mulf %352, %312 : vector<16x128xf32>
    %362 = arith.addf %360, %361 : vector<16x128xf32>
    %363 = vector.extract_strided_slice %362 {offsets = [0, 0], sizes = [8, 128], strides = [1, 1]} : vector<16x128xf32> to vector<8x128xf32>
    %364 = arith.index_cast %c6_i32 : i32 to index
    %c0_112 = arith.constant 0 : index
    %c0_113 = arith.constant 0 : index
    %365 = vector.load %arg7[%364, %c0_112, %c0_113] : memref<8x8x256xf32, #tpu.memory_space<vmem>>, vector<1x8x128xf32>
    %366 = vector.shape_cast %365 : vector<1x8x128xf32> to vector<8x128xf32>
    %367 = vector.shape_cast %363 : vector<8x128xf32> to vector<1x8x128xf32>
    tpu.vector_store %arg7[%364, %c0_112, %c0_113], %367 {strides = array<i32>} : memref<8x8x256xf32, #tpu.memory_space<vmem>>, vector<1x8x128xf32>,
    %368 = vector.extract_strided_slice %362 {offsets = [8, 0], sizes = [8, 128], strides = [1, 1]} : vector<16x128xf32> to vector<8x128xf32>
    %369 = arith.index_cast %323 : i32 to index
    %c0_114 = arith.constant 0 : index
    %c128_115 = arith.constant 128 : index
    %370 = vector.load %arg7[%369, %c0_114, %c128_115] : memref<8x8x256xf32, #tpu.memory_space<vmem>>, vector<1x8x128xf32>
    %371 = vector.shape_cast %370 : vector<1x8x128xf32> to vector<8x128xf32>
    %372 = vector.shape_cast %368 : vector<8x128xf32> to vector<1x8x128xf32>
    tpu.vector_store %arg7[%369, %c0_114, %c128_115], %372 {strides = array<i32>} : memref<8x8x256xf32, #tpu.memory_space<vmem>>, vector<1x8x128xf32>,
    %c7_i32_116 = arith.constant 7 : i32
    %c7_i32_117 = arith.constant 7 : i32
    %373 = arith.subi %c7_i32_117, %c7_i32_116 : i32
    %374 = arith.index_cast %c7_i32_116 : i32 to index
    %c0_118 = arith.constant 0 : index
    %c0_119 = arith.constant 0 : index
    %375 = vector.load %arg9[%374, %c0_118, %c0_119] : memref<8x8x384xf32, #tpu.memory_space<vmem>>, vector<1x8x384xf32>
    %376 = vector.shape_cast %375 : vector<1x8x384xf32> to vector<8x384xf32>
    %377 = arith.index_cast %373 : i32 to index
    %c0_120 = arith.constant 0 : index
    %c0_121 = arith.constant 0 : index
    %378 = vector.load %arg10[%377, %c0_120, %c0_121] : memref<8x8x384xf32, #tpu.memory_space<vmem>>, vector<1x8x384xf32>
    %379 = vector.shape_cast %378 : vector<1x8x384xf32> to vector<8x384xf32>
    %380 = tpu.concatenate %376, %379 in 0 : vector<8x384xf32>, vector<8x384xf32> -> vector<16x384xf32>
    %381 = vector.extract_strided_slice %362 {offsets = [0, 0], sizes = [8, 128], strides = [1, 1]} : vector<16x128xf32> to vector<8x128xf32>
    %cst_122 = arith.constant dense<0.000000e+00> : vector<8x384xf32>
    %382 = tpu.matmul %381, %13, %cst_122 {dimension_numbers = #tpu.dot_dimension_numbers<[1], [0], [0], [1], [0, 0, 1, 1], [], []>} : vector<8x128xf32>, vector<128x384xf32>, vector<8x384xf32> -> vector<8x384xf32>
    %383 = vector.extract_strided_slice %362 {offsets = [8, 0], sizes = [8, 128], strides = [1, 1]} : vector<16x128xf32> to vector<8x128xf32>
    %cst_123 = arith.constant dense<0.000000e+00> : vector<8x384xf32>
    %384 = tpu.matmul %383, %14, %cst_123 {dimension_numbers = #tpu.dot_dimension_numbers<[1], [0], [0], [1], [0, 0, 1, 1], [], []>} : vector<8x128xf32>, vector<128x384xf32>, vector<8x384xf32> -> vector<8x384xf32>
    %385 = tpu.concatenate %382, %384 in 0 : vector<8x384xf32>, vector<8x384xf32> -> vector<16x384xf32>
    %386 = arith.addf %385, %21 : vector<16x384xf32>
    %387 = vector.extract_strided_slice %380 {offsets = [0, 0], sizes = [16, 128], strides = [1, 1]} : vector<16x384xf32> to vector<16x128xf32>
    %388 = vector.extract_strided_slice %386 {offsets = [0, 0], sizes = [16, 128], strides = [1, 1]} : vector<16x384xf32> to vector<16x128xf32>
    %389 = arith.addf %387, %388 : vector<16x128xf32>
    %390 = arith.negf %389 : vector<16x128xf32>
    %391 = math.exp %390 : vector<16x128xf32>
    %cst_124 = arith.constant 1.000000e+00 : f32
    %392 = vector.broadcast %cst_124 : f32 to vector<16x128xf32>
    %393 = arith.addf %392, %391 : vector<16x128xf32>
    %394 = arith.divf %392, %393 : vector<16x128xf32>
    %395 = vector.extract_strided_slice %380 {offsets = [0, 128], sizes = [16, 128], strides = [1, 1]} : vector<16x384xf32> to vector<16x128xf32>
    %396 = vector.extract_strided_slice %386 {offsets = [0, 128], sizes = [16, 128], strides = [1, 1]} : vector<16x384xf32> to vector<16x128xf32>
    %397 = arith.addf %395, %396 : vector<16x128xf32>
    %398 = arith.negf %397 : vector<16x128xf32>
    %399 = math.exp %398 : vector<16x128xf32>
    %cst_125 = arith.constant 1.000000e+00 : f32
    %400 = vector.broadcast %cst_125 : f32 to vector<16x128xf32>
    %401 = arith.addf %400, %399 : vector<16x128xf32>
    %402 = arith.divf %400, %401 : vector<16x128xf32>
    %403 = vector.extract_strided_slice %380 {offsets = [0, 256], sizes = [16, 128], strides = [1, 1]} : vector<16x384xf32> to vector<16x128xf32>
    %404 = vector.extract_strided_slice %386 {offsets = [0, 256], sizes = [16, 128], strides = [1, 1]} : vector<16x384xf32> to vector<16x128xf32>
    %405 = arith.mulf %394, %404 : vector<16x128xf32>
    %406 = arith.addf %403, %405 : vector<16x128xf32>
    %407 = math.tanh %406 : vector<16x128xf32>
    %cst_126 = arith.constant 1.000000e+00 : f32
    %408 = vector.broadcast %cst_126 : f32 to vector<16x128xf32>
    %409 = arith.subf %408, %402 : vector<16x128xf32>
    %410 = arith.mulf %409, %407 : vector<16x128xf32>
    %411 = arith.mulf %402, %362 : vector<16x128xf32>
    %412 = arith.addf %410, %411 : vector<16x128xf32>
    %413 = vector.extract_strided_slice %412 {offsets = [0, 0], sizes = [8, 128], strides = [1, 1]} : vector<16x128xf32> to vector<8x128xf32>
    %414 = arith.index_cast %c7_i32_116 : i32 to index
    %c0_127 = arith.constant 0 : index
    %c0_128 = arith.constant 0 : index
    %415 = vector.load %arg7[%414, %c0_127, %c0_128] : memref<8x8x256xf32, #tpu.memory_space<vmem>>, vector<1x8x128xf32>
    %416 = vector.shape_cast %415 : vector<1x8x128xf32> to vector<8x128xf32>
    %417 = vector.shape_cast %413 : vector<8x128xf32> to vector<1x8x128xf32>
    tpu.vector_store %arg7[%414, %c0_127, %c0_128], %417 {strides = array<i32>} : memref<8x8x256xf32, #tpu.memory_space<vmem>>, vector<1x8x128xf32>,
    %418 = vector.extract_strided_slice %412 {offsets = [8, 0], sizes = [8, 128], strides = [1, 1]} : vector<16x128xf32> to vector<8x128xf32>
    %419 = arith.index_cast %373 : i32 to index
    %c0_129 = arith.constant 0 : index
    %c128_130 = arith.constant 128 : index
    %420 = vector.load %arg7[%419, %c0_129, %c128_130] : memref<8x8x256xf32, #tpu.memory_space<vmem>>, vector<1x8x128xf32>
    %421 = vector.shape_cast %420 : vector<1x8x128xf32> to vector<8x128xf32>
    %422 = vector.shape_cast %418 : vector<8x128xf32> to vector<1x8x128xf32>
    tpu.vector_store %arg7[%419, %c0_129, %c128_130], %422 {strides = array<i32>} : memref<8x8x256xf32, #tpu.memory_space<vmem>>, vector<1x8x128xf32>,
    %c8_i32 = arith.constant 8 : i32
    %423 = vector.extract_strided_slice %412 {offsets = [0, 0], sizes = [8, 128], strides = [1, 1]} : vector<16x128xf32> to vector<8x128xf32>
    %c0_131 = arith.constant 0 : index
    %c0_132 = arith.constant 0 : index
    %c0_133 = arith.constant 0 : index
    %424 = vector.load %arg8[%c0_131, %c0_132, %c0_133] : memref<2x8x128xf32, #tpu.memory_space<vmem>>, vector<1x8x128xf32>
    %425 = vector.shape_cast %424 : vector<1x8x128xf32> to vector<8x128xf32>
    %426 = vector.shape_cast %423 : vector<8x128xf32> to vector<1x8x128xf32>
    tpu.vector_store %arg8[%c0_131, %c0_132, %c0_133], %426 {strides = array<i32>} : memref<2x8x128xf32, #tpu.memory_space<vmem>>, vector<1x8x128xf32>,
    %427 = vector.extract_strided_slice %412 {offsets = [8, 0], sizes = [8, 128], strides = [1, 1]} : vector<16x128xf32> to vector<8x128xf32>
    %c1_134 = arith.constant 1 : index
    %c0_135 = arith.constant 0 : index
    %c0_136 = arith.constant 0 : index
    %428 = vector.load %arg8[%c1_134, %c0_135, %c0_136] : memref<2x8x128xf32, #tpu.memory_space<vmem>>, vector<1x8x128xf32>
    %429 = vector.shape_cast %428 : vector<1x8x128xf32> to vector<8x128xf32>
    %430 = vector.shape_cast %427 : vector<8x128xf32> to vector<1x8x128xf32>
    tpu.vector_store %arg8[%c1_134, %c0_135, %c0_136], %430 {strides = array<i32>} : memref<2x8x128xf32, #tpu.memory_space<vmem>>, vector<1x8x128xf32>,
    return
  }
  func.func @transform_0(%arg0: i32) -> (i32, i32, i32) {
    %c0_i32 = arith.constant 0 : i32
    %c0_i32_0 = arith.constant 0 : i32
    %c0_i32_1 = arith.constant 0 : i32
    %c0_i32_2 = arith.constant 0 : i32
    return %c0_i32, %c0_i32_0, %c0_i32_1 : i32, i32, i32
  }
  func.func @transform_1(%arg0: i32) -> (i32, i32) {
    %c0_i32 = arith.constant 0 : i32
    %c0_i32_0 = arith.constant 0 : i32
    %c0_i32_1 = arith.constant 0 : i32
    return %c0_i32, %c0_i32_0 : i32, i32
  }
  func.func @transform_2(%arg0: i32) -> (i32, i32) {
    %c0_i32 = arith.constant 0 : i32
    %c0_i32_0 = arith.constant 0 : i32
    %c0_i32_1 = arith.constant 0 : i32
    return %c0_i32, %c0_i32_0 : i32, i32
  }
  func.func @transform_3(%arg0: i32) -> (i32, i32) {
    %c0_i32 = arith.constant 0 : i32
    %c0_i32_0 = arith.constant 0 : i32
    %c0_i32_1 = arith.constant 0 : i32
    return %c0_i32, %c0_i32_0 : i32, i32
  }
  func.func @transform_4(%arg0: i32) -> (i32, i32) {
    %c0_i32 = arith.constant 0 : i32
    %c0_i32_0 = arith.constant 0 : i32
    %c0_i32_1 = arith.constant 0 : i32
    return %c0_i32, %c0_i32_0 : i32, i32
  }
  func.func @transform_5(%arg0: i32) -> (i32, i32) {
    %c0_i32 = arith.constant 0 : i32
    %c0_i32_0 = arith.constant 0 : i32
    %c0_i32_1 = arith.constant 0 : i32
    return %c0_i32, %c0_i32_0 : i32, i32
  }
  func.func @transform_6(%arg0: i32) -> (i32, i32, i32) {
    %c0_i32 = arith.constant 0 : i32
    %c0_i32_0 = arith.constant 0 : i32
    %c0_i32_1 = arith.constant 0 : i32
    %c0_i32_2 = arith.constant 0 : i32
    return %c0_i32, %c0_i32_0, %c0_i32_1 : i32, i32, i32
  }
  func.func @transform_7(%arg0: i32) -> (i32, i32, i32) {
    %c0_i32 = arith.constant 0 : i32
    %c0_i32_0 = arith.constant 0 : i32
    %c0_i32_1 = arith.constant 0 : i32
    %c0_i32_2 = arith.constant 0 : i32
    return %c0_i32, %c0_i32_0, %c0_i32_1 : i32, i32, i32
  }
}

</mosaic_0001>

<bundles_post_ra>
// kernel: tpu_custom_call.1
= control target key start
LH: loop header
LB: loop body
LE: loop exit
PB: predicated region body
PF: predicated region fallthrough
CT: control target
= control target key end

     0   :  { %13 = vsyncpa [#allocation5], 0  ;;  %s5114_s0 = inlined_call_operand.hbm [shape: f32[8,8,32], index: 0, kind: input, shape index: {}]   ;;  %s5115_s1 = inlined_call_operand.hbm [shape: f32[32,768], index: 1, kind: input, shape index: {}]   ;;  %s5116_s2 = inlined_call_operand.hbm [shape: f32[128,384], index: 2, kind: input, shape index: {}]   ;;  %s5117_s3 = inlined_call_operand.hbm [shape: f32[128,384], index: 3, kind: input, shape index: {}]   ;;  %s5118_s4 = inlined_call_operand.hbm [shape: f32[1,768], index: 4, kind: input, shape index: {}]   ;;  %s5119_s5 = inlined_call_operand.hbm [shape: f32[2,384], index: 5, kind: input, shape index: {}]   ;;  %s5120_s6 = inlined_call_operand.hbm [shape: f32[8,8,256], index: 6, kind: output, shape index: {0}]   ;;  %s5121_s7 = inlined_call_operand.hbm [shape: f32[2,8,128], index: 7, kind: output, shape index: {1}]  }
   0x1   :  { %14 = vsyncpa [#allocation8], 0 }
   0x2   :  { %15 = vsyncpa [#allocation11], 0 }
   0x3   :  { %16 = vsyncpa [#allocation14], 0 }
   0x4   :  { %17 = vsyncpa [#allocation6], 0  ;;  %s36_s26 = sshll.u32 %s5115_s1, 4  ;;  %s37_s26 = int_to_ptr.hbm [resolvable:$true] %s36_s26 }
   0x5   :  { %18 = vsyncpa [#allocation17], 0  ;;  %s3136_s27 = smov [#allocation7]   ;;  %s3137_s29 = smov 768  }
   0x6   :  { %s38_s28 = sshll.u32 %s3136_s27, 4  ;;  %s3138_s30 = smov 48   ;;  %s39_s28 = int_to_ptr.vmem [resolvable:$true] %s38_s28 }
   0x7   :  { %44 = dma.hbm_to_vmem [thread:$0]  %s37_s26, 3072, %s39_s28, [#allocation8], %s3137_s29, %s3137_s29, %s3138_s30  }
   0x8   :  { %s62_s10 = sshll.u32 %s5117_s3, 4  ;;  %s3139_s11 = smov [#allocation10]   ;;  %s63_s10 = int_to_ptr.hbm [resolvable:$true] %s62_s10 }
   0x9   :  { %s64_s12 = sshll.u32 %s3139_s11, 4  ;;  %s23_s15 = sshll.u32 %s5114_s0, 4  ;;  %s65_s12 = int_to_ptr.vmem [resolvable:$true] %s64_s12  ;;  %s24_s15 = int_to_ptr.hbm [resolvable:$true] %s23_s15 }
   0xa   :  { %s3140_s1 = smov 384   ;;  %s3141_s16 = smov 24  }
   0xb   :  { %70 = dma.hbm_to_vmem [thread:$0]  %s63_s10, 6144, %s65_s12, [#allocation11], %s3140_s1, %s3140_s1, %s3141_s16  }
   0xc   :  { %s3142_s17 = smov [#allocation4]   ;;  %s49_s21 = sshll.u32 %s5116_s2, 4  ;;  %s50_s21 = int_to_ptr.hbm [resolvable:$true] %s49_s21 }
   0xd   :  { %s25_s18 = sshll.u32 %s3142_s17, 4  ;;  %s3143_s3 = smov 128   ;;  %s26_s18 = int_to_ptr.vmem [resolvable:$true] %s25_s18 }
   0xe   :  { %s3144_s22 = smov 8   ;;  %s3145_s0 = smov [#allocation9]  }
   0xf   :  { %31 = dma.hbm_to_vmem [thread:$0]  %s24_s15, 1024, %s26_s18, [#allocation5], %s3143_s3, %s3143_s3, %s3144_s22  }
  0x10   :  { %s51_s23 = sshll.u32 %s3145_s0, 4  ;;  %s76_s26 = sshll.u32 %s5118_s4, 4  ;;  %s52_s23 = int_to_ptr.vmem [resolvable:$true] %s51_s23  ;;  %s77_s26 = int_to_ptr.hbm [resolvable:$true] %s76_s26 }
  0x11   :  { %57 = dma.hbm_to_vmem [thread:$0]  %s50_s21, 6144, %s52_s23, [#allocation8], %s3140_s1, %s3140_s1, %s3141_s16  }
  0x12   :  { %s87_s2 = sshll.u32 %s5119_s5, 4  ;;  %s3146_s29 = smov [#allocation12]   ;;  %s88_s2 = int_to_ptr.hbm [resolvable:$true] %s87_s2 }
  0x13   :  { %s78_s30 = sshll.u32 %s3146_s29, 4  ;;  %s3147_s8 = smov [#allocation13]   ;;  %s79_s30 = int_to_ptr.vmem [resolvable:$true] %s78_s30 }
  0x14   :  { %81 = dma.hbm_to_vmem [thread:$0]  %s77_s26, 96, %s79_s30, [#allocation11]  }
  0x15   :  { %s89_s9 = sshll.u32 %s3147_s8, 4  ;;  %s90_s9 = int_to_ptr.vmem [resolvable:$true] %s89_s9 }
  0x16   :  { %92 = dma.hbm_to_vmem [thread:$0]  %s88_s2, 96, %s90_s9, [#allocation14]  }
  0x17   :  { %3124 = dma.done.wait [#allocation5], 1024  }
  0x18   :  { %3125 = vsyncadd [#allocation5], 4294966272 }
  0x19   :  { %3126 = dma.done.wait [#allocation8], 9216  }
  0x1a   :  { %3127 = vsyncadd [#allocation8], 4294958080 }
  0x1b   :  { %3128 = dma.done.wait [#allocation11], 6240  }
  0x1c   :  { %3129 = vsyncadd [#allocation11], 4294961056 }
  0x1d   :  { %3130 = dma.done.wait [#allocation14], 96  }
  0x1e   :  { %3131 = vsyncadd [#allocation14], 4294967200  ;;  %v143_v0 = vld [vmem:[#allocation7 + $0x90] sm:$0xff]  ;;  %v144_v1 = vld [vmem:[#allocation7 + $0x98] sm:$0xff]  ;;  %vm163_vm0 = vcmask 261120   ;;  %s3149_s4 = smov [#allocation15]  }
  0x1f   :  { %v145_v2 = vld [vmem:[#allocation7 + $0xa0] sm:$0xff]  ;;  %200 = vmatpush.msra.mxu0 %v143_v0  ;;  %241 = vmatpush.msra.mxu1 %v144_v1  ;;  %v146_v3 = vld [vmem:[#allocation7 + $0xa8] sm:$0xff]  ;;  %v139_v6 = vld [vmem:[#allocation7 + $0x70] sm:$0xff]  ;;  %s2447_s5 = sshll.u32 %s3149_s4, 4  ;;  %s2449_s12 = sshll.u32 %s5120_s6, 4  ;;  %s2448_s5 = int_to_ptr.vmem [resolvable:$true] %s2447_s5  ;;  %s2450_s12 = int_to_ptr.hbm [resolvable:$true] %s2449_s12 }
  0x20   :  { %v137_v4 = vld [vmem:[#allocation7 + $0x60] sm:$0xff]  ;;  %v138_v5 = vld [vmem:[#allocation7 + $0x68] sm:$0xff]  ;;  %282 = vmatpush.msra.mxu2 %v145_v2  ;;  %323 = vmatpush.msra.mxu3 %v146_v3  ;;  %v140_v7 = vld [vmem:[#allocation7 + $0x78] sm:$0xff]  ;;  %s3150_s13 = smov [#allocation16]   ;;  %s2462_s16 = sshll.u32 %s5121_s7, 4  ;;  %s2463_s16 = int_to_ptr.hbm [resolvable:$true] %s2462_s16 }
  0x21   :  { %v131_v8 = vld [vmem:[#allocation7 + $0x30] sm:$0xff]  ;;  %201 = vmatpush.msra.mxu0 %v137_v4  ;;  %242 = vmatpush.msra.mxu1 %v138_v5  ;;  %v132_v9 = vld [vmem:[#allocation7 + $0x38] sm:$0xff]  ;;  %v133_v10 = vld [vmem:[#allocation7 + $0x40] sm:$0xff]  ;;  %s2460_s14 = sshll.u32 %s3150_s13, 4  ;;  %s3151_s17 = smov 256   ;;  %s2461_s14 = int_to_ptr.vmem [resolvable:$true] %s2460_s14 }
  0x22   :  { %v134_v11 = vld [vmem:[#allocation7 + $0x48] sm:$0xff]  ;;  %283 = vmatpush.msra.mxu2 %v139_v6  ;;  %324 = vmatpush.msra.mxu3 %v140_v7  ;;  %v125_v12 = vld [vmem:[#allocation7] sm:$0xff]  ;;  %v127_v14 = vld [vmem:[#allocation7 + $0x10] sm:$0xff]  ;;  %s3152_s18 = smov 16  }
  0x23   :  { %v126_v13 = vld [vmem:[#allocation7 + $0x8] sm:$0xff]  ;;  %202 = vmatpush.msra.mxu0 %v131_v8  ;;  %243 = vmatpush.msra.mxu1 %v132_v9  ;;  %v128_v15 = vld [vmem:[#allocation7 + $0x18] sm:$0xff]  ;;  %v3214_v16 = vld [vmem:[#allocation4] sm:$0xff] }
  0x24   :  { %284 = vmatpush.msra.mxu2 %v133_v10  ;;  %325 = vmatpush.msra.mxu3 %v134_v11  ;;  %v147_v17 = vld [vmem:[#allocation7 + $0xb0] sm:$0xff]  ;;  %v148_v18 = vld [vmem:[#allocation7 + $0xb8] sm:$0xff]  ;;  %v3222_v20 = vld [vmem:[#allocation9 + $0x168] sm:$0xff] }
  0x25   :  { %203 = vmatpush.msra.mxu0 %v125_v12  ;;  %244 = vmatpush.msra.mxu1 %v126_v13  ;;  %v3220_v19 = vld [vmem:[#allocation9 + $0x170] sm:$0xff]  ;;  %v141_v21 = vld [vmem:[#allocation7 + $0x80] sm:$0xff]  ;;  %v3228_v22 = vld [vmem:[#allocation9 + $0x158] sm:$0xff] }
  0x26   :  { %285 = vmatpush.msra.mxu2 %v127_v14  ;;  %326 = vmatpush.msra.mxu3 %v128_v15  ;;  %v3230_v23 = vld [vmem:[#allocation9 + $0x150] sm:$0xff]  ;;  %v142_v25 = vld [vmem:[#allocation7 + $0x88] sm:$0xff]  ;;  %v3234_v26 = vld [vmem:[#allocation9 + $0x140] sm:$0xff] }
  0x27   :  { %2483 = vmatmul.msk.f32.vlgmr.msra.gmra.mxu0 %vm163_vm0, %v3214_v16  ;;  %2491 = vmatmul.msk.f32.vlgmr.msra.gmra.mxu1 %vm163_vm0, %v3214_v16  ;;  %v135_v24 = vld [vmem:[#allocation7 + $0x50] sm:$0xff]  ;;  %v3236_v27 = vld [vmem:[#allocation9 + $0x138] sm:$0xff]  ;;  %v3238_v28 = vld [vmem:[#allocation4 + $0x8] sm:$0xff] }
  0x28   :  { %2499 = vmatmul.msk.f32.vlgmr.msra.gmra.mxu2 %vm163_vm0, %v3214_v16  ;;  %2507 = vmatmul.msk.f32.vlgmr.msra.gmra.mxu3 %vm163_vm0, %v3214_v16  ;;  %v3243_v29 = vld [vmem:[#allocation9 + $0x128] sm:$0xff]  ;;  %v3246_v30 = vld [vmem:[#allocation9 + $0x120] sm:$0xff]  ;;  %v3256_v31 = vld [vmem:[#allocation9 + $0x110] sm:$0xff] }
  0x29   :  { %364 = vmatpush.msrb.mxu0 %v147_v17  ;;  %405 = vmatpush.msrb.mxu1 %v148_v18  ;;  %v3258_v32 = vld [vmem:[#allocation9 + $0x108] sm:$0xff]  ;;  %v3262_v33 = vld [vmem:[#allocation9 + $0xf8] sm:$0xff]  ;;  %v3264_v34 = vld [vmem:[#allocation9 + $0xf0] sm:$0xff] }
  0x2a   :  { %622 = vmatpush.msrb.mxu3 %v3220_v19  ;;  %602 = vmatpush.msrb.mxu2 %v3222_v20  ;;  %v3268_v35 = vld [vmem:[#allocation4 + $0x10] sm:$0xff]  ;;  %v3272_v36 = vld [vmem:[#allocation9 + $0xe0] sm:$0xff]  ;;  %v3274_v37 = vld [vmem:[#allocation9 + $0xd8] sm:$0xff] }
  0x2b   :  { %365 = vmatpush.msrb.mxu0 %v141_v21  ;;  %406 = vmatpush.msrb.mxu1 %v142_v25  ;;  %v3284_v38 = vld [vmem:[#allocation9 + $0xc8] sm:$0xff]  ;;  %v3286_v39 = vld [vmem:[#allocation9 + $0xc0] sm:$0xff]  ;;  %v136_v41 = vld [vmem:[#allocation7 + $0x58] sm:$0xff] }
  0x2c   :  { %623 = vmatpush.msrb.mxu3 %v3228_v22  ;;  %603 = vmatpush.msrb.mxu2 %v3230_v23  ;;  %v129_v40 = vld [vmem:[#allocation7 + $0x20] sm:$0xff]  ;;  %v3290_v42 = vld [vmem:[#allocation9 + $0xb0] sm:$0xff]  ;;  %v3292_v43 = vld [vmem:[#allocation9 + $0xa8] sm:$0xff] }
  0x2d   :  { %366 = vmatpush.msrb.mxu0 %v135_v24  ;;  %407 = vmatpush.msrb.mxu1 %v136_v41  ;;  %v3296_v44 = vld [vmem:[#allocation4 + $0x18] sm:$0xff]  ;;  %v3302_v46 = vld [vmem:[#allocation9 + $0x90] sm:$0xff]  ;;  %v3312_v47 = vld [vmem:[#allocation9 + $0x80] sm:$0xff] }
  0x2e   :  { %624 = vmatpush.msrb.mxu3 %v3234_v26  ;;  %604 = vmatpush.msrb.mxu2 %v3236_v27  ;;  %v3300_v45 = vld [vmem:[#allocation9 + $0x98] sm:$0xff]  ;;  %v3318_v49 = vld [vmem:[#allocation9 + $0x68] sm:$0xff]  ;;  %v3320_v50 = vld [vmem:[#allocation9 + $0x60] sm:$0xff] }
  0x2f   :  { %2484 = vmatmul.msk.f32.gmra.mxu0 %vm163_vm0, %v3238_v28  ;;  %2492 = vmatmul.msk.f32.gmra.mxu1 %vm163_vm0, %v3238_v28  ;;  %v3314_v48 = vld [vmem:[#allocation9 + $0x78] sm:$0xff]  ;;  %v130_v51 = vld [vmem:[#allocation7 + $0x28] sm:$0xff]  ;;  %v3324_v52 = vld [vmem:[#allocation4 + $0x20] sm:$0xff] }
  0x30   :  { %2500 = vmatmul.msk.f32.gmra.mxu2 %vm163_vm0, %v3238_v28  ;;  %2508 = vmatmul.msk.f32.gmra.mxu3 %vm163_vm0, %v3238_v28  ;;  %v3328_v53 = vld [vmem:[#allocation9 + $0x50] sm:$0xff]  ;;  %v3330_v54 = vld [vmem:[#allocation9 + $0x48] sm:$0xff]  ;;  %v3340_v55 = vld [vmem:[#allocation9 + $0x38] sm:$0xff] }
  0x31   :  { %625 = vmatpush.msrb.mxu3 %v3243_v29  ;;  %605 = vmatpush.msrb.mxu2 %v3246_v30  ;;  %v3342_v56 = vld [vmem:[#allocation9 + $0x30] sm:$0xff]  ;;  %v3348_v58 = vld [vmem:[#allocation10 + $0x158] sm:$0xff]  ;;  %v3350_v59 = vld [vmem:[#allocation9 + $0x20] sm:$0xff] }
  0x32   :  { %367 = vmatpush.msrb.mxu0 %v129_v40  ;;  %408 = vmatpush.msrb.mxu1 %v130_v51  ;;  %v3344_v57 = vld [vmem:[#allocation10 + $0x170] sm:$0xff]  ;;  %5375 = vst [vmem:[#allocation25_spill] sm:$0xff] %v3348_v58  ;;  %v3352_v60 = vld [vmem:[#allocation9 + $0x18] sm:$0xff]  ;;  %v3357_v61 = vld [vmem:[#allocation4 + $0x28] sm:$0xff] }
  0x33   :  { %626 = vmatpush.msrb.mxu3 %v3256_v31  ;;  %606 = vmatpush.msrb.mxu2 %v3258_v32  ;;  %5374 = vst [vmem:[#allocation24_spill] sm:$0xff] %v3344_v57  ;;  %v3362_v62 = vld [vmem:[#allocation9 + $0x8] sm:$0xff]  ;;  %v3364_v63 = vld [vmem:[#allocation9] sm:$0xff]  ;;  %v3372_v1 = vld [vmem:[#allocation9 + $0x178] sm:$0xff] }
  0x34   :  { %5376 = vst [vmem:[#allocation26_spill] sm:$0xff] %v3350_v59  ;;  %682 = vmatpush.msra.mxu0 %v3344_v57  ;;  %v3370_v0 = vld [vmem:[#allocation10 + $0x168] sm:$0xff]  ;;  %v3378_v2 = vld [vmem:[#allocation10 + $0x140] sm:$0xff]  ;;  %v3381_v3 = vld [vmem:[#allocation10 + $0x150] sm:$0xff] }
  0x35   :  { %627 = vmatpush.msrb.mxu3 %v3262_v33  ;;  %607 = vmatpush.msrb.mxu2 %v3264_v34  ;;  %5377 = vst [vmem:[#allocation27_spill] sm:$0xff] %v3362_v62  ;;  %v3384_v4 = vld [vmem:[#allocation9 + $0x160] sm:$0xff]  ;;  %v3388_v5 = vld [vmem:[#allocation10 + $0x128] sm:$0xff]  ;;  %v3390_v6 = vld [vmem:[#allocation10 + $0x138] sm:$0xff] }
  0x36   :  { %683 = vmatpush.msra.mxu0 %v3348_v58  ;;  %5378 = vst [vmem:[#allocation28_spill] sm:$0xff] %v3364_v63  ;;  %v3392_v7 = vld [vmem:[#allocation9 + $0x148] sm:$0xff]  ;;  %v3395_v8 = vld [vmem:[#allocation4 + $0x30] sm:$0xff]  ;;  %v3401_v9 = vld [vmem:[#allocation10 + $0x120] sm:$0xff] }
  0x37   :  { %2485 = vmatmul.msk.f32.gmra.mxu0 %vm163_vm0, %v3268_v35  ;;  %2493 = vmatmul.msk.f32.gmra.mxu1 %vm163_vm0, %v3268_v35  ;;  %5379 = vst [vmem:[#allocation29_spill] sm:$0xff] %v3378_v2  ;;  %v3404_v10 = vld [vmem:[#allocation9 + $0x130] sm:$0xff]  ;;  %v3416_v12 = vld [vmem:[#allocation10 + $0x108] sm:$0xff]  ;;  %v3418_v13 = vld [vmem:[#allocation9 + $0x118] sm:$0xff] }
  0x38   :  { %2501 = vmatmul.msk.f32.gmra.mxu2 %vm163_vm0, %v3268_v35  ;;  %2509 = vmatmul.msk.f32.gmra.mxu3 %vm163_vm0, %v3268_v35  ;;  %5380 = vst [vmem:[#allocation30_spill] sm:$0xff] %v3388_v5  ;;  %v3410_v11 = vld [vmem:[#allocation10 + $0x110] sm:$0xff]  ;;  %v3422_v14 = vld [vmem:[#allocation10 + $0xf8] sm:$0xff]  ;;  %v3428_v18 = vld [vmem:[#allocation9 + $0x100] sm:$0xff] }
  0x39   :  { %628 = vmatpush.msrb.mxu3 %v3272_v36  ;;  %608 = vmatpush.msrb.mxu2 %v3274_v37  ;;  %5381 = vst [vmem:[#allocation31_spill] sm:$0xff] %v3410_v11  ;;  %v3424_v15 = vld [vmem:[#allocation10 + $0x178] sm:$0xff]  ;;  %v3426_v17 = vld [vmem:[#allocation10 + $0xf0] sm:$0xff]  ;;  %v3441_v25 = vld [vmem:[#allocation9 + $0xe8] sm:$0xff] }
  0x3a   :  { %684 = vmatpush.msra.mxu0 %v3378_v2  ;;  %5382 = vst [vmem:[#allocation32_spill] sm:$0xff] %v3416_v12  ;;  %702 = vmatpush.msra.mxu1 %v3424_v15  ;;  %v3434_v21 = vld [vmem:[#allocation4 + $0x38] sm:$0xff]  ;;  %v3447_v40 = vld [vmem:[#allocation10 + $0xe0] sm:$0xff]  ;;  %v3465_v2 = vld [vmem:[#allocation10 + $0xa8] sm:$0xff] }
  0x3b   :  { %629 = vmatpush.msrb.mxu3 %v3284_v38  ;;  %609 = vmatpush.msrb.mxu2 %v3286_v39  ;;  %5383 = vst [vmem:[#allocation33_spill] sm:$0xff] %v3418_v13  ;;  %v3439_v24 = vld [vmem:[#allocation10 + $0xd8] sm:$0xff]  ;;  %v3449_v41 = vld [vmem:[#allocation10 + $0x160] sm:$0xff] }
  0x3c   :  { %685 = vmatpush.msra.mxu0 %v3388_v5  ;;  %5384 = vst [vmem:[#allocation34_spill] sm:$0xff] %v3422_v14  ;;  %v3455_v51 = vld [vmem:[#allocation10 + $0xc0] sm:$0xff]  ;;  %v3463_v5 = vld [vmem:[#allocation10 + $0x148] sm:$0xff]  ;;  %v3467_v58 = vld [vmem:[#allocation9 + $0xb8] sm:$0xff]  ;;  %703 = vmatpush.msra.mxu1 %v3449_v41 }
  0x3d   :  { %630 = vmatpush.msrb.mxu3 %v3290_v42  ;;  %610 = vmatpush.msrb.mxu2 %v3292_v43  ;;  %5385 = vst [vmem:[#allocation35_spill] sm:$0xff] %v3424_v15  ;;  %v3477_v15 = vld [vmem:[#allocation10 + $0x90] sm:$0xff]  ;;  %v3479_v57 = vld [vmem:[#allocation9 + $0xa0] sm:$0xff] }
  0x3e   :  { %5386 = vst [vmem:[#allocation36_spill] sm:$0xff] %v3426_v17  ;;  %686 = vmatpush.msra.mxu0 %v3410_v11  ;;  %v3461_v11 = vld [vmem:[#allocation10 + $0xc8] sm:$0xff]  ;;  %704 = vmatpush.msra.mxu1 %v3463_v5 }
  0x3f   :  { %2486 = vmatmul.msk.f32.gmra.mxu0 %vm163_vm0, %v3296_v44  ;;  %2494 = vmatmul.msk.f32.gmra.mxu1 %vm163_vm0, %v3296_v44  ;;  %5387 = vst [vmem:[#allocation37_spill] sm:$0xff] %v3428_v18 }
  0x40   :  { %2502 = vmatmul.msk.f32.gmra.mxu2 %vm163_vm0, %v3296_v44  ;;  %2510 = vmatmul.msk.f32.gmra.mxu3 %vm163_vm0, %v3296_v44  ;;  %5388 = vst [vmem:[#allocation38_spill] sm:$0xff] %v3434_v21 }
  0x41   :  { %631 = vmatpush.msrb.mxu3 %v3300_v45  ;;  %611 = vmatpush.msrb.mxu2 %v3302_v46  ;;  %5389 = vst [vmem:[#allocation39_spill] sm:$0xff] %v3439_v24 }
  0x42   :  { %687 = vmatpush.msra.mxu0 %v3422_v14  ;;  %5390 = vst [vmem:[#allocation40_spill] sm:$0xff] %v3441_v25  ;;  %v3457_v14 = vld [vmem:[#allocation9 + $0xd0] sm:$0xff] }
  0x43   :  { %632 = vmatpush.msrb.mxu3 %v3312_v47  ;;  %612 = vmatpush.msrb.mxu2 %v3314_v48  ;;  %5391 = vst [vmem:[#allocation41_spill] sm:$0xff] %v3447_v40 }
  0x44   :  { %5392 = vst [vmem:[#allocation42_spill] sm:$0xff] %v3449_v41  ;;  %688 = vmatpush.msra.mxu0 %v3447_v40  ;;  %v3485_v40 = vld [vmem:[#allocation10 + $0xb0] sm:$0xff] }
  0x45   :  { %633 = vmatpush.msrb.mxu3 %v3318_v49  ;;  %613 = vmatpush.msrb.mxu2 %v3320_v50  ;;  %5393 = vst [vmem:[#allocation43_spill] sm:$0xff] %v3455_v51  ;;  %v3487_v41 = vld [vmem:[#allocation10 + $0x130] sm:$0xff] }
  0x46   :  { %5394 = vst [vmem:[#allocation44_spill] sm:$0xff] %v3457_v14  ;;  %689 = vmatpush.msra.mxu0 %v3461_v11  ;;  %705 = vmatpush.msra.mxu1 %v3487_v41 }
  0x47   :  { %2487 = vmatmul.msk.f32.gmra.mxu0 %vm163_vm0, %v3324_v52  ;;  %2495 = vmatmul.msk.f32.gmra.mxu1 %vm163_vm0, %v3324_v52  ;;  %5395 = vst [vmem:[#allocation45_spill] sm:$0xff] %v3461_v11  ;;  %v5150_v11 = vmov 0.0  }
  0x48   :  { %2503 = vmatmul.msk.f32.gmra.mxu2 %vm163_vm0, %v3324_v52  ;;  %2511 = vmatmul.msk.f32.gmra.mxu3 %vm163_vm0, %v3324_v52  ;;  %5396 = vst [vmem:[#allocation46_spill] sm:$0xff] %v3463_v5  ;;  %v3491_v5 = vld [vmem:[#allocation10 + $0x78] sm:$0xff] }
  0x49   :  { %634 = vmatpush.msrb.mxu3 %v3328_v53  ;;  %614 = vmatpush.msrb.mxu2 %v3330_v54  ;;  %5397 = vst [vmem:[#allocation47_spill] sm:$0xff] %v3465_v2 }
  0x4a   :  { %5398 = vst [vmem:[#allocation48_spill] sm:$0xff] %v3467_v58  ;;  %690 = vmatpush.msra.mxu0 %v3485_v40 }
  0x4b   :  { %635 = vmatpush.msrb.mxu3 %v3340_v55  ;;  %615 = vmatpush.msrb.mxu2 %v3342_v56  ;;  %5399 = vst [vmem:[#allocation49_spill] sm:$0xff] %v3477_v15 }
  0x4c   :  { %5400 = vst [vmem:[#allocation50_spill] sm:$0xff] %v3479_v57 }
  0x4d   :  { %636 = vmatpush.msrb.mxu3 %v3350_v59  ;;  %616 = vmatpush.msrb.mxu2 %v3352_v60  ;;  %5401 = vst [vmem:[#allocation51_spill] sm:$0xff] %v3485_v40  ;;  %v3517_v59 = vld [vmem:[#allocation10 + $0x30] sm:$0xff]  ;;  %v3523_v40 = vld [vmem:[#allocation9 + $0x40] sm:$0xff] }
  0x4e   :  { %5402 = vst [vmem:[#allocation52_spill] sm:$0xff] %v3487_v41  ;;  %v3531_v41 = vld [vmem:[#allocation10 + $0x68] sm:$0xff] }
  0x4f   :  { %2488 = vmatmul.msk.f32.gmra.mxu0 %vm163_vm0, %v3357_v61  ;;  %2496 = vmatmul.msk.f32.gmra.mxu1 %vm163_vm0, %v3357_v61  ;;  %5403 = vst [vmem:[#allocation53_spill] sm:$0xff] %v3491_v5 }
  0x50   :  { %2504 = vmatmul.msk.f32.gmra.mxu2 %vm163_vm0, %v3357_v61  ;;  %2512 = vmatmul.msk.f32.gmra.mxu3 %vm163_vm0, %v3357_v61  ;;  %5411 = vst [vmem:[#allocation61_spill] sm:$0xff] %v3517_v59 }
  0x51   :  { %637 = vmatpush.msrb.mxu3 %v3362_v62  ;;  %617 = vmatpush.msrb.mxu2 %v3364_v63  ;;  %v3497_v62 = vld [vmem:[#allocation10 + $0x98] sm:$0xff]  ;;  %v3503_v63 = vld [vmem:[#allocation9 + $0x70] sm:$0xff]  ;;  %5412 = vst [vmem:[#allocation62_spill] sm:$0xff] %v3523_v40 }
  0x52   :  { %5405 = vst [vmem:[#allocation55_spill] sm:$0xff] %v3497_v62  ;;  %691 = vmatpush.msra.mxu0 %v3497_v62  ;;  %v3525_v62 = vld [vmem:[#allocation10 + $0x80] sm:$0xff] }
  0x53   :  { %662 = vmatpush.msra.mxu3 %v3370_v0  ;;  %642 = vmatpush.msra.mxu2 %v3372_v1  ;;  %5408 = vst [vmem:[#allocation58_spill] sm:$0xff] %v3503_v63 }
  0x54   :  { %5413 = vst [vmem:[#allocation63_spill] sm:$0xff] %v3525_v62  ;;  %692 = vmatpush.msra.mxu0 %v3525_v62  ;;  %v3560_v62 = vld [vmem:[#allocation10 + $0x50] sm:$0xff] }
  0x55   :  { %663 = vmatpush.msra.mxu3 %v3381_v3  ;;  %643 = vmatpush.msra.mxu2 %v3384_v4  ;;  %5415 = vst [vmem:[#allocation65_spill] sm:$0xff] %v3531_v41 }
  0x56   :  { %693 = vmatpush.msra.mxu0 %v3531_v41  ;;  %5422 = vst [vmem:[#allocation72_spill] sm:$0xff] %v3560_v62  ;;  %v3562_v41 = vld [vmem:[#allocation10 + $0xb8] sm:$0xff] }
  0x57   :  { %664 = vmatpush.msra.mxu3 %v3390_v6  ;;  %644 = vmatpush.msra.mxu2 %v3392_v7  ;;  %5423 = vst [vmem:[#allocation73_spill] sm:$0xff] %v3562_v41 }
  0x58   :  { %2489 = vmatmul.msk.f32.gmra.mxu0 %vm163_vm0, %v3395_v8  ;;  %2497 = vmatmul.msk.f32.gmra.mxu1 %vm163_vm0, %v3395_v8 }
  0x59   :  { %2505 = vmatmul.msk.f32.gmra.mxu2 %vm163_vm0, %v3395_v8  ;;  %2513 = vmatmul.msk.f32.gmra.mxu3 %vm163_vm0, %v3395_v8 }
  0x5a   :  { %665 = vmatpush.msra.mxu3 %v3401_v9  ;;  %645 = vmatpush.msra.mxu2 %v3404_v10 }
  0x5b   :  { %694 = vmatpush.msra.mxu0 %v3560_v62  ;;  %v3589_v62 = vld [vmem:[#allocation10 + $0x20] sm:$0xff] }
  0x5c   :  { %666 = vmatpush.msra.mxu3 %v3416_v12  ;;  %646 = vmatpush.msra.mxu2 %v3418_v13  ;;  %5428 = vst [vmem:[#allocation77_spill] sm:$0xff] %v3589_v62 }
  0x5e   :  { %667 = vmatpush.msra.mxu3 %v3426_v17  ;;  %647 = vmatpush.msra.mxu2 %v3428_v18 }
  0x60   :  { %2490 = vmatmul.msk.f32.gmra.mxu0 %vm163_vm0, %v3434_v21  ;;  %2498 = vmatmul.msk.f32.gmra.mxu1 %vm163_vm0, %v3434_v21 }
  0x61   :  { %2506 = vmatmul.msk.f32.gmra.mxu2 %vm163_vm0, %v3434_v21  ;;  %2514 = vmatmul.msk.f32.gmra.mxu3 %vm163_vm0, %v3434_v21  ;;  %v3493_v21 = vld [vmem:[#allocation9 + $0x88] sm:$0xff] }
  0x62   :  { %668 = vmatpush.msra.mxu3 %v3439_v24  ;;  %648 = vmatpush.msra.mxu2 %v3441_v25  ;;  %5404 = vst [vmem:[#allocation54_spill] sm:$0xff] %v3493_v21 }
  0x64   :  { %669 = vmatpush.msra.mxu3 %v3455_v51  ;;  %649 = vmatpush.msra.mxu2 %v3457_v14  ;;  %v3537_v51 = vld [vmem:[#allocation9 + $0x28] sm:$0xff] }
  0x65   :  { %5418 = vst [vmem:[#allocation68_spill] sm:$0xff] %v3537_v51 }
  0x66   :  { %670 = vmatpush.msra.mxu3 %v3465_v2  ;;  %650 = vmatpush.msra.mxu2 %v3467_v58  ;;  %v3501_v2 = vld [vmem:[#allocation10 + $0x60] sm:$0xff] }
  0x67   :  { %5407 = vst [vmem:[#allocation57_spill] sm:$0xff] %v3501_v2 }
  0x68   :  { %2515 = vmatmul.msk.f32.vlgmr.msrb.gmra.mxu0 %vm163_vm0, %v3214_v16  ;;  %2523 = vmatmul.msk.f32.vlgmr.msrb.gmra.mxu1 %vm163_vm0, %v3214_v16  ;;  %v3499_v16 = vld [vmem:[#allocation10 + $0x118] sm:$0xff] }
  0x69   :  { %618 = vmatmul.f32.vlgmr.msrb.gmra.mxu2 %v5150_v11  ;;  %638 = vmatmul.f32.vlgmr.msrb.gmra.mxu3 %v5150_v11  ;;  %5406 = vst [vmem:[#allocation56_spill] sm:$0xff] %v3499_v16  ;;  %v3512_v11 = vld [vmem:[#allocation10 + $0x48] sm:$0xff] }
  0x6a   :  { %671 = vmatpush.msra.mxu3 %v3477_v15  ;;  %651 = vmatpush.msra.mxu2 %v3479_v57  ;;  %5409 = vst [vmem:[#allocation59_spill] sm:$0xff] %v3512_v11  ;;  %v3515_v15 = vld [vmem:[#allocation9 + $0x58] sm:$0xff] }
  0x6b   :  { %706 = vmatpush.msra.mxu1 %v3499_v16  ;;  %5410 = vst [vmem:[#allocation60_spill] sm:$0xff] %v3515_v15  ;;  %v3527_v16 = vld [vmem:[#allocation10 + $0x100] sm:$0xff] }
  0x6c   :  { %672 = vmatpush.msra.mxu3 %v3491_v5  ;;  %652 = vmatpush.msra.mxu2 %v3493_v21  ;;  %5414 = vst [vmem:[#allocation64_spill] sm:$0xff] %v3527_v16  ;;  %v3535_v5 = vld [vmem:[#allocation10 + $0x18] sm:$0xff] }
  0x6d   :  { %5417 = vst [vmem:[#allocation67_spill] sm:$0xff] %v3535_v5  ;;  %707 = vmatpush.msra.mxu1 %v3527_v16 }
  0x6e   :  { %673 = vmatpush.msra.mxu3 %v3501_v2  ;;  %653 = vmatpush.msra.mxu2 %v3503_v63  ;;  %v3533_v2 = vld [vmem:[#allocation10 + $0xe8] sm:$0xff] }
  0x6f   :  { %5416 = vst [vmem:[#allocation66_spill] sm:$0xff] %v3533_v2  ;;  %708 = vmatpush.msra.mxu1 %v3533_v2  ;;  %v5424_v2 = vmov 0.0  }
  0x70   :  { %2516 = vmatmul.msk.f32.gmra.mxu0 %vm163_vm0, %v3238_v28  ;;  %2524 = vmatmul.msk.f32.gmra.mxu1 %vm163_vm0, %v3238_v28  ;;  %v3543_v28 = vld [vmem:[#allocation10 + $0xd0] sm:$0xff] }
  0x71   :  { %674 = vmatpush.msra.mxu3 %v3512_v11  ;;  %654 = vmatpush.msra.mxu2 %v3515_v15  ;;  %5419 = vst [vmem:[#allocation69_spill] sm:$0xff] %v3543_v28  ;;  %v3545_v11 = vld [vmem:[#allocation10] sm:$0xff]  ;;  %v3547_v15 = vld [vmem:[#allocation9 + $0x10] sm:$0xff] }
  0x72   :  { %5420 = vst [vmem:[#allocation70_spill] sm:$0xff] %v3545_v11  ;;  %709 = vmatpush.msra.mxu1 %v3543_v28  ;;  %v3568_v28 = vld [vmem:[#allocation10 + $0x38] sm:$0xff] }
  0x73   :  { %675 = vmatpush.msra.mxu3 %v3517_v59  ;;  %655 = vmatpush.msra.mxu2 %v3523_v40  ;;  %5421 = vst [vmem:[#allocation71_spill] sm:$0xff] %v3547_v15 }
  0x74   :  { %5426 = vst [vmem:[#allocation75_spill] sm:$0xff] %v3568_v28  ;;  %710 = vmatpush.msra.mxu1 %v3562_v41  ;;  %695 = vmatpush.msra.mxu0 %v3568_v28  ;;  %v3591_v28 = vld [vmem:[#allocation10 + $0x58] sm:$0xff] }
  0x75   :  { %676 = vmatpush.msra.mxu3 %v3535_v5  ;;  %656 = vmatpush.msra.mxu2 %v3537_v51  ;;  %v3566_v5 = vld [vmem:[#allocation10 + $0xa0] sm:$0xff]  ;;  %5429 = vst [vmem:[#allocation78_spill] sm:$0xff] %v3591_v28 }
  0x76   :  { %5425 = vst [vmem:[#allocation74_spill] sm:$0xff] %v3566_v5  ;;  %711 = vmatpush.msra.mxu1 %v3566_v5  ;;  %696 = vmatpush.msra.mxu0 %v3589_v62  ;;  %v3597_v5 = vld [vmem:[#allocation10 + $0x40] sm:$0xff]  ;;  %v3609_v62 = vld [vmem:[#allocation10 + $0x10] sm:$0xff] }
  0x77   :  { %677 = vmatpush.msra.mxu3 %v3545_v11  ;;  %657 = vmatpush.msra.mxu2 %v3547_v15  ;;  %v3572_v11 = vld [vmem:[#allocation10 + $0x88] sm:$0xff] }
  0x78   :  { %2517 = vmatmul.msk.f32.gmra.mxu0 %vm163_vm0, %v3268_v35  ;;  %2525 = vmatmul.msk.f32.gmra.mxu1 %vm163_vm0, %v3268_v35  ;;  %5427 = vst [vmem:[#allocation76_spill] sm:$0xff] %v3572_v11  ;;  %v3581_v35 = vld [vmem:[#allocation10 + $0x70] sm:$0xff] }
  0x79   :  { %678 = vmatmul.f32.vlgmr.msra.gmra.mxu3 %v5424_v2  ;;  %658 = vmatmul.f32.vlgmr.msra.gmra.mxu2 %v5424_v2 }
  0x7a   :  { %833 = vmatpush.msrb.mxu2 %v3222_v20  ;;  %853 = vmatpush.msrb.mxu3 %v3220_v19 }
  0x7b   :  { %712 = vmatpush.msra.mxu1 %v3572_v11  ;;  %v3595_v11 = vld [vmem:[#allocation10 + $0x8] sm:$0xff] }
  0x7c   :  { %834 = vmatpush.msrb.mxu2 %v3230_v23  ;;  %854 = vmatpush.msrb.mxu3 %v3228_v22 }
  0x7d   :  { %713 = vmatpush.msra.mxu1 %v3581_v35  ;;  %697 = vmatpush.msra.mxu0 %v3595_v11 }
  0x7e   :  { %835 = vmatpush.msrb.mxu2 %v3236_v27  ;;  %855 = vmatpush.msrb.mxu3 %v3234_v26 }
  0x7f   :  { %714 = vmatpush.msra.mxu1 %v3591_v28  ;;  %873 = vmatpush.msrb.mxu0 %v3372_v1 }
  0x80   :  { %2518 = vmatmul.msk.f32.gmra.mxu0 %vm163_vm0, %v3296_v44  ;;  %2526 = vmatmul.msk.f32.gmra.mxu1 %vm163_vm0, %v3296_v44  ;;  %v3606_v44 = vld [vmem:[#allocation10 + $0x28] sm:$0xff] }
  0x81   :  { %836 = vmatpush.msrb.mxu2 %v3246_v30  ;;  %856 = vmatpush.msrb.mxu3 %v3243_v29 }
  0x82   :  { %715 = vmatpush.msra.mxu1 %v3597_v5  ;;  %874 = vmatpush.msrb.mxu0 %v3384_v4 }
  0x83   :  { %837 = vmatpush.msrb.mxu2 %v3258_v32  ;;  %857 = vmatpush.msrb.mxu3 %v3256_v31 }
  0x84   :  { %716 = vmatpush.msra.mxu1 %v3606_v44  ;;  %875 = vmatpush.msrb.mxu0 %v3392_v7 }
  0x85   :  { %838 = vmatpush.msrb.mxu2 %v3264_v34  ;;  %858 = vmatpush.msrb.mxu3 %v3262_v33 }
  0x86   :  { %717 = vmatpush.msra.mxu1 %v3609_v62  ;;  %876 = vmatpush.msrb.mxu0 %v3404_v10 }
  0x87   :  { %839 = vmatpush.msrb.mxu2 %v3274_v37  ;;  %859 = vmatpush.msrb.mxu3 %v3272_v36 }
  0x88   :  { %2519 = vmatmul.msk.f32.gmra.mxu0 %vm163_vm0, %v3324_v52  ;;  %2527 = vmatmul.msk.f32.gmra.mxu1 %vm163_vm0, %v3324_v52  ;;  %v5430_v52 = vld [vmem:[#allocation43_spill] sm:$0xff] }
  0x89   :  { %893 = vmatpush.msrb.mxu1 %v3370_v0  ;;  %840 = vmatpush.msrb.mxu2 %v3286_v39 }
  0x8a   :  { %860 = vmatpush.msrb.mxu3 %v3284_v38  ;;  %877 = vmatpush.msrb.mxu0 %v3418_v13 }
  0x8b   :  { %894 = vmatpush.msrb.mxu1 %v3381_v3  ;;  %841 = vmatpush.msrb.mxu2 %v3292_v43 }
  0x8c   :  { %861 = vmatpush.msrb.mxu3 %v3290_v42  ;;  %878 = vmatpush.msrb.mxu0 %v3428_v18  ;;  %v5445_v18 = vld [vmem:[#allocation57_spill] sm:$0xff] }
  0x8d   :  { %895 = vmatpush.msrb.mxu1 %v3390_v6  ;;  %842 = vmatpush.msrb.mxu2 %v3302_v46 }
  0x8e   :  { %879 = vmatpush.msrb.mxu0 %v3441_v25  ;;  %862 = vmatpush.msrb.mxu3 %v3300_v45 }
  0x8f   :  { %896 = vmatpush.msrb.mxu1 %v3401_v9  ;;  %843 = vmatpush.msrb.mxu2 %v3314_v48 }
  0x90   :  { %2520 = vmatmul.msk.f32.gmra.mxu0 %vm163_vm0, %v3357_v61  ;;  %2528 = vmatmul.msk.f32.gmra.mxu1 %vm163_vm0, %v3357_v61  ;;  %v5431_v61 = vld [vmem:[#allocation60_spill] sm:$0xff] }
  0x91   :  { %880 = vmatpush.msrb.mxu0 %v3457_v14  ;;  %863 = vmatpush.msrb.mxu3 %v3312_v47  ;;  %v5436_v14 = vld [vmem:[#allocation38_spill] sm:$0xff] }
  0x92   :  { %897 = vmatpush.msrb.mxu1 %v3416_v12  ;;  %844 = vmatpush.msrb.mxu2 %v3320_v50  ;;  %v5449_v12 = vld [vmem:[#allocation59_spill] sm:$0xff] }
  0x93   :  { %881 = vmatpush.msrb.mxu0 %v3467_v58  ;;  %864 = vmatpush.msrb.mxu3 %v3318_v49  ;;  %v5435_v58 = vld [vmem:[#allocation27_spill] sm:$0xff] }
  0x94   :  { %898 = vmatpush.msrb.mxu1 %v3426_v17  ;;  %845 = vmatpush.msrb.mxu2 %v3330_v54 }
  0x95   :  { %882 = vmatpush.msrb.mxu0 %v3479_v57  ;;  %865 = vmatpush.msrb.mxu3 %v3328_v53  ;;  %v5432_v57 = vld [vmem:[#allocation26_spill] sm:$0xff] }
  0x96   :  { %846 = vmatpush.msrb.mxu2 %v3342_v56  ;;  %899 = vmatpush.msrb.mxu1 %v3439_v24  ;;  %v5442_v24 = vld [vmem:[#allocation53_spill] sm:$0xff] }
  0x97   :  { %883 = vmatpush.msrb.mxu0 %v3493_v21  ;;  %866 = vmatpush.msrb.mxu3 %v3340_v55  ;;  %v5434_v21 = vld [vmem:[#allocation47_spill] sm:$0xff] }
  0x98   :  { %2521 = vmatmul.msk.f32.gmra.mxu0 %vm163_vm0, %v3395_v8  ;;  %2529 = vmatmul.msk.f32.gmra.mxu1 %vm163_vm0, %v3395_v8  ;;  %v5433_v8 = vld [vmem:[#allocation28_spill] sm:$0xff] }
  0x99   :  { %884 = vmatpush.msrb.mxu0 %v3503_v63  ;;  %847 = vmatpush.msrb.mxu2 %v3352_v60  ;;  %v5437_v63 = vld [vmem:[#allocation24_spill] sm:$0xff] }
  0x9a   :  { %900 = vmatpush.msrb.mxu1 %v5430_v52  ;;  %867 = vmatpush.msrb.mxu3 %v5432_v57  ;;  %v5439_v52 = vld [vmem:[#allocation49_spill] sm:$0xff] }
  0x9b   :  { %885 = vmatpush.msrb.mxu0 %v5431_v61  ;;  %848 = vmatpush.msrb.mxu2 %v5433_v8  ;;  %v5438_v61 = vld [vmem:[#allocation35_spill] sm:$0xff] }
  0x9c   :  { %901 = vmatpush.msrb.mxu1 %v5434_v21  ;;  %868 = vmatpush.msrb.mxu3 %v5435_v58  ;;  %v5440_v21 = vld [vmem:[#allocation25_spill] sm:$0xff] }
  0x9d   :  { %886 = vmatpush.msrb.mxu0 %v3523_v40  ;;  %913 = vmatpush.msra.mxu2 %v5437_v63  ;;  %v5441_v40 = vld [vmem:[#allocation42_spill] sm:$0xff] }
  0x9e   :  { %933 = vmatpush.msra.mxu3 %v5438_v61  ;;  %902 = vmatpush.msrb.mxu1 %v5439_v52  ;;  %v5446_v61 = vld [vmem:[#allocation30_spill] sm:$0xff]  ;;  %v3689_v52 = vld [vmem:[#allocation12] sm:$0x3f] }
  0x9f   :  { %887 = vmatpush.msrb.mxu0 %v3537_v51  ;;  %914 = vmatpush.msra.mxu2 %v5440_v21  ;;  %v5444_v51 = vld [vmem:[#allocation46_spill] sm:$0xff] }
  0xa0   :  { %2522 = vmatmul.msk.f32.gmra.mxu0 %vm163_vm0, %v5436_v14  ;;  %2530 = vmatmul.msk.f32.gmra.mxu1 %vm163_vm0, %v5436_v14  ;;  %v5443_v14 = vld [vmem:[#allocation29_spill] sm:$0xff] }
  0xa1   :  { %888 = vmatpush.msrb.mxu0 %v3547_v15  ;;  %934 = vmatpush.msra.mxu3 %v5441_v40  ;;  %v3694_v40 = vperm.slane %v3689_v52, 3  ;;  %v5447_v15 = vld [vmem:[#allocation52_spill] sm:$0xff] }
  0xa2   :  { %903 = vmatpush.msrb.mxu1 %v5442_v24  ;;  %915 = vmatpush.msra.mxu2 %v5443_v14  ;;  %v5448_v24 = vld [vmem:[#allocation31_spill] sm:$0xff] }
  0xa3   :  { %935 = vmatpush.msra.mxu3 %v5444_v51  ;;  %v5450_v51 = vld [vmem:[#allocation56_spill] sm:$0xff] }
  0xa4   :  { %v3681_v25 = vpop.f32.mrf.mxu0  ;;  %v3683_v17 = vpop.f32.mrf.mxu1  ;;  %904 = vmatpush.msrb.mxu1 %v5445_v18  ;;  %916 = vmatpush.msra.mxu2 %v5446_v61  ;;  %v5451_v18 = vld [vmem:[#allocation34_spill] sm:$0xff] }
  0xa5   :  { %936 = vmatpush.msra.mxu3 %v5447_v15 }
  0xa6   :  { %917 = vmatpush.msra.mxu2 %v5448_v24  ;;  %905 = vmatpush.msrb.mxu1 %v5449_v12  ;;  %v5457_v12 = vld [vmem:[#allocation66_spill] sm:$0xff] }
  0xa7   :  { %937 = vmatpush.msra.mxu3 %v5450_v51  ;;  %v5456_v51 = vld [vmem:[#allocation67_spill] sm:$0xff] }
  0xa8   :  { %698 = vmatmul.f32.vlgmr.msra.gmra.mxu0 %v5424_v2  ;;  %718 = vmatmul.f32.vlgmr.msra.gmra.mxu1 %v5424_v2 }
  0xa9   :  { %1065 = vmatpush.msra.mxu0 %v3222_v20  ;;  %918 = vmatpush.msra.mxu2 %v5451_v18  ;;  %v5455_v20 = vld [vmem:[#allocation41_spill] sm:$0xff] }
  0xaa   :  { %906 = vmatpush.msrb.mxu1 %v3517_v59  ;;  %938 = vmatpush.msra.mxu3 %v3527_v16  ;;  %v5458_v59 = vld [vmem:[#allocation45_spill] sm:$0xff]  ;;  %v5467_v16 = vld [vmem:[#allocation74_spill] sm:$0xff] }
  0xab   :  { %v3702_v13 = vpop.f32.mrf.mxu2  ;;  %v328_v61 = vpop.f32.mrf.mxu3  ;;  %1066 = vmatpush.msra.mxu0 %v3230_v23  ;;  %919 = vmatpush.msra.mxu2 %v5455_v20  ;;  %v5459_v23 = vld [vmem:[#allocation70_spill] sm:$0xff] }
  0xac   :  { %v3707_v2 = vadd.f32 %v328_v61, %v3694_v40  ;;  %v3709_v15 = vpop.f32.mrf.mxu0  ;;  %v3711_v24 = vpop.f32.mrf.mxu1  ;;  %907 = vmatpush.msrb.mxu1 %v5456_v51  ;;  %939 = vmatpush.msra.mxu3 %v5457_v12  ;;  %v5460_v61 = vld [vmem:[#allocation69_spill] sm:$0xff] }
  0xad   :  { %5453 = vst [vmem:[#allocation28_spill] sm:$0xff] %v3709_v15  ;;  %1067 = vmatpush.msra.mxu0 %v3236_v27  ;;  %920 = vmatpush.msra.mxu2 %v5458_v59  ;;  %v5462_v27 = vld [vmem:[#allocation55_spill] sm:$0xff] }
  0xae   :  { %5452 = vst [vmem:[#allocation26_spill] sm:$0xff] %v3707_v2  ;;  %908 = vmatpush.msrb.mxu1 %v5459_v23  ;;  %940 = vmatpush.msra.mxu3 %v5460_v61  ;;  %v5461_v2 = vld [vmem:[#allocation51_spill] sm:$0xff] }
  0xaf   :  { %5454 = vst [vmem:[#allocation27_spill] sm:$0xff] %v3711_v24  ;;  %1068 = vmatpush.msra.mxu0 %v3246_v30  ;;  %921 = vmatpush.msra.mxu2 %v5461_v2  ;;  %v3726_v24 = vperm.slane %v3689_v52, 2 }
  0xb0   :  { %1085 = vmatpush.msra.mxu1 %v3220_v19  ;;  %941 = vmatpush.msra.mxu3 %v3562_v41  ;;  %v5468_v41 = vld [vmem:[#allocation63_spill] sm:$0xff] }
  0xb1   :  { %1069 = vmatpush.msra.mxu0 %v3258_v32  ;;  %922 = vmatpush.msra.mxu2 %v5462_v27 }
  0xb2   :  { %1086 = vmatpush.msra.mxu1 %v3228_v22  ;;  %942 = vmatpush.msra.mxu3 %v5467_v16  ;;  %v5469_v22 = vld [vmem:[#allocation76_spill] sm:$0xff] }
  0xb3   :  { %v290_v15 = vpop.f32.mrf.mxu2  ;;  %v331_v12 = vpop.f32.mrf.mxu3  ;;  %1070 = vmatpush.msra.mxu0 %v3264_v34  ;;  %923 = vmatpush.msra.mxu2 %v5468_v41  ;;  %v5470_v34 = vld [vmem:[#allocation65_spill] sm:$0xff] }
  0xb4   :  { %v3733_v30 = vadd.f32 %v290_v15, %v3726_v24  ;;  %v3736_v19 = vadd.f32 %v331_v12, %v3694_v40  ;;  %v3738_v32 = vpop.f32.mrf.mxu0  ;;  %v3740_v61 = vpop.f32.mrf.mxu1  ;;  %1087 = vmatpush.msra.mxu1 %v3234_v26  ;;  %943 = vmatpush.msra.mxu3 %v5469_v22  ;;  %v5471_v12 = vld [vmem:[#allocation72_spill] sm:$0xff]  ;;  %v5472_v26 = vld [vmem:[#allocation75_spill] sm:$0xff]  ;;  %v3760_v15 = vperm.slane %v3689_v52, 1 }
  0xb5   :  { %5465 = vst [vmem:[#allocation35_spill] sm:$0xff] %v3738_v32  ;;  %1071 = vmatpush.msra.mxu0 %v3274_v37  ;;  %924 = vmatpush.msra.mxu2 %v5470_v34  ;;  %v3757_v37 = vperm.slane %v3689_v52, 0  ;;  %v5477_v32 = vld [vmem:[#allocation77_spill] sm:$0xff] }
  0xb6   :  { %5463 = vst [vmem:[#allocation38_spill] sm:$0xff] %v3733_v30  ;;  %1088 = vmatpush.msra.mxu1 %v3243_v29  ;;  %944 = vmatpush.msra.mxu3 %v3581_v35 }
  0xb7   :  { %5464 = vst [vmem:[#allocation24_spill] sm:$0xff] %v3736_v19  ;;  %1072 = vmatpush.msra.mxu0 %v3286_v39  ;;  %925 = vmatpush.msra.mxu2 %v5471_v12 }
  0xb8   :  { %5466 = vst [vmem:[#allocation25_spill] sm:$0xff] %v3740_v61  ;;  %1089 = vmatpush.msra.mxu1 %v3256_v31  ;;  %945 = vmatpush.msra.mxu3 %v3591_v28 }
  0xb9   :  { %1073 = vmatpush.msra.mxu0 %v3292_v43  ;;  %926 = vmatpush.msra.mxu2 %v5472_v26  ;;  %5473 = vst [vmem:[#allocation42_spill] sm:$0xff] %v3757_v37 }
  0xba   :  { %5474 = vst [vmem:[#allocation29_spill] sm:$0xff] %v3760_v15  ;;  %1090 = vmatpush.msra.mxu1 %v3262_v33  ;;  %946 = vmatpush.msra.mxu3 %v3597_v5 }
  0xbb   :  { %v293_v29 = vpop.f32.mrf.mxu2  ;;  %v334_v39 = vpop.f32.mrf.mxu3  ;;  %1074 = vmatpush.msra.mxu0 %v3302_v46  ;;  %927 = vmatpush.msra.mxu2 %v5477_v32 }
  0xbc   :  { %v3765_v31 = vadd.f32 %v293_v29, %v3726_v24  ;;  %v3768_v43 = vadd.f32 %v334_v39, %v3694_v40  ;;  %v214_v19 = vpop.f32.mrf.mxu0  ;;  %v255_v61 = vpop.f32.mrf.mxu1  ;;  %1091 = vmatpush.msra.mxu1 %v3272_v36  ;;  %947 = vmatpush.msra.mxu3 %v3606_v44 }
  0xbd   :  { %v3773_v30 = vadd.f32 %v214_v19, %v3757_v37  ;;  %v3776_v28 = vadd.f32 %v255_v61, %v3760_v15  ;;  %1075 = vmatpush.msra.mxu0 %v3314_v48  ;;  %928 = vmatpush.msra.mxu2 %v3595_v11 }
  0xbe   :  { %5475 = vst [vmem:[#allocation34_spill] sm:$0xff] %v3765_v31  ;;  %1092 = vmatpush.msra.mxu1 %v3284_v38  ;;  %948 = vmatpush.msra.mxu3 %v3609_v62 }
  0xbf   :  { %5476 = vst [vmem:[#allocation41_spill] sm:$0xff] %v3768_v43  ;;  %1076 = vmatpush.msra.mxu0 %v3320_v50 }
  0xc0   :  { %5478 = vst [vmem:[#allocation67_spill] sm:$0xff] %v3773_v30  ;;  %1093 = vmatpush.msra.mxu1 %v3290_v42 }
  0xc1   :  { %5479 = vst [vmem:[#allocation45_spill] sm:$0xff] %v3776_v28  ;;  %1077 = vmatpush.msra.mxu0 %v3330_v54 }
  0xc2   :  { %1094 = vmatpush.msra.mxu1 %v3300_v45 }
  0xc3   :  { %v296_v33 = vpop.f32.mrf.mxu2  ;;  %v337_v46 = vpop.f32.mrf.mxu3  ;;  %1078 = vmatpush.msra.mxu0 %v3342_v56 }
  0xc4   :  { %v3790_v36 = vadd.f32 %v296_v33, %v3726_v24  ;;  %v3793_v48 = vadd.f32 %v337_v46, %v3694_v40  ;;  %v217_v38 = vpop.f32.mrf.mxu0  ;;  %v258_v50 = vpop.f32.mrf.mxu1  ;;  %1095 = vmatpush.msra.mxu1 %v3312_v47 }
  0xc5   :  { %v3796_v61 = vadd.f32 %v217_v38, %v3757_v37  ;;  %v3799_v42 = vadd.f32 %v258_v50, %v3760_v15  ;;  %1079 = vmatpush.msra.mxu0 %v3352_v60 }
  0xc6   :  { %5480 = vst [vmem:[#allocation70_spill] sm:$0xff] %v3790_v36  ;;  %1096 = vmatpush.msra.mxu1 %v3318_v49 }
  0xc7   :  { %5481 = vst [vmem:[#allocation51_spill] sm:$0xff] %v3793_v48  ;;  %1080 = vmatpush.msra.mxu0 %v5433_v8 }
  0xc8   :  { %5482 = vst [vmem:[#allocation55_spill] sm:$0xff] %v3796_v61  ;;  %1097 = vmatpush.msra.mxu1 %v3328_v53 }
  0xc9   :  { %5483 = vst [vmem:[#allocation74_spill] sm:$0xff] %v3799_v42 }
  0xca   :  { %1098 = vmatpush.msra.mxu1 %v3340_v55 }
  0xcb   :  { %v299_v45 = vpop.f32.mrf.mxu2  ;;  %v340_v54 = vpop.f32.mrf.mxu3 }
  0xcc   :  { %v3808_v56 = vadd.f32 %v299_v45, %v3726_v24  ;;  %v3811_v19 = vadd.f32 %v340_v54, %v3694_v40  ;;  %v220_v29 = vpop.f32.mrf.mxu0  ;;  %v261_v47 = vpop.f32.mrf.mxu1  ;;  %1099 = vmatpush.msra.mxu1 %v5432_v57 }
  0xcd   :  { %v3814_v60 = vadd.f32 %v220_v29, %v3757_v37  ;;  %v3817_v49 = vadd.f32 %v261_v47, %v3760_v15 }
  0xce   :  { %5484 = vst [vmem:[#allocation63_spill] sm:$0xff] %v3808_v56  ;;  %1100 = vmatpush.msra.mxu1 %v5435_v58 }
  0xcf   :  { %5485 = vst [vmem:[#allocation76_spill] sm:$0xff] %v3811_v19 }
  0xd0   :  { %5486 = vst [vmem:[#allocation65_spill] sm:$0xff] %v3814_v60 }
  0xd1   :  { %5487 = vst [vmem:[#allocation72_spill] sm:$0xff] %v3817_v49  ;;  %v206_v49 = vadd.f32 %v3681_v25, %v3757_v37 }
  0xd3   :  { %v302_v53 = vpop.f32.mrf.mxu2  ;;  %v343_v55 = vpop.f32.mrf.mxu3 }
  0xd4   :  { %v3822_v8 = vadd.f32 %v302_v53, %v3726_v24  ;;  %v3825_v39 = vadd.f32 %v343_v55, %v3694_v40 }
  0xd5   :  { %v223_v33 = vpop.f32.mrf.mxu0  ;;  %v264_v46 = vpop.f32.mrf.mxu1 }
  0xd6   :  { %5488 = vst [vmem:[#allocation75_spill] sm:$0xff] %v3822_v8  ;;  %v3828_v38 = vadd.f32 %v223_v33, %v3757_v37  ;;  %v3831_v50 = vadd.f32 %v264_v46, %v3760_v15  ;;  %v3846_v33 = vperm.slane %v3689_v52, 4  ;;  %v3849_v46 = vperm.slane %v3689_v52, 5 }
  0xd7   :  { %5489 = vst [vmem:[#allocation77_spill] sm:$0xff] %v3825_v39 }
  0xd8   :  { %5490 = vst [vmem:[#allocation79_spill] sm:$0xff] %v3828_v38 }
  0xd9   :  { %5491 = vst [vmem:[#allocation80_spill] sm:$0xff] %v3831_v50 }
  0xdc   :  { %v305_v45 = vpop.f32.mrf.mxu2  ;;  %v346_v57 = vpop.f32.mrf.mxu3 }
  0xdd   :  { %v3834_v58 = vadd.f32 %v305_v45, %v3726_v24  ;;  %v3837_v54 = vadd.f32 %v346_v57, %v3694_v40  ;;  %v226_v29 = vpop.f32.mrf.mxu0  ;;  %v267_v47 = vpop.f32.mrf.mxu1 }
  0xde   :  { %v3840_v53 = vadd.f32 %v226_v29, %v3757_v37  ;;  %v3843_v55 = vadd.f32 %v267_v47, %v3760_v15  ;;  %v578_v47 = vld [vmem:[#allocation13] ss:$2 sm:$0x7] }
  0xdf   :  { %5492 = vst [vmem:[#allocation81_spill] sm:$0xff] %v3834_v58 }
  0xe0   :  { %5493 = vst [vmem:[#allocation82_spill] sm:$0xff] %v3837_v54 }
  0xe1   :  { %5494 = vst [vmem:[#allocation83_spill] sm:$0xff] %v3840_v53  ;;  %v3862_v53 = vperm.slane %v578_v47, 1 }
  0xe2   :  { %5495 = vst [vmem:[#allocation84_spill] sm:$0xff] %v3843_v55  ;;  %v3860_v55 = vperm.slane %v578_v47, 0 }
  0xe3   :  { %5500 = vst [vmem:[#allocation89_spill] sm:$0xff] %v3862_v53 }
  0xe4   :  { %v308_v50 = vpop.f32.mrf.mxu2  ;;  %v349_v45 = vpop.f32.mrf.mxu3  ;;  %5499 = vst [vmem:[#allocation88_spill] sm:$0xff] %v3860_v55 }
  0xe5   :  { %v3852_v58 = vadd.f32 %v308_v50, %v3726_v24  ;;  %v369_v57 = vpop.f32.mrf.mxu0  ;;  %v410_v38 = vpop.f32.mrf.mxu1  ;;  %v247_v50 = vadd.f32 %v3683_v17, %v3760_v15 }
  0xe6   :  { %v3855_v43 = vadd.f32 %v369_v57, %v3846_v33  ;;  %v3858_v29 = vadd.f32 %v410_v38, %v3849_v46 }
  0xe7   :  { %5496 = vst [vmem:[#allocation85_spill] sm:$0xff] %v3852_v58 }
  0xe8   :  { %5497 = vst [vmem:[#allocation86_spill] sm:$0xff] %v3855_v43 }
  0xe9   :  { %5498 = vst [vmem:[#allocation87_spill] sm:$0xff] %v3858_v29 }
  0xec   :  { %v619_v52 = vpop.f32.mrf.mxu2  ;;  %v639_v8 = vpop.f32.mrf.mxu3 }
  0xed   :  { %v722_v58 = vadd.f32 %v619_v52, %v3860_v55  ;;  %v723_v57 = vadd.f32 %v639_v8, %v3862_v53  ;;  %v372_v43 = vpop.f32.mrf.mxu0  ;;  %v413_v38 = vpop.f32.mrf.mxu1 }
  0xee   :  { %v3871_v29 = vadd.f32 %v372_v43, %v3846_v33  ;;  %v3874_v60 = vadd.f32 %v413_v38, %v3849_v46  ;;  %v3882_v38 = vld [vmem:[#allocation13 + $0x1] ss:$2 sm:$0x7] }
  0xef   :  { %v728_v48 = vadd.f32 %v722_v58, %v206_v49  ;;  %v768_v56 = vadd.f32 %v723_v57, %v247_v50  ;;  %v3891_v49 = vperm.slane %v3882_v38, 0 }
  0xf0   :  { %5501 = vst [vmem:[#allocation90_spill] sm:$0xff] %v3871_v29 }
  0xf1   :  { %5502 = vst [vmem:[#allocation91_spill] sm:$0xff] %v3874_v60  ;;  %v2531_v42 = vmul.f32 -1.442695, %v728_v48  ;;  %v2533_v61 = vmul.f32 -1.442695, %v768_v56 }
  0xf3   :  { %2580 = vpow2.f32 %v2531_v42 }
  0xf4   :  { %2582 = vpow2.f32 %v2533_v61 }
  0xf5   :  { %v375_v25 = vpop.f32.mrf.mxu0  ;;  %v416_v17 = vpop.f32.mrf.mxu1 }
  0xf6   :  { %v3877_v52 = vadd.f32 %v375_v25, %v3846_v33  ;;  %v3880_v8 = vadd.f32 %v416_v17, %v3849_v46 }
  0xf8   :  { %5503 = vst [vmem:[#allocation92_spill] sm:$0xff] %v3877_v52  ;;  %v3895_v52 = vperm.slane %v578_v47, 2 }
  0xf9   :  { %5504 = vst [vmem:[#allocation93_spill] sm:$0xff] %v3880_v8  ;;  %v2581_v19 = vpop.eup %2580 }
  0xfa   :  { %v2583_v43 = vpop.eup %2582  ;;  %v736_v29 = vadd.f32 1.0, %v2581_v19  ;;  %v350_v19 = vadd.f32 %v349_v45, %v3694_v40 }
  0xfb   :  { %v776_v36 = vadd.f32 1.0, %v2583_v43 }
  0xfc   :  { %2584 = vrcp.f32 %v736_v29  ;;  %v679_v58 = vpop.f32.mrf.mxu3  ;;  %v659_v28 = vpop.f32.mrf.mxu2  ;;  %v749_v30 = vand.u32 2147483648, %v736_v29  ;;  %v747_v45 = vand.u32 2147483647, %v736_v29  ;;  %vm743_vm2 = vweird.f32 %v736_v29 }
  0xfd   :  { %2586 = vrcp.f32 %v776_v36  ;;  %v378_v48 = vpop.f32.mrf.mxu0  ;;  %v419_v56 = vpop.f32.mrf.mxu1  ;;  %v725_v25 = vadd.f32 %v679_v58, %v3891_v49  ;;  %v724_v31 = vadd.f32 %v659_v28, %v3895_v52  ;;  %vm783_vm6 = vweird.f32 %v776_v36 }
  0xfe   :  { %v3885_v61 = vadd.f32 %v378_v48, %v3846_v33  ;;  %v3888_v42 = vadd.f32 %v419_v56, %v3849_v46  ;;  %v750_v47 = vor.u32 1.1754944e-38, %v749_v30  ;;  %vm748_vm4 = vcmp.eq.f32.partialorder %v747_v45, 8.507059e+37 }
  0xff   :  { %v729_v39 = vadd.f32 %v725_v25, %v350_v19  ;;  %v789_v19 = vand.u32 2147483648, %v776_v36 }
 0x100   :  { %5505 = vst [vmem:[#allocation94_spill] sm:$0xff] %v3885_v61 }
 0x101   :  { %5506 = vst [vmem:[#allocation95_spill] sm:$0xff] %v3888_v42 }
 0x102   :  { %v2585_v50 = vpop.eup %2584 }
 0x103   :  { %v2587_v57 = vpop.eup %2586  ;;  %v739_v17 = vmul.f32 %v2585_v50, %v736_v29  ;;  %vm744_vm1 = vweird.f32 %v2585_v50  ;;  %v790_v29 = vor.u32 1.1754944e-38, %v789_v19 }
 0x104   :  { %v779_v43 = vmul.f32 %v2587_v57, %v776_v36  ;;  %vm745_vm3 = vmor %vm743_vm2, %vm744_vm1  ;;  %vm784_vm5 = vweird.f32 %v2587_v57 }
 0x105   :  { %v381_v60 = vpop.f32.mrf.mxu0  ;;  %v422_v8 = vpop.f32.mrf.mxu1  ;;  %v740_v48 = vsub.f32 1.0, %v739_v17  ;;  %v2532_v17 = vmul.f32 -1.442695, %v729_v39  ;;  %vm785_vm7 = vmor %vm783_vm6, %vm784_vm5 }
 0x106   :  { %v780_v61 = vsub.f32 1.0, %v779_v43  ;;  %v3898_v56 = vadd.f32 %v381_v60, %v3846_v33  ;;  %v3901_v42 = vadd.f32 %v422_v8, %v3849_v46 }
 0x107   :  { %v741_v40 = vmul.f32 %v2585_v50, %v740_v48  ;;  %2588 = vpow2.f32 %v2532_v17 }
 0x108   :  { %5507 = vst [vmem:[#allocation96_spill] sm:$0xff] %v3898_v56  ;;  %v781_v58 = vmul.f32 %v2587_v57, %v780_v61  ;;  %v787_v61 = vand.u32 2147483647, %v776_v36 }
 0x109   :  { %5508 = vst [vmem:[#allocation97_spill] sm:$0xff] %v3901_v42  ;;  %v742_v54 = vadd.f32 %v2585_v50, %v741_v40  ;;  %v288_v42 = vadd.f32 %v3702_v13, %v3726_v24 }
 0x10a   :  { %v782_v8 = vadd.f32 %v2587_v57, %v781_v58  ;;  %vm788_vm8 = vcmp.eq.f32.partialorder %v787_v61, 8.507059e+37  ;;  %v5518_v61 = vld [vmem:[#allocation39_spill] sm:$0xff] }
 0x10b   :  { %v746_v43 = vsel %vm745_vm3, %v2585_v50, %v742_v54 }
 0x10c   :  { %v751_v60 = vsel %vm748_vm4, %v750_v47, %v746_v43  ;;  %v786_v54 = vsel %vm785_vm7, %v2587_v57, %v782_v8 }
 0x10d   :  { %v808_v25 = vmul.f32 %v751_v60, %v724_v31  ;;  %v384_v48 = vpop.f32.mrf.mxu0  ;;  %v425_v56 = vpop.f32.mrf.mxu1  ;;  %v791_v13 = vsel %vm788_vm8, %v790_v29, %v786_v54  ;;  %v3935_v60 = vperm.slane %v3882_v38, 1  ;;  %v5521_v29 = vld [vmem:[#allocation48_spill] sm:$0xff] }
 0x10e   :  { %v3907_v28 = vadd.f32 %v384_v48, %v3846_v33  ;;  %v3910_v30 = vadd.f32 %v425_v56, %v3849_v46  ;;  %v2589_v24 = vpop.eup %2588  ;;  %v814_v40 = vsub.f32 1.0, %v791_v13 }
 0x10f   :  { %v810_v39 = vadd.f32 %v808_v25, %v288_v42  ;;  %v3918_v58 = vadd.f32 1.0, %v2589_v24  ;;  %v818_v42 = vmul.f32 0.0, %v791_v13  ;;  %v5517_v25 = vld [vmem:[#allocation40_spill] sm:$0xff]  ;;  %v5522_v13 = vld [vmem:[#allocation47_spill] sm:$0xff]  ;;  %v5524_v24 = vld [vmem:[#allocation49_spill] sm:$0xff] }
 0x110   :  { %5509 = vst [vmem:[#allocation98_spill] sm:$0xff] %v3907_v28 }
 0x111   :  { %5510 = vst [vmem:[#allocation99_spill] sm:$0xff] %v3910_v30  ;;  %2590 = vtanh.f32 %v810_v39  ;;  %v5520_v39 = vld [vmem:[#allocation43_spill] sm:$0xff]  ;;  %vm758_vm9 = vweird.f32 %v3918_v58 }
 0x112   :  { %2592 = vrcp.f32 %v3918_v58 }
 0x115   :  { %v387_v31 = vpop.f32.mrf.mxu0  ;;  %v428_v50 = vpop.f32.mrf.mxu1 }
 0x116   :  { %v3913_v36 = vadd.f32 %v387_v31, %v3846_v33  ;;  %v3916_v45 = vadd.f32 %v428_v50, %v3849_v46  ;;  %v762_v50 = vand.u32 2147483647, %v3918_v58 }
 0x117   :  { %v2591_v56 = vpop.eup %2590 }
 0x118   :  { %v816_v47 = vmul.f32 %v2591_v56, %v814_v40  ;;  %v2593_v43 = vpop.eup %2592  ;;  %v5526_v40 = vld [vmem:[#allocation54_spill] sm:$0xff]  ;;  %vm763_vm12 = vcmp.eq.f32.partialorder %v762_v50, 8.507059e+37  ;;  %v4023_v50 = vld [vmem:[#allocation9 + $0x140] sm:$0xff] }
 0x119   :  { %vm759_vm10 = vweird.f32 %v2593_v43 }
 0x11a   :  { %v3920_v57 = vadd.f32 %v818_v42, %v816_v47  ;;  %vm3970_vm11 = vmor %vm758_vm9, %vm759_vm10  ;;  %v5529_v42 = vld [vmem:[#allocation53_spill] sm:$0xff]  ;;  %v5540_v47 = vld [vmem:[#allocation56_spill] sm:$0xff] }
 0x11c   :  { %822 = vst [vmem:[#allocation15] sm:$0xff] %v3920_v57  ;;  %849 = vmatmul.f32.vlgmr.msrb.gmra.mxu2 %v3920_v57  ;;  %869 = vmatmul.f32.vlgmr.msrb.gmra.mxu3 %v3920_v57 }
 0x11d   :  { %889 = vmatmul.f32.vlgmr.msrb.gmra.mxu0 %v3920_v57  ;;  %v390_v17 = vpop.f32.mrf.mxu0  ;;  %1105 = vmatpush.msrb.mxu2 %v3372_v1  ;;  %v754_v1 = vmul.f32 %v2593_v43, %v3918_v58 }
 0x11e   :  { %1125 = vmatpush.msrb.mxu3 %v3370_v0  ;;  %1145 = vmatpush.msrb.mxu0 %v5437_v63  ;;  %v5511_v63 = vld [vmem:[#allocation30_spill] sm:$0xff] }
 0x11f   :  { %1106 = vmatpush.msrb.mxu2 %v3384_v4  ;;  %v391_v4 = vadd.f32 %v390_v17, %v3846_v33  ;;  %v755_v19 = vsub.f32 1.0, %v754_v1  ;;  %v5519_v33 = vld [vmem:[#allocation44_spill] sm:$0xff] }
 0x120   :  { %1126 = vmatpush.msrb.mxu3 %v3381_v3  ;;  %1146 = vmatpush.msrb.mxu0 %v5440_v21  ;;  %v5512_v3 = vld [vmem:[#allocation33_spill] sm:$0xff]  ;;  %v5513_v21 = vld [vmem:[#allocation32_spill] sm:$0xff] }
 0x121   :  { %1107 = vmatpush.msrb.mxu2 %v3392_v7  ;;  %v756_v54 = vmul.f32 %v2593_v43, %v755_v19  ;;  %v5532_v1 = vld [vmem:[#allocation60_spill] sm:$0xff] }
 0x122   :  { %1127 = vmatpush.msrb.mxu3 %v3390_v6  ;;  %1147 = vmatpush.msrb.mxu0 %v5443_v14  ;;  %v5514_v6 = vld [vmem:[#allocation31_spill] sm:$0xff]  ;;  %v5515_v14 = vld [vmem:[#allocation37_spill] sm:$0xff] }
 0x123   :  { %1108 = vmatpush.msrb.mxu2 %v3404_v10  ;;  %v431_v10 = vpop.f32.mrf.mxu1  ;;  %v757_v31 = vadd.f32 %v2593_v43, %v756_v54  ;;  %v4004_v54 = vld [vmem:[#allocation9 + $0x168] sm:$0xff] }
 0x124   :  { %1128 = vmatpush.msrb.mxu3 %v3401_v9  ;;  %1148 = vmatpush.msrb.mxu0 %v5511_v63  ;;  %v5516_v9 = vld [vmem:[#allocation36_spill] sm:$0xff]  ;;  %v5531_v63 = vld [vmem:[#allocation57_spill] sm:$0xff] }
 0x125   :  { %v699_v0 = vpop.f32.mrf.mxu0  ;;  %1109 = vmatpush.msrb.mxu2 %v5512_v3  ;;  %v5533_v3 = vld [vmem:[#allocation59_spill] sm:$0xff] }
 0x126   :  { %v726_v7 = vadd.f32 %v699_v0, %v3935_v60  ;;  %1129 = vmatpush.msrb.mxu3 %v5513_v21  ;;  %1149 = vmatpush.msrb.mxu0 %v5514_v6  ;;  %v761_v0 = vsel %vm3970_vm11, %v2593_v43, %v757_v31  ;;  %v5536_v6 = vld [vmem:[#allocation68_spill] sm:$0xff] }
 0x127   :  { %1110 = vmatpush.msrb.mxu2 %v5515_v14  ;;  %v5537_v14 = vld [vmem:[#allocation71_spill] sm:$0xff] }
 0x128   :  { %v769_v8 = vadd.f32 %v726_v7, %v391_v4  ;;  %1130 = vmatpush.msrb.mxu3 %v5516_v9  ;;  %1150 = vmatpush.msrb.mxu0 %v5451_v18  ;;  %v5523_v18 = vld [vmem:[#allocation50_spill] sm:$0xff]  ;;  %v5535_v7 = vld [vmem:[#allocation61_spill] sm:$0xff]  ;;  %v4020_v31 = vld [vmem:[#allocation9 + $0x138] sm:$0xff] }
 0x129   :  { %1111 = vmatpush.msrb.mxu2 %v5517_v25 }
 0x12a   :  { %v2534_v48 = vmul.f32 -1.442695, %v769_v8  ;;  %1131 = vmatpush.msrb.mxu3 %v5518_v61  ;;  %1151 = vmatpush.msrb.mxu0 %v5455_v20  ;;  %v764_v20 = vand.u32 2147483648, %v3918_v58 }
 0x12b   :  { %1112 = vmatpush.msrb.mxu2 %v5519_v33  ;;  %v719_v56 = vpop.f32.mrf.mxu1 }
 0x12c   :  { %2594 = vpow2.f32 %v2534_v48  ;;  %1132 = vmatpush.msrb.mxu3 %v5520_v39  ;;  %1152 = vmatpush.msrb.mxu0 %v5458_v59  ;;  %v3966_v59 = vperm.slane %v3882_v38, 2  ;;  %v765_v38 = vor.u32 1.1754944e-38, %v764_v20  ;;  %v4016_v20 = vld [vmem:[#allocation9 + $0x158] sm:$0xff] }
 0x12d   :  { %1113 = vmatpush.msrb.mxu2 %v5521_v29  ;;  %v4007_v29 = vld [vmem:[#allocation9 + $0x170] sm:$0xff] }
 0x12e   :  { %1133 = vmatpush.msrb.mxu3 %v5522_v13  ;;  %1153 = vmatpush.msrb.mxu0 %v5461_v2  ;;  %5525 = vst [vmem:[#allocation30_spill] sm:$0xff] %v3966_v59  ;;  %v727_v58 = vadd.f32 %v719_v56, %v3966_v59  ;;  %v766_v4 = vsel %vm763_vm12, %v765_v38, %v761_v0  ;;  %v4010_v13 = vld [vmem:[#allocation10 + $0x160] sm:$0xff]  ;;  %v4030_v56 = vld [vmem:[#allocation9 + $0x128] sm:$0xff]  ;;  %v4041_v38 = vld [vmem:[#allocation9 + $0xf0] sm:$0xff] }
 0x12f   :  { %1114 = vmatpush.msrb.mxu2 %v5523_v18  ;;  %v4013_v18 = vld [vmem:[#allocation9 + $0x150] sm:$0xff]  ;;  %v4048_v0 = vld [vmem:[#allocation9 + $0xd8] sm:$0xff] }
 0x130   :  { %1134 = vmatpush.msrb.mxu3 %v5524_v24  ;;  %1154 = vmatpush.msrb.mxu0 %v5462_v27  ;;  %v5530_v27 = vld [vmem:[#allocation58_spill] sm:$0xff]  ;;  %v809_v21 = vmul.f32 %v766_v4, %v727_v58 }
 0x131   :  { %1115 = vmatpush.msrb.mxu2 %v5526_v40  ;;  %v5538_v24 = vld [vmem:[#allocation46_spill] sm:$0xff]  ;;  %v5539_v40 = vld [vmem:[#allocation52_spill] sm:$0xff] }
 0x132   :  { %v2595_v2 = vpop.eup %2594  ;;  %1135 = vmatpush.msrb.mxu3 %v5529_v42  ;;  %1155 = vmatpush.msrb.mxu0 %v5468_v41  ;;  %v5534_v41 = vld [vmem:[#allocation62_spill] sm:$0xff] }
 0x133   :  { %v777_v17 = vadd.f32 1.0, %v2595_v2  ;;  %1116 = vmatpush.msrb.mxu2 %v5530_v27  ;;  %v4027_v2 = vld [vmem:[#allocation9 + $0x120] sm:$0xff]  ;;  %v4034_v42 = vld [vmem:[#allocation9 + $0x108] sm:$0xff] }
 0x134   :  { %1136 = vmatpush.msrb.mxu3 %v5531_v63  ;;  %1156 = vmatpush.msrb.mxu0 %v5470_v34  ;;  %v432_v34 = vadd.f32 %v431_v10, %v3849_v46  ;;  %v5541_v27 = vld [vmem:[#allocation64_spill] sm:$0xff]  ;;  %v5542_v58 = vld [vmem:[#allocation66_spill] sm:$0xff] }
 0x135   :  { %2596 = vrcp.f32 %v777_v17  ;;  %1117 = vmatpush.msrb.mxu2 %v5532_v1  ;;  %v802_v46 = vand.u32 2147483647, %v777_v17  ;;  %vm798_vm14 = vweird.f32 %v777_v17  ;;  %v4044_v63 = vld [vmem:[#allocation9 + $0xf8] sm:$0xff]  ;;  %v4051_v1 = vld [vmem:[#allocation9 + $0xe0] sm:$0xff]  ;;  %v4058_v4 = vld [vmem:[#allocation9 + $0xc8] sm:$0xff] }
 0x136   :  { %1137 = vmatpush.msrb.mxu3 %v5533_v3  ;;  %1157 = vmatpush.msrb.mxu0 %v5471_v12  ;;  %v811_v8 = vadd.f32 %v809_v21, %v432_v34  ;;  %v5543_v3 = vld [vmem:[#allocation69_spill] sm:$0xff]  ;;  %5544 = vst [vmem:[#allocation33_spill] sm:$0xff] %v4058_v4  ;;  %v4065_v21 = vld [vmem:[#allocation9 + $0xb0] sm:$0xff] }
 0x137   :  { %1118 = vmatpush.msrb.mxu2 %v5534_v41  ;;  %vm803_vm0 = vcmp.eq.f32.partialorder %v802_v46, 8.507059e+37  ;;  %v4055_v41 = vld [vmem:[#allocation9 + $0xc0] sm:$0xff]  ;;  %v4062_v34 = vld [vmem:[#allocation9 + $0xa8] sm:$0xff]  ;;  %5547 = vst [vmem:[#allocation31_spill] sm:$0xff] %v4065_v21  ;;  %v4104_v46 = vld [vmem:[#allocation9 + $0x18] sm:$0xff] }
 0x138   :  { %1138 = vmatpush.msrb.mxu3 %v5535_v7  ;;  %1158 = vmatpush.msrb.mxu0 %v5472_v26  ;;  %v804_v26 = vand.u32 2147483648, %v777_v17  ;;  %2598 = vtanh.f32 %v811_v8  ;;  %v5545_v7 = vld [vmem:[#allocation73_spill] sm:$0xff]  ;;  %5546 = vst [vmem:[#allocation32_spill] sm:$0xff] %v4062_v34 }
 0x139   :  { %1119 = vmatpush.msrb.mxu2 %v5536_v6  ;;  %v4069_v6 = vld [vmem:[#allocation9 + $0x90] sm:$0xff]  ;;  %v4086_v8 = vld [vmem:[#allocation9 + $0x68] sm:$0xff]  ;;  %5559 = vst [vmem:[#allocation54_spill] sm:$0xff] %v4104_v46 }
 0x13a   :  { %1139 = vmatpush.msrb.mxu3 %v5456_v51  ;;  %1159 = vmatpush.msrb.mxu0 %v5477_v32  ;;  %v805_v51 = vor.u32 1.1754944e-38, %v804_v26  ;;  %5548 = vst [vmem:[#allocation37_spill] sm:$0xff] %v4069_v6  ;;  %v4093_v26 = vld [vmem:[#allocation9 + $0x50] sm:$0xff] }
 0x13b   :  { %v2597_v43 = vpop.eup %2596  ;;  %1120 = vmatpush.msrb.mxu2 %v5537_v14  ;;  %v4076_v14 = vld [vmem:[#allocation9 + $0x78] sm:$0xff]  ;;  %5553 = vst [vmem:[#allocation43_spill] sm:$0xff] %v4086_v8 }
 0x13c   :  { %v794_v12 = vmul.f32 %v2597_v43, %v777_v17  ;;  %1140 = vmatpush.msrb.mxu3 %v5459_v23  ;;  %1160 = vmatpush.msrb.mxu0 %v3595_v11  ;;  %vm799_vm13 = vweird.f32 %v2597_v43  ;;  %v4001_v11 = vld [vmem:[#allocation10 + $0x178] sm:$0xff]  ;;  %v4037_v17 = vld [vmem:[#allocation9 + $0x110] sm:$0xff]  ;;  %5550 = vst [vmem:[#allocation40_spill] sm:$0xff] %v4076_v14 }
 0x13d   :  { %vm800_vm15 = vmor %vm798_vm14, %vm799_vm13  ;;  %5556 = vst [vmem:[#allocation47_spill] sm:$0xff] %v4093_v26 }
 0x13e   :  { %v795_v9 = vsub.f32 1.0, %v794_v12  ;;  %v2599_v61 = vpop.eup %2598  ;;  %v4079_v12 = vld [vmem:[#allocation9 + $0x80] sm:$0xff] }
 0x13f   :  { %5551 = vst [vmem:[#allocation39_spill] sm:$0xff] %v4079_v12 }
 0x140   :  { %v796_v19 = vmul.f32 %v2597_v43, %v795_v9  ;;  %v5554_v9 = vld [vmem:[#allocation78_spill] sm:$0xff] }
 0x142   :  { %v797_v10 = vadd.f32 %v2597_v43, %v796_v19  ;;  %v4100_v19 = vld [vmem:[#allocation9 + $0x38] sm:$0xff] }
 0x143   :  { %5558 = vst [vmem:[#allocation49_spill] sm:$0xff] %v4100_v19 }
 0x144   :  { %v801_v32 = vsel %vm800_vm15, %v2597_v43, %v797_v10  ;;  %v4072_v43 = vld [vmem:[#allocation9 + $0x98] sm:$0xff]  ;;  %v4107_v10 = vld [vmem:[#allocation9 + $0x20] sm:$0xff] }
 0x145   :  { %v806_v25 = vsel %vm803_vm0, %v805_v51, %v801_v32  ;;  %5549 = vst [vmem:[#allocation36_spill] sm:$0xff] %v4072_v43  ;;  %v4114_v51 = vld [vmem:[#allocation9 + $0x8] sm:$0xff] }
 0x146   :  { %v815_v48 = vsub.f32 1.0, %v806_v25  ;;  %v819_v23 = vmul.f32 0.0, %v806_v25  ;;  %5560 = vst [vmem:[#allocation53_spill] sm:$0xff] %v4107_v10  ;;  %v5563_v25 = vld [vmem:[#allocation28_spill] sm:$0xff] }
 0x147   :  { %5562 = vst [vmem:[#allocation57_spill] sm:$0xff] %v4114_v51 }
 0x148   :  { %v817_v33 = vmul.f32 %v2599_v61, %v815_v48  ;;  %v209_v48 = vadd.f32 %v5563_v25, %v3757_v37  ;;  %v5564_v61 = vld [vmem:[#allocation27_spill] sm:$0xff] }
 0x14a   :  { %v3995_v39 = vadd.f32 %v819_v23, %v817_v33  ;;  %v250_v33 = vadd.f32 %v5564_v61, %v3760_v15 }
 0x14c   :  { %824 = vst [vmem:[#allocation15 + $0x78] sm:$0xff] %v3995_v39  ;;  %909 = vmatmul.f32.vlgmr.msrb.gmra.mxu1 %v3995_v39  ;;  %929 = vmatmul.f32.vlgmr.msra.gmra.mxu2 %v3995_v39 }
 0x14d   :  { %949 = vmatmul.f32.vlgmr.msra.gmra.mxu3 %v3995_v39  ;;  %1165 = vmatpush.msrb.mxu1 %v4001_v11 }
 0x14e   :  { %1297 = vmatpush.msra.mxu2 %v4004_v54  ;;  %1317 = vmatpush.msra.mxu3 %v4007_v29 }
 0x14f   :  { %1166 = vmatpush.msrb.mxu1 %v4010_v13 }
 0x150   :  { %1298 = vmatpush.msra.mxu2 %v4013_v18  ;;  %1318 = vmatpush.msra.mxu3 %v4016_v20 }
 0x151   :  { %1167 = vmatpush.msrb.mxu1 %v5538_v24 }
 0x152   :  { %1299 = vmatpush.msra.mxu2 %v4020_v31  ;;  %1319 = vmatpush.msra.mxu3 %v4023_v50 }
 0x153   :  { %1168 = vmatpush.msrb.mxu1 %v5539_v40 }
 0x154   :  { %1300 = vmatpush.msra.mxu2 %v4027_v2  ;;  %1320 = vmatpush.msra.mxu3 %v4030_v56 }
 0x155   :  { %1169 = vmatpush.msrb.mxu1 %v5540_v47 }
 0x156   :  { %1301 = vmatpush.msra.mxu2 %v4034_v42  ;;  %1321 = vmatpush.msra.mxu3 %v4037_v17 }
 0x157   :  { %1170 = vmatpush.msrb.mxu1 %v5541_v27 }
 0x158   :  { %1302 = vmatpush.msra.mxu2 %v4041_v38  ;;  %1322 = vmatpush.msra.mxu3 %v4044_v63 }
 0x159   :  { %1171 = vmatpush.msrb.mxu1 %v5542_v58 }
 0x15a   :  { %1303 = vmatpush.msra.mxu2 %v4048_v0  ;;  %1323 = vmatpush.msra.mxu3 %v4051_v1 }
 0x15b   :  { %1172 = vmatpush.msrb.mxu1 %v5543_v3 }
 0x15c   :  { %1304 = vmatpush.msra.mxu2 %v4055_v41  ;;  %1324 = vmatpush.msra.mxu3 %v4058_v4 }
 0x15d   :  { %1173 = vmatpush.msrb.mxu1 %v5545_v7 }
 0x15e   :  { %1305 = vmatpush.msra.mxu2 %v4062_v34  ;;  %1325 = vmatpush.msra.mxu3 %v4065_v21 }
 0x15f   :  { %1174 = vmatpush.msrb.mxu1 %v5467_v16  ;;  %v4083_v16 = vld [vmem:[#allocation9 + $0x60] sm:$0xff] }
 0x160   :  { %1306 = vmatpush.msra.mxu2 %v4069_v6  ;;  %1326 = vmatpush.msra.mxu3 %v4072_v43  ;;  %5552 = vst [vmem:[#allocation44_spill] sm:$0xff] %v4083_v16 }
 0x161   :  { %1175 = vmatpush.msrb.mxu1 %v5469_v22  ;;  %v4090_v22 = vld [vmem:[#allocation9 + $0x48] sm:$0xff] }
 0x162   :  { %1307 = vmatpush.msra.mxu2 %v4076_v14  ;;  %1327 = vmatpush.msra.mxu3 %v4079_v12  ;;  %5555 = vst [vmem:[#allocation48_spill] sm:$0xff] %v4090_v22 }
 0x163   :  { %1176 = vmatpush.msrb.mxu1 %v3581_v35  ;;  %v4097_v35 = vld [vmem:[#allocation9 + $0x30] sm:$0xff] }
 0x164   :  { %1308 = vmatpush.msra.mxu2 %v4083_v16  ;;  %1328 = vmatpush.msra.mxu3 %v4086_v8  ;;  %5557 = vst [vmem:[#allocation50_spill] sm:$0xff] %v4097_v35 }
 0x165   :  { %1177 = vmatpush.msrb.mxu1 %v5554_v9 }
 0x166   :  { %1309 = vmatpush.msra.mxu2 %v4090_v22  ;;  %1329 = vmatpush.msra.mxu3 %v4093_v26 }
 0x167   :  { %1178 = vmatpush.msrb.mxu1 %v3597_v5  ;;  %v4111_v5 = vld [vmem:[#allocation9] sm:$0xff] }
 0x168   :  { %1310 = vmatpush.msra.mxu2 %v4097_v35  ;;  %1330 = vmatpush.msra.mxu3 %v4100_v19  ;;  %5561 = vst [vmem:[#allocation58_spill] sm:$0xff] %v4111_v5 }
 0x169   :  { %1179 = vmatpush.msrb.mxu1 %v3606_v44 }
 0x16a   :  { %1311 = vmatpush.msra.mxu2 %v4104_v46  ;;  %1331 = vmatpush.msra.mxu3 %v4107_v10 }
 0x16b   :  { %1180 = vmatpush.msrb.mxu1 %v3609_v62 }
 0x16c   :  { %1312 = vmatpush.msra.mxu2 %v4111_v5  ;;  %1332 = vmatpush.msra.mxu3 %v4114_v51 }
 0x19f   :  { %v850_v32 = vpop.f32.mrf.mxu2  ;;  %v870_v44 = vpop.f32.mrf.mxu3 }
 0x1a0   :  { %v953_v23 = vadd.f32 %v850_v32, %v3860_v55  ;;  %v954_v62 = vadd.f32 %v870_v44, %v3862_v53 }
 0x1a2   :  { %v959_v24 = vadd.f32 %v953_v23, %v209_v48  ;;  %v999_v40 = vadd.f32 %v954_v62, %v250_v33  ;;  %v890_v33 = vpop.f32.mrf.mxu0 }
 0x1a4   :  { %v2535_v47 = vmul.f32 -1.442695, %v959_v24  ;;  %v2537_v27 = vmul.f32 -1.442695, %v999_v40  ;;  %v955_v40 = vadd.f32 %v890_v33, %v3895_v52 }
 0x1a6   :  { %2600 = vpow2.f32 %v2535_v47 }
 0x1a7   :  { %2602 = vpow2.f32 %v2537_v27 }
 0x1ac   :  { %v2601_v58 = vpop.eup %2600 }
 0x1ad   :  { %v2603_v3 = vpop.eup %2602  ;;  %v967_v7 = vadd.f32 1.0, %v2601_v58 }
 0x1ae   :  { %v1007_v9 = vadd.f32 1.0, %v2603_v3 }
 0x1af   :  { %2604 = vrcp.f32 %v967_v7  ;;  %v980_v32 = vand.u32 2147483648, %v967_v7  ;;  %v978_v48 = vand.u32 2147483647, %v967_v7  ;;  %vm974_vm2 = vweird.f32 %v967_v7 }
 0x1b0   :  { %2606 = vrcp.f32 %v1007_v9  ;;  %vm1014_vm6 = vweird.f32 %v1007_v9 }
 0x1b1   :  { %v981_v24 = vor.u32 1.1754944e-38, %v980_v32  ;;  %vm979_vm4 = vcmp.eq.f32.partialorder %v978_v48, 8.507059e+37 }
 0x1b5   :  { %v2605_v25 = vpop.eup %2604 }
 0x1b6   :  { %v2607_v30 = vpop.eup %2606  ;;  %v970_v28 = vmul.f32 %v2605_v25, %v967_v7  ;;  %vm975_vm1 = vweird.f32 %v2605_v25 }
 0x1b7   :  { %v1010_v61 = vmul.f32 %v2607_v30, %v1007_v9  ;;  %vm976_vm3 = vmor %vm974_vm2, %vm975_vm1  ;;  %vm1015_vm5 = vweird.f32 %v2607_v30 }
 0x1b8   :  { %v971_v15 = vsub.f32 1.0, %v970_v28  ;;  %v1020_v28 = vand.u32 2147483648, %v1007_v9  ;;  %vm1016_vm7 = vmor %vm1014_vm6, %vm1015_vm5 }
 0x1b9   :  { %v1011_v55 = vsub.f32 1.0, %v1010_v61  ;;  %v1018_v61 = vand.u32 2147483647, %v1007_v9 }
 0x1ba   :  { %v972_v44 = vmul.f32 %v2605_v25, %v971_v15  ;;  %v5565_v15 = vld [vmem:[#allocation38_spill] sm:$0xff] }
 0x1bb   :  { %v1012_v23 = vmul.f32 %v2607_v30, %v1011_v55  ;;  %v1021_v55 = vor.u32 1.1754944e-38, %v1020_v28  ;;  %vm1019_vm8 = vcmp.eq.f32.partialorder %v1018_v61, 8.507059e+37  ;;  %v4151_v28 = vld [vmem:[#allocation10 + $0x158] sm:$0xff] }
 0x1bc   :  { %v973_v62 = vadd.f32 %v2605_v25, %v972_v44 }
 0x1bd   :  { %v1013_v58 = vadd.f32 %v2607_v30, %v1012_v23 }
 0x1be   :  { %v977_v47 = vsel %vm976_vm3, %v2605_v25, %v973_v62  ;;  %v5566_v62 = vld [vmem:[#allocation82_spill] sm:$0xff] }
 0x1bf   :  { %v982_v27 = vsel %vm979_vm4, %v981_v24, %v977_v47  ;;  %v1017_v37 = vsel %vm1016_vm7, %v2607_v30, %v1013_v58  ;;  %v4135_v30 = vld [vmem:[#allocation9 + $0x178] sm:$0xff]  ;;  %v4141_v47 = vld [vmem:[#allocation10 + $0x170] sm:$0xff]  ;;  %v4145_v58 = vld [vmem:[#allocation9 + $0x160] sm:$0xff] }
 0x1c0   :  { %v1039_v3 = vmul.f32 %v982_v27, %v955_v40  ;;  %v1022_v7 = vsel %vm1019_vm8, %v1021_v55, %v1017_v37  ;;  %v4157_v55 = vld [vmem:[#allocation10 + $0x138] sm:$0xff] }
 0x1c1   :  { %v1045_v44 = vsub.f32 1.0, %v1022_v7  ;;  %v1049_v23 = vmul.f32 %v1022_v7, %v3920_v57  ;;  %v4138_v57 = vld [vmem:[#allocation10 + $0x168] sm:$0xff]  ;;  %5568 = vst [vmem:[#allocation59_spill] sm:$0xff] %v4157_v55 }
 0x1c2   :  { %v1041_v53 = vadd.f32 %v1039_v3, %v5565_v15  ;;  %v4148_v3 = vld [vmem:[#allocation10 + $0x150] sm:$0xff]  ;;  %v4154_v15 = vld [vmem:[#allocation9 + $0x148] sm:$0xff] }
 0x1c3   :  { %5567 = vst [vmem:[#allocation60_spill] sm:$0xff] %v4154_v15 }
 0x1c4   :  { %2608 = vtanh.f32 %v1041_v53 }
 0x1c9   :  { %v910_v32 = vpop.f32.mrf.mxu1 }
 0x1ca   :  { %v2609_v33 = vpop.eup %2608  ;;  %v956_v25 = vadd.f32 %v910_v32, %v3891_v49  ;;  %v4163_v32 = vld [vmem:[#allocation9 + $0x130] sm:$0xff] }
 0x1cb   :  { %v1047_v48 = vmul.f32 %v2609_v33, %v1045_v44  ;;  %5570 = vst [vmem:[#allocation61_spill] sm:$0xff] %v4163_v32  ;;  %v4168_v33 = vld [vmem:[#allocation10 + $0x120] sm:$0xff] }
 0x1cc   :  { %v960_v24 = vadd.f32 %v956_v25, %v5566_v62  ;;  %5571 = vst [vmem:[#allocation68_spill] sm:$0xff] %v4168_v33  ;;  %v4171_v25 = vld [vmem:[#allocation10 + $0x128] sm:$0xff]  ;;  %v4181_v62 = vld [vmem:[#allocation10 + $0x110] sm:$0xff] }
 0x1cd   :  { %v4128_v40 = vadd.f32 %v1049_v23, %v1047_v48  ;;  %5572 = vst [vmem:[#allocation71_spill] sm:$0xff] %v4171_v25  ;;  %v4174_v48 = vld [vmem:[#allocation9 + $0x118] sm:$0xff]  ;;  %v4178_v23 = vld [vmem:[#allocation10 + $0x108] sm:$0xff] }
 0x1ce   :  { %v2536_v9 = vmul.f32 -1.442695, %v960_v24  ;;  %5573 = vst [vmem:[#allocation46_spill] sm:$0xff] %v4174_v48  ;;  %v4184_v24 = vld [vmem:[#allocation9 + $0x100] sm:$0xff] }
 0x1cf   :  { %1054 = vst [vmem:[#allocation15 + $0x10] sm:$0xff] %v4128_v40  ;;  %1081 = vmatmul.f32.vlgmr.msra.gmra.mxu0 %v4128_v40  ;;  %1101 = vmatmul.f32.vlgmr.msra.gmra.mxu1 %v4128_v40  ;;  %v930_v37 = vpop.f32.mrf.mxu2 }
 0x1d0   :  { %2610 = vpow2.f32 %v2536_v9  ;;  %1121 = vmatmul.f32.vlgmr.msrb.gmra.mxu2 %v4128_v40  ;;  %v957_v53 = vadd.f32 %v930_v37, %v3935_v60  ;;  %1337 = vmatpush.msra.mxu0 %v4135_v30  ;;  %5574 = vst [vmem:[#allocation52_spill] sm:$0xff] %v4178_v23  ;;  %v4187_v9 = vld [vmem:[#allocation10 + $0xf0] sm:$0xff]  ;;  %v4190_v37 = vld [vmem:[#allocation10 + $0xf8] sm:$0xff] }
 0x1d1   :  { %1357 = vmatpush.msra.mxu1 %v4138_v57  ;;  %1377 = vmatpush.msrb.mxu2 %v4141_v47  ;;  %5575 = vst [vmem:[#allocation56_spill] sm:$0xff] %v4181_v62 }
 0x1d2   :  { %v1000_v27 = vadd.f32 %v957_v53, %v3913_v36  ;;  %1338 = vmatpush.msra.mxu0 %v4145_v58  ;;  %v4160_v36 = vld [vmem:[#allocation10 + $0x140] sm:$0xff]  ;;  %5576 = vst [vmem:[#allocation64_spill] sm:$0xff] %v4184_v24 }
 0x1d3   :  { %1358 = vmatpush.msra.mxu1 %v4148_v3  ;;  %1378 = vmatpush.msrb.mxu2 %v4151_v28  ;;  %5569 = vst [vmem:[#allocation62_spill] sm:$0xff] %v4160_v36 }
 0x1d4   :  { %v2538_v61 = vmul.f32 -1.442695, %v1000_v27  ;;  %1339 = vmatpush.msra.mxu0 %v4154_v15  ;;  %5577 = vst [vmem:[#allocation66_spill] sm:$0xff] %v4187_v9  ;;  %v4193_v27 = vld [vmem:[#allocation9 + $0xe8] sm:$0xff] }
 0x1d5   :  { %1359 = vmatpush.msra.mxu1 %v4157_v55  ;;  %1379 = vmatpush.msrb.mxu2 %v4160_v36  ;;  %5578 = vst [vmem:[#allocation69_spill] sm:$0xff] %v4190_v37  ;;  %v4250_v36 = vld [vmem:[#allocation10 + $0x60] sm:$0xff]  ;;  %v4260_v15 = vld [vmem:[#allocation10 + $0x48] sm:$0xff] }
 0x1d6   :  { %v2611_v7 = vpop.eup %2610  ;;  %2612 = vpow2.f32 %v2538_v61  ;;  %1340 = vmatpush.msra.mxu0 %v4163_v32  ;;  %5579 = vst [vmem:[#allocation73_spill] sm:$0xff] %v4193_v27  ;;  %v4241_v32 = vld [vmem:[#allocation10 + $0x80] sm:$0xff] }
 0x1d7   :  { %v4166_v44 = vadd.f32 1.0, %v2611_v7  ;;  %1360 = vmatpush.msra.mxu1 %v4168_v33  ;;  %1380 = vmatpush.msrb.mxu2 %v4171_v25  ;;  %v4198_v7 = vld [vmem:[#allocation10 + $0xd8] sm:$0xff]  ;;  %5593 = vst [vmem:[#allocation108_spill] sm:$0xff] %v4241_v32 }
 0x1d8   :  { %1341 = vmatpush.msra.mxu0 %v4174_v48  ;;  %5580 = vst [vmem:[#allocation78_spill] sm:$0xff] %v4198_v7  ;;  %v4228_v48 = vld [vmem:[#allocation10 + $0x90] sm:$0xff]  ;;  %v4238_v33 = vld [vmem:[#allocation10 + $0x78] sm:$0xff] }
 0x1d9   :  { %2614 = vrcp.f32 %v4166_v44  ;;  %1361 = vmatpush.msra.mxu1 %v4178_v23  ;;  %1381 = vmatpush.msrb.mxu2 %v4181_v62  ;;  %v4208_v62 = vld [vmem:[#allocation10 + $0xc0] sm:$0xff]  ;;  %5589 = vst [vmem:[#allocation104_spill] sm:$0xff] %v4228_v48  ;;  %v993_v25 = vand.u32 2147483647, %v4166_v44  ;;  %vm989_vm10 = vweird.f32 %v4166_v44 }
 0x1da   :  { %1342 = vmatpush.msra.mxu0 %v4184_v24  ;;  %v4201_v24 = vld [vmem:[#allocation10 + $0xe0] sm:$0xff]  ;;  %5583 = vst [vmem:[#allocation38_spill] sm:$0xff] %v4208_v62 }
 0x1db   :  { %1362 = vmatpush.msra.mxu1 %v4187_v9  ;;  %1382 = vmatpush.msrb.mxu2 %v4190_v37  ;;  %5581 = vst [vmem:[#allocation28_spill] sm:$0xff] %v4201_v24  ;;  %v4204_v9 = vld [vmem:[#allocation9 + $0xd0] sm:$0xff]  ;;  %vm994_vm12 = vcmp.eq.f32.partialorder %v993_v25, 8.507059e+37 }
 0x1dc   :  { %v2613_v53 = vpop.eup %2612  ;;  %1343 = vmatpush.msra.mxu0 %v4193_v27  ;;  %5582 = vst [vmem:[#allocation27_spill] sm:$0xff] %v4204_v9  ;;  %v4215_v27 = vld [vmem:[#allocation9 + $0xb8] sm:$0xff] }
 0x1dd   :  { %v4196_v61 = vadd.f32 1.0, %v2613_v53  ;;  %1363 = vmatpush.msra.mxu1 %v4198_v7  ;;  %1383 = vmatpush.msrb.mxu2 %v4201_v24  ;;  %v4211_v53 = vld [vmem:[#allocation10 + $0xc8] sm:$0xff]  ;;  %5585 = vst [vmem:[#allocation100_spill] sm:$0xff] %v4215_v27 }
 0x1de   :  { %1344 = vmatpush.msra.mxu0 %v4204_v9  ;;  %5584 = vst [vmem:[#allocation82_spill] sm:$0xff] %v4211_v53  ;;  %v4218_v24 = vld [vmem:[#allocation10 + $0xa8] sm:$0xff]  ;;  %v4221_v9 = vld [vmem:[#allocation10 + $0xb0] sm:$0xff] }
 0x1df   :  { %v2615_v37 = vpop.eup %2614  ;;  %2616 = vrcp.f32 %v4196_v61  ;;  %1364 = vmatpush.msra.mxu1 %v4208_v62  ;;  %1384 = vmatpush.msrb.mxu2 %v4211_v53  ;;  %5586 = vst [vmem:[#allocation101_spill] sm:$0xff] %v4218_v24  ;;  %v4224_v62 = vld [vmem:[#allocation9 + $0xa0] sm:$0xff]  ;;  %v995_v53 = vand.u32 2147483648, %v4166_v44  ;;  %v1033_v25 = vand.u32 2147483647, %v4196_v61  ;;  %vm1029_vm14 = vweird.f32 %v4196_v61 }
 0x1e0   :  { %v985_v7 = vmul.f32 %v2615_v37, %v4166_v44  ;;  %1345 = vmatpush.msra.mxu0 %v4215_v27  ;;  %5587 = vst [vmem:[#allocation102_spill] sm:$0xff] %v4221_v9  ;;  %v4231_v27 = vld [vmem:[#allocation10 + $0x98] sm:$0xff]  ;;  %vm990_vm9 = vweird.f32 %v2615_v37 }
 0x1e1   :  { %1365 = vmatpush.msra.mxu1 %v4218_v24  ;;  %1385 = vmatpush.msrb.mxu2 %v4221_v9  ;;  %5588 = vst [vmem:[#allocation103_spill] sm:$0xff] %v4224_v62  ;;  %v4235_v9 = vld [vmem:[#allocation9 + $0x88] sm:$0xff]  ;;  %vm991_vm11 = vmor %vm989_vm10, %vm990_vm9  ;;  %v4257_v44 = vld [vmem:[#allocation9 + $0x58] sm:$0xff]  ;;  %vm1034_vm0 = vcmp.eq.f32.partialorder %v1033_v25, 8.507059e+37 }
 0x1e2   :  { %v986_v23 = vsub.f32 1.0, %v985_v7  ;;  %1346 = vmatpush.msra.mxu0 %v4224_v62  ;;  %5590 = vst [vmem:[#allocation105_spill] sm:$0xff] %v4231_v27  ;;  %v950_v62 = vpop.f32.mrf.mxu3  ;;  %v4327_v25 = vld [vmem:[#allocation10 + $0x118] sm:$0xff] }
 0x1e3   :  { %1366 = vmatpush.msra.mxu1 %v4228_v48  ;;  %1386 = vmatpush.msrb.mxu2 %v4231_v27  ;;  %5591 = vst [vmem:[#allocation106_spill] sm:$0xff] %v4235_v9  ;;  %v4246_v48 = vld [vmem:[#allocation9 + $0x70] sm:$0xff] }
 0x1e4   :  { %v987_v24 = vmul.f32 %v2615_v37, %v986_v23  ;;  %1347 = vmatpush.msra.mxu0 %v4235_v9  ;;  %5592 = vst [vmem:[#allocation107_spill] sm:$0xff] %v4238_v33  ;;  %v996_v9 = vor.u32 1.1754944e-38, %v995_v53  ;;  %v4263_v53 = vld [vmem:[#allocation10 + $0x50] sm:$0xff] }
 0x1e5   :  { %v2617_v7 = vpop.eup %2616  ;;  %1367 = vmatpush.msra.mxu1 %v4238_v33  ;;  %1387 = vmatpush.msrb.mxu2 %v4241_v32  ;;  %5594 = vst [vmem:[#allocation109_spill] sm:$0xff] %v4246_v48  ;;  %v4253_v33 = vld [vmem:[#allocation10 + $0x68] sm:$0xff] }
 0x1e6   :  { %v1025_v27 = vmul.f32 %v2617_v7, %v4196_v61  ;;  %v988_v23 = vadd.f32 %v2615_v37, %v987_v24  ;;  %1348 = vmatpush.msra.mxu0 %v4246_v48  ;;  %5595 = vst [vmem:[#allocation110_spill] sm:$0xff] %v4250_v36  ;;  %v958_v24 = vadd.f32 %v950_v62, %v3966_v59  ;;  %vm1030_vm13 = vweird.f32 %v2617_v7  ;;  %v4287_v59 = vld [vmem:[#allocation10 + $0x18] sm:$0xff] }
 0x1e7   :  { %1368 = vmatpush.msra.mxu1 %v4250_v36  ;;  %5596 = vst [vmem:[#allocation111_spill] sm:$0xff] %v4253_v33  ;;  %1388 = vmatpush.msrb.mxu2 %v4253_v33  ;;  %vm4283_vm15 = vmor %vm1029_vm14, %vm1030_vm13 }
 0x1e8   :  { %v1026_v32 = vsub.f32 1.0, %v1025_v27  ;;  %v992_v55 = vsel %vm991_vm11, %v2615_v37, %v988_v23  ;;  %5597 = vst [vmem:[#allocation112_spill] sm:$0xff] %v4257_v44  ;;  %1349 = vmatpush.msra.mxu0 %v4257_v44  ;;  %v1035_v27 = vand.u32 2147483648, %v4196_v61  ;;  %v4267_v37 = vld [vmem:[#allocation9 + $0x40] sm:$0xff]  ;;  %v4295_v61 = vld [vmem:[#allocation9 + $0x10] sm:$0xff] }
 0x1e9   :  { %v997_v48 = vsel %vm994_vm12, %v996_v9, %v992_v55  ;;  %5598 = vst [vmem:[#allocation113_spill] sm:$0xff] %v4260_v15  ;;  %1369 = vmatpush.msra.mxu1 %v4260_v15  ;;  %1389 = vmatpush.msrb.mxu2 %v4263_v53  ;;  %v4271_v55 = vld [vmem:[#allocation10 + $0x30] sm:$0xff]  ;;  %v4274_v9 = vld [vmem:[#allocation10 + $0x38] sm:$0xff] }
 0x1ea   :  { %5599 = vst [vmem:[#allocation114_spill] sm:$0xff] %v4263_v53  ;;  %v1027_v36 = vmul.f32 %v2617_v7, %v1026_v32  ;;  %v1040_v62 = vmul.f32 %v997_v48, %v958_v24  ;;  %1350 = vmatpush.msra.mxu0 %v4267_v37  ;;  %v4279_v48 = vld [vmem:[#allocation9 + $0x28] sm:$0xff]  ;;  %v4347_v24 = vld [vmem:[#allocation10 + $0xb8] sm:$0xff] }
 0x1eb   :  { %5600 = vst [vmem:[#allocation115_spill] sm:$0xff] %v4271_v55  ;;  %1370 = vmatpush.msra.mxu1 %v4271_v55  ;;  %1390 = vmatpush.msrb.mxu2 %v4274_v9  ;;  %v4290_v55 = vld [vmem:[#allocation10 + $0x20] sm:$0xff] }
 0x1ec   :  { %5601 = vst [vmem:[#allocation116_spill] sm:$0xff] %v4274_v9  ;;  %v1028_v32 = vadd.f32 %v2617_v7, %v1027_v36  ;;  %v1042_v23 = vadd.f32 %v1040_v62, %v3916_v45  ;;  %1351 = vmatpush.msra.mxu0 %v4279_v48  ;;  %v1036_v36 = vor.u32 1.1754944e-38, %v1035_v27  ;;  %v4298_v62 = vld [vmem:[#allocation10] sm:$0xff] }
 0x1ed   :  { %5602 = vst [vmem:[#allocation117_spill] sm:$0xff] %v4279_v48  ;;  %1371 = vmatpush.msra.mxu1 %v4287_v59  ;;  %1391 = vmatpush.msrb.mxu2 %v4290_v55  ;;  %v4301_v48 = vld [vmem:[#allocation10 + $0x8] sm:$0xff] }
 0x1ee   :  { %5605 = vst [vmem:[#allocation118_spill] sm:$0xff] %v4287_v59  ;;  %v1032_v45 = vsel %vm4283_vm15, %v2617_v7, %v1028_v32  ;;  %2618 = vtanh.f32 %v1042_v23  ;;  %1352 = vmatpush.msra.mxu0 %v4295_v61  ;;  %v4342_v23 = vld [vmem:[#allocation10 + $0xd0] sm:$0xff] }
 0x1ef   :  { %5606 = vst [vmem:[#allocation119_spill] sm:$0xff] %v4290_v55  ;;  %1372 = vmatpush.msra.mxu1 %v4298_v62  ;;  %1392 = vmatpush.msrb.mxu2 %v4301_v48  ;;  %v1037_v59 = vsel %vm1034_vm0, %v1036_v36, %v1032_v45  ;;  %v4352_v36 = vld [vmem:[#allocation10 + $0xa0] sm:$0xff]  ;;  %v4357_v45 = vld [vmem:[#allocation10 + $0x88] sm:$0xff] }
 0x1f0   :  { %5607 = vst [vmem:[#allocation120_spill] sm:$0xff] %v4295_v61  ;;  %v1046_v55 = vsub.f32 1.0, %v1037_v59  ;;  %v1050_v7 = vmul.f32 %v1037_v59, %v3995_v39  ;;  %v4317_v59 = vld [vmem:[#allocation10 + $0x148] sm:$0xff]  ;;  %v4322_v39 = vld [vmem:[#allocation10 + $0x130] sm:$0xff] }
 0x1f1   :  { %5608 = vst [vmem:[#allocation121_spill] sm:$0xff] %v4298_v62 }
 0x1f2   :  { %5609 = vst [vmem:[#allocation122_spill] sm:$0xff] %v4301_v48 }
 0x1f3   :  { %5610 = vst [vmem:[#allocation123_spill] sm:$0xff] %v4347_v24 }
 0x1f4   :  { %v2619_v27 = vpop.eup %2618  ;;  %5611 = vst [vmem:[#allocation124_spill] sm:$0xff] %v4352_v36 }
 0x1f5   :  { %v1048_v9 = vmul.f32 %v2619_v27, %v1046_v55  ;;  %v4332_v55 = vld [vmem:[#allocation10 + $0x100] sm:$0xff]  ;;  %5612 = vst [vmem:[#allocation125_spill] sm:$0xff] %v4357_v45  ;;  %v4362_v27 = vld [vmem:[#allocation10 + $0x70] sm:$0xff] }
 0x1f6   :  { %5613 = vst [vmem:[#allocation126_spill] sm:$0xff] %v4362_v27 }
 0x1f7   :  { %v4305_v32 = vadd.f32 %v1050_v7, %v1048_v9  ;;  %v4337_v9 = vld [vmem:[#allocation10 + $0xe8] sm:$0xff]  ;;  %v4367_v7 = vld [vmem:[#allocation10 + $0x58] sm:$0xff] }
 0x1f8   :  { %5614 = vst [vmem:[#allocation127_spill] sm:$0xff] %v4367_v7 }
 0x1f9   :  { %1056 = vst [vmem:[#allocation15 + $0x68] sm:$0xff] %v4305_v32  ;;  %1141 = vmatmul.f32.vlgmr.msrb.gmra.mxu3 %v4305_v32  ;;  %1161 = vmatmul.f32.vlgmr.msrb.gmra.mxu0 %v4305_v32 }
 0x1fa   :  { %1181 = vmatmul.f32.vlgmr.msrb.gmra.mxu1 %v4305_v32  ;;  %1397 = vmatpush.msrb.mxu3 %v4001_v11 }
 0x1fb   :  { %1529 = vmatpush.msrb.mxu0 %v4004_v54  ;;  %1549 = vmatpush.msrb.mxu1 %v4007_v29 }
 0x1fc   :  { %1398 = vmatpush.msrb.mxu3 %v4010_v13 }
 0x1fd   :  { %1530 = vmatpush.msrb.mxu0 %v4013_v18  ;;  %1550 = vmatpush.msrb.mxu1 %v4016_v20 }
 0x1fe   :  { %1399 = vmatpush.msrb.mxu3 %v4317_v59 }
 0x1ff   :  { %1531 = vmatpush.msrb.mxu0 %v4020_v31  ;;  %1551 = vmatpush.msrb.mxu1 %v4023_v50 }
 0x200   :  { %1400 = vmatpush.msrb.mxu3 %v4322_v39 }
 0x201   :  { %1532 = vmatpush.msrb.mxu0 %v4027_v2  ;;  %1552 = vmatpush.msrb.mxu1 %v4030_v56 }
 0x202   :  { %1401 = vmatpush.msrb.mxu3 %v4327_v25 }
 0x203   :  { %1533 = vmatpush.msrb.mxu0 %v4034_v42  ;;  %1553 = vmatpush.msrb.mxu1 %v4037_v17 }
 0x204   :  { %1402 = vmatpush.msrb.mxu3 %v4332_v55 }
 0x205   :  { %1534 = vmatpush.msrb.mxu0 %v4041_v38  ;;  %1554 = vmatpush.msrb.mxu1 %v4044_v63 }
 0x206   :  { %1403 = vmatpush.msrb.mxu3 %v4337_v9 }
 0x207   :  { %1535 = vmatpush.msrb.mxu0 %v4048_v0  ;;  %1555 = vmatpush.msrb.mxu1 %v4051_v1 }
 0x208   :  { %1404 = vmatpush.msrb.mxu3 %v4342_v23 }
 0x209   :  { %1536 = vmatpush.msrb.mxu0 %v4055_v41  ;;  %1556 = vmatpush.msrb.mxu1 %v4058_v4 }
 0x20a   :  { %1405 = vmatpush.msrb.mxu3 %v4347_v24 }
 0x20b   :  { %1537 = vmatpush.msrb.mxu0 %v4062_v34  ;;  %1557 = vmatpush.msrb.mxu1 %v4065_v21 }
 0x20c   :  { %1406 = vmatpush.msrb.mxu3 %v4352_v36 }
 0x20d   :  { %1538 = vmatpush.msrb.mxu0 %v4069_v6  ;;  %1558 = vmatpush.msrb.mxu1 %v4072_v43 }
 0x20e   :  { %1407 = vmatpush.msrb.mxu3 %v4357_v45  ;;  %v4372_v45 = vld [vmem:[#allocation10 + $0x40] sm:$0xff] }
 0x20f   :  { %1539 = vmatpush.msrb.mxu0 %v4076_v14  ;;  %1559 = vmatpush.msrb.mxu1 %v4079_v12  ;;  %5615 = vst [vmem:[#allocation128_spill] sm:$0xff] %v4372_v45  ;;  %v5622_v12 = vld [vmem:[#allocation88_spill] sm:$0xff]  ;;  %v5623_v14 = vld [vmem:[#allocation89_spill] sm:$0xff] }
 0x210   :  { %1408 = vmatpush.msrb.mxu3 %v4362_v27  ;;  %v4377_v27 = vld [vmem:[#allocation10 + $0x28] sm:$0xff] }
 0x211   :  { %1540 = vmatpush.msrb.mxu0 %v4083_v16  ;;  %1560 = vmatpush.msrb.mxu1 %v4086_v8  ;;  %5616 = vst [vmem:[#allocation129_spill] sm:$0xff] %v4377_v27  ;;  %v5620_v8 = vld [vmem:[#allocation29_spill] sm:$0xff] }
 0x212   :  { %1409 = vmatpush.msrb.mxu3 %v4367_v7  ;;  %v4382_v7 = vld [vmem:[#allocation10 + $0x10] sm:$0xff]  ;;  %v5621_v16 = vld [vmem:[#allocation25_spill] sm:$0xff] }
 0x213   :  { %1541 = vmatpush.msrb.mxu0 %v4090_v22  ;;  %1561 = vmatpush.msrb.mxu1 %v4093_v26  ;;  %5617 = vst [vmem:[#allocation130_spill] sm:$0xff] %v4382_v7  ;;  %v5618_v26 = vld [vmem:[#allocation42_spill] sm:$0xff] }
 0x214   :  { %1410 = vmatpush.msrb.mxu3 %v4372_v45 }
 0x215   :  { %1542 = vmatpush.msrb.mxu0 %v4097_v35  ;;  %1562 = vmatpush.msrb.mxu1 %v4100_v19  ;;  %v5619_v19 = vld [vmem:[#allocation35_spill] sm:$0xff] }
 0x216   :  { %1411 = vmatpush.msrb.mxu3 %v4377_v27  ;;  %v212_v22 = vadd.f32 %v5619_v19, %v5618_v26  ;;  %v253_v27 = vadd.f32 %v5621_v16, %v5620_v8 }
 0x217   :  { %1543 = vmatpush.msrb.mxu0 %v4104_v46  ;;  %1563 = vmatpush.msrb.mxu1 %v4107_v10 }
 0x218   :  { %1412 = vmatpush.msrb.mxu3 %v4382_v7 }
 0x219   :  { %1544 = vmatpush.msrb.mxu0 %v4111_v5  ;;  %1564 = vmatpush.msrb.mxu1 %v4114_v51 }
 0x24c   :  { %v1082_v45 = vpop.f32.mrf.mxu0  ;;  %v1102_v35 = vpop.f32.mrf.mxu1 }
 0x24d   :  { %v1185_v46 = vadd.f32 %v1082_v45, %v5622_v12  ;;  %v1186_v10 = vadd.f32 %v1102_v35, %v5623_v14 }
 0x24f   :  { %v1191_v43 = vadd.f32 %v1185_v46, %v212_v22  ;;  %v1231_v6 = vadd.f32 %v1186_v10, %v253_v27 }
 0x251   :  { %v2539_v36 = vmul.f32 -1.442695, %v1191_v43  ;;  %v2541_v7 = vmul.f32 -1.442695, %v1231_v6 }
 0x253   :  { %2620 = vpow2.f32 %v2539_v36  ;;  %v1122_v6 = vpop.f32.mrf.mxu2 }
 0x254   :  { %2622 = vpow2.f32 %v2541_v7 }
 0x259   :  { %v2621_v5 = vpop.eup %2620 }
 0x25a   :  { %v2623_v51 = vpop.eup %2622  ;;  %v1199_v21 = vadd.f32 1.0, %v2621_v5  ;;  %v1187_v5 = vadd.f32 %v1122_v6, %v3895_v52 }
 0x25b   :  { %v1239_v34 = vadd.f32 1.0, %v2623_v51 }
 0x25c   :  { %2624 = vrcp.f32 %v1199_v21  ;;  %v1212_v12 = vand.u32 2147483648, %v1199_v21  ;;  %v1210_v22 = vand.u32 2147483647, %v1199_v21  ;;  %vm1206_vm2 = vweird.f32 %v1199_v21 }
 0x25d   :  { %2626 = vrcp.f32 %v1239_v34  ;;  %v1252_v7 = vand.u32 2147483648, %v1239_v34  ;;  %vm1246_vm6 = vweird.f32 %v1239_v34 }
 0x25e   :  { %v1213_v10 = vor.u32 1.1754944e-38, %v1212_v12  ;;  %vm1211_vm4 = vcmp.eq.f32.partialorder %v1210_v22, 8.507059e+37 }
 0x25f   :  { %v1253_v4 = vor.u32 1.1754944e-38, %v1252_v7  ;;  %v5629_v7 = vld [vmem:[#allocation62_spill] sm:$0xff] }
 0x262   :  { %v2625_v26 = vpop.eup %2624 }
 0x263   :  { %v2627_v19 = vpop.eup %2626  ;;  %v1202_v24 = vmul.f32 %v2625_v26, %v1199_v21  ;;  %vm1207_vm1 = vweird.f32 %v2625_v26 }
 0x264   :  { %v1242_v16 = vmul.f32 %v2627_v19, %v1239_v34  ;;  %vm1208_vm3 = vmor %vm1206_vm2, %vm1207_vm1  ;;  %vm1247_vm5 = vweird.f32 %v2627_v19 }
 0x265   :  { %v1203_v8 = vsub.f32 1.0, %v1202_v24  ;;  %vm1248_vm7 = vmor %vm1246_vm6, %vm1247_vm5 }
 0x266   :  { %v1243_v45 = vsub.f32 1.0, %v1242_v16  ;;  %v1250_v16 = vand.u32 2147483647, %v1239_v34 }
 0x267   :  { %v1204_v35 = vmul.f32 %v2625_v26, %v1203_v8  ;;  %v5624_v8 = vld [vmem:[#allocation34_spill] sm:$0xff] }
 0x268   :  { %v1244_v43 = vmul.f32 %v2627_v19, %v1243_v45  ;;  %vm1251_vm8 = vcmp.eq.f32.partialorder %v1250_v16, 8.507059e+37  ;;  %v5630_v16 = vld [vmem:[#allocation61_spill] sm:$0xff] }
 0x269   :  { %v1205_v46 = vadd.f32 %v2625_v26, %v1204_v35 }
 0x26a   :  { %v1245_v27 = vadd.f32 %v2627_v19, %v1244_v43 }
 0x26b   :  { %v1209_v51 = vsel %vm1208_vm3, %v2625_v26, %v1205_v46  ;;  %v5625_v46 = vld [vmem:[#allocation98_spill] sm:$0xff] }
 0x26c   :  { %v1214_v36 = vsel %vm1211_vm4, %v1213_v10, %v1209_v51  ;;  %v1249_v45 = vsel %vm1248_vm7, %v2627_v19, %v1245_v27  ;;  %v5628_v27 = vld [vmem:[#allocation59_spill] sm:$0xff] }
 0x26d   :  { %v1271_v24 = vmul.f32 %v1214_v36, %v1187_v5  ;;  %v1254_v21 = vsel %vm1251_vm8, %v1253_v4, %v1249_v45  ;;  %v5627_v36 = vld [vmem:[#allocation60_spill] sm:$0xff] }
 0x26e   :  { %v1277_v12 = vsub.f32 1.0, %v1254_v21  ;;  %v1281_v43 = vmul.f32 %v1254_v21, %v4128_v40  ;;  %v5626_v40 = vld [vmem:[#allocation77_spill] sm:$0xff]  ;;  %v5631_v45 = vld [vmem:[#allocation68_spill] sm:$0xff]  ;;  %v5632_v21 = vld [vmem:[#allocation71_spill] sm:$0xff] }
 0x26f   :  { %v1273_v14 = vadd.f32 %v1271_v24, %v5624_v8 }
 0x271   :  { %2628 = vtanh.f32 %v1273_v14 }
 0x276   :  { %v1162_v35 = vpop.f32.mrf.mxu0 }
 0x277   :  { %v2629_v6 = vpop.eup %2628  ;;  %v1189_v26 = vadd.f32 %v1162_v35, %v3935_v60  ;;  %v5634_v35 = vld [vmem:[#allocation52_spill] sm:$0xff] }
 0x278   :  { %v1279_v22 = vmul.f32 %v2629_v6, %v1277_v12  ;;  %v5633_v12 = vld [vmem:[#allocation46_spill] sm:$0xff]  ;;  %v5635_v6 = vld [vmem:[#allocation56_spill] sm:$0xff] }
 0x279   :  { %v1232_v10 = vadd.f32 %v1189_v26, %v5625_v46  ;;  %v5636_v26 = vld [vmem:[#allocation64_spill] sm:$0xff] }
 0x27a   :  { %v4398_v5 = vadd.f32 %v1281_v43, %v1279_v22  ;;  %v5637_v22 = vld [vmem:[#allocation66_spill] sm:$0xff]  ;;  %v5638_v43 = vld [vmem:[#allocation69_spill] sm:$0xff] }
 0x27b   :  { %v2542_v34 = vmul.f32 -1.442695, %v1232_v10  ;;  %v5639_v10 = vld [vmem:[#allocation73_spill] sm:$0xff] }
 0x27c   :  { %1286 = vst [vmem:[#allocation15 + $0x20] sm:$0xff] %v4398_v5  ;;  %1313 = vmatmul.f32.vlgmr.msra.gmra.mxu2 %v4398_v5  ;;  %1333 = vmatmul.f32.vlgmr.msra.gmra.mxu3 %v4398_v5  ;;  %v1142_v4 = vpop.f32.mrf.mxu3 }
 0x27d   :  { %2630 = vpow2.f32 %v2542_v34  ;;  %1353 = vmatmul.f32.vlgmr.msra.gmra.mxu0 %v4398_v5  ;;  %v1188_v14 = vadd.f32 %v1142_v4, %v3891_v49  ;;  %1569 = vmatpush.msra.mxu2 %v4135_v30  ;;  %v5640_v4 = vld [vmem:[#allocation78_spill] sm:$0xff] }
 0x27e   :  { %1589 = vmatpush.msra.mxu3 %v4138_v57  ;;  %1609 = vmatpush.msra.mxu0 %v4141_v47 }
 0x27f   :  { %v1192_v19 = vadd.f32 %v1188_v14, %v5626_v40  ;;  %1570 = vmatpush.msra.mxu2 %v4145_v58  ;;  %v5641_v14 = vld [vmem:[#allocation28_spill] sm:$0xff]  ;;  %v5642_v40 = vld [vmem:[#allocation27_spill] sm:$0xff] }
 0x280   :  { %1590 = vmatpush.msra.mxu3 %v4148_v3  ;;  %1610 = vmatpush.msra.mxu0 %v4151_v28 }
 0x281   :  { %v2540_v51 = vmul.f32 -1.442695, %v1192_v19  ;;  %1571 = vmatpush.msra.mxu2 %v5627_v36  ;;  %v5643_v19 = vld [vmem:[#allocation38_spill] sm:$0xff] }
 0x282   :  { %1591 = vmatpush.msra.mxu3 %v5628_v27  ;;  %1611 = vmatpush.msra.mxu0 %v5629_v7 }
 0x283   :  { %v2631_v24 = vpop.eup %2630  ;;  %2632 = vpow2.f32 %v2540_v51  ;;  %1572 = vmatpush.msra.mxu2 %v5630_v16  ;;  %v5644_v51 = vld [vmem:[#allocation82_spill] sm:$0xff] }
 0x284   :  { %v4416_v8 = vadd.f32 1.0, %v2631_v24  ;;  %1592 = vmatpush.msra.mxu3 %v5631_v45  ;;  %1612 = vmatpush.msra.mxu0 %v5632_v21 }
 0x285   :  { %1573 = vmatpush.msra.mxu2 %v5633_v12 }
 0x286   :  { %1593 = vmatpush.msra.mxu3 %v5634_v35  ;;  %1613 = vmatpush.msra.mxu0 %v5635_v6  ;;  %2634 = vrcp.f32 %v4416_v8  ;;  %v5652_v6 = vld [vmem:[#allocation107_spill] sm:$0xff]  ;;  %v5654_v35 = vld [vmem:[#allocation109_spill] sm:$0xff]  ;;  %vm1261_vm14 = vweird.f32 %v4416_v8 }
 0x287   :  { %1574 = vmatpush.msra.mxu2 %v5636_v26  ;;  %v5645_v26 = vld [vmem:[#allocation100_spill] sm:$0xff] }
 0x288   :  { %1594 = vmatpush.msra.mxu3 %v5637_v22  ;;  %1614 = vmatpush.msra.mxu0 %v5638_v43  ;;  %v5646_v22 = vld [vmem:[#allocation101_spill] sm:$0xff]  ;;  %v5647_v43 = vld [vmem:[#allocation102_spill] sm:$0xff] }
 0x289   :  { %v2633_v46 = vpop.eup %2632  ;;  %1575 = vmatpush.msra.mxu2 %v5639_v10  ;;  %v5648_v10 = vld [vmem:[#allocation103_spill] sm:$0xff] }
 0x28a   :  { %v1200_v34 = vadd.f32 1.0, %v2633_v46  ;;  %1595 = vmatpush.msra.mxu3 %v5640_v4  ;;  %1615 = vmatpush.msra.mxu0 %v5641_v14  ;;  %v5649_v4 = vld [vmem:[#allocation104_spill] sm:$0xff]  ;;  %v5650_v14 = vld [vmem:[#allocation105_spill] sm:$0xff] }
 0x28b   :  { %1576 = vmatpush.msra.mxu2 %v5642_v40  ;;  %v5651_v40 = vld [vmem:[#allocation106_spill] sm:$0xff] }
 0x28c   :  { %2636 = vrcp.f32 %v1200_v34  ;;  %1596 = vmatpush.msra.mxu3 %v5643_v19  ;;  %1616 = vmatpush.msra.mxu0 %v5644_v51  ;;  %v2635_v24 = vpop.eup %2634  ;;  %v5653_v51 = vld [vmem:[#allocation108_spill] sm:$0xff]  ;;  %vm1221_vm10 = vweird.f32 %v1200_v34 }
 0x28d   :  { %1577 = vmatpush.msra.mxu2 %v5645_v26  ;;  %v1257_v46 = vmul.f32 %v2635_v24, %v4416_v8  ;;  %vm1262_vm13 = vweird.f32 %v2635_v24 }
 0x28e   :  { %1597 = vmatpush.msra.mxu3 %v5646_v22  ;;  %1617 = vmatpush.msra.mxu0 %v5647_v43  ;;  %v5655_v43 = vld [vmem:[#allocation110_spill] sm:$0xff]  ;;  %vm1263_vm15 = vmor %vm1261_vm14, %vm1262_vm13 }
 0x28f   :  { %1578 = vmatpush.msra.mxu2 %v5648_v10  ;;  %v1258_v22 = vsub.f32 1.0, %v1257_v46  ;;  %v5656_v46 = vld [vmem:[#allocation115_spill] sm:$0xff] }
 0x290   :  { %1598 = vmatpush.msra.mxu3 %v5649_v4  ;;  %1618 = vmatpush.msra.mxu0 %v5650_v14  ;;  %v1227_v4 = vand.u32 2147483648, %v1200_v34 }
 0x291   :  { %1579 = vmatpush.msra.mxu2 %v5651_v40 }
 0x292   :  { %v2637_v19 = vpop.eup %2636  ;;  %1599 = vmatpush.msra.mxu3 %v5652_v6  ;;  %1619 = vmatpush.msra.mxu0 %v5653_v51  ;;  %v1225_v6 = vand.u32 2147483647, %v1200_v34  ;;  %v1259_v51 = vmul.f32 %v2635_v24, %v1258_v22 }
 0x293   :  { %v1217_v26 = vmul.f32 %v2637_v19, %v1200_v34  ;;  %1580 = vmatpush.msra.mxu2 %v5654_v35  ;;  %vm1222_vm9 = vweird.f32 %v2637_v19  ;;  %v1182_v35 = vpop.f32.mrf.mxu1  ;;  %v1267_v34 = vand.u32 2147483648, %v4416_v8 }
 0x294   :  { %1600 = vmatpush.msra.mxu3 %v5655_v43  ;;  %1620 = vmatpush.msra.mxu0 %v4253_v33  ;;  %v5657_v43 = vld [vmem:[#allocation116_spill] sm:$0xff]  ;;  %vm1223_vm11 = vmor %vm1221_vm10, %vm1222_vm9  ;;  %vm1226_vm12 = vcmp.eq.f32.partialorder %v1225_v6, 8.507059e+37 }
 0x295   :  { %v1218_v10 = vsub.f32 1.0, %v1217_v26  ;;  %1581 = vmatpush.msra.mxu2 %v4257_v44  ;;  %v5658_v26 = vld [vmem:[#allocation117_spill] sm:$0xff]  ;;  %v1228_v44 = vor.u32 1.1754944e-38, %v1227_v4 }
 0x296   :  { %1601 = vmatpush.msra.mxu3 %v4260_v15  ;;  %1621 = vmatpush.msra.mxu0 %v4263_v53  ;;  %v5659_v15 = vld [vmem:[#allocation118_spill] sm:$0xff]  ;;  %v5660_v53 = vld [vmem:[#allocation119_spill] sm:$0xff] }
 0x297   :  { %v1219_v40 = vmul.f32 %v2637_v19, %v1218_v10  ;;  %1582 = vmatpush.msra.mxu2 %v4267_v37  ;;  %v5661_v10 = vld [vmem:[#allocation30_spill] sm:$0xff] }
 0x298   :  { %1602 = vmatpush.msra.mxu3 %v5656_v46  ;;  %1622 = vmatpush.msra.mxu0 %v5657_v43  ;;  %v1190_v14 = vadd.f32 %v1182_v35, %v5661_v10  ;;  %v1260_v46 = vadd.f32 %v2635_v24, %v1259_v51  ;;  %v5662_v35 = vld [vmem:[#allocation99_spill] sm:$0xff] }
 0x299   :  { %v1220_v33 = vadd.f32 %v2637_v19, %v1219_v40  ;;  %1583 = vmatpush.msra.mxu2 %v5658_v26  ;;  %v1265_v40 = vand.u32 2147483647, %v4416_v8  ;;  %v5683_v8 = vld [vmem:[#allocation54_spill] sm:$0xff] }
 0x29a   :  { %1603 = vmatpush.msra.mxu3 %v5659_v15  ;;  %1623 = vmatpush.msra.mxu0 %v5660_v53  ;;  %v1264_v6 = vsel %vm1263_vm15, %v2635_v24, %v1260_v46  ;;  %v5685_v24 = vld [vmem:[#allocation130_spill] sm:$0xff] }
 0x29b   :  { %v1224_v12 = vsel %vm1223_vm11, %v2637_v19, %v1220_v33  ;;  %1584 = vmatpush.msra.mxu2 %v4295_v61  ;;  %v1268_v19 = vor.u32 1.1754944e-38, %v1267_v34  ;;  %vm1266_vm0 = vcmp.eq.f32.partialorder %v1265_v40, 8.507059e+37  ;;  %v5686_v46 = vld [vmem:[#allocation58_spill] sm:$0xff]  ;;  %v5688_v40 = vld [vmem:[#allocation88_spill] sm:$0xff] }
 0x29c   :  { %v1229_v22 = vsel %vm1226_vm12, %v1228_v44, %v1224_v12  ;;  %1604 = vmatpush.msra.mxu3 %v4298_v62  ;;  %1624 = vmatpush.msra.mxu0 %v4301_v48 }
 0x29d   :  { %v1272_v4 = vmul.f32 %v1229_v22, %v1190_v14  ;;  %v1269_v44 = vsel %vm1266_vm0, %v1268_v19, %v1264_v6  ;;  %v5684_v14 = vld [vmem:[#allocation53_spill] sm:$0xff]  ;;  %v5690_v19 = vld [vmem:[#allocation67_spill] sm:$0xff] }
 0x29e   :  { %v1278_v12 = vsub.f32 1.0, %v1269_v44  ;;  %v1282_v48 = vmul.f32 %v1269_v44, %v4305_v32  ;;  %v5682_v32 = vld [vmem:[#allocation129_spill] sm:$0xff] }
 0x29f   :  { %v1274_v33 = vadd.f32 %v1272_v4, %v5662_v35  ;;  %v5687_v22 = vld [vmem:[#allocation57_spill] sm:$0xff] }
 0x2a1   :  { %2638 = vtanh.f32 %v1274_v33  ;;  %v5689_v33 = vld [vmem:[#allocation89_spill] sm:$0xff] }
 0x2a7   :  { %v2639_v51 = vpop.eup %2638 }
 0x2a8   :  { %v1280_v62 = vmul.f32 %v2639_v51, %v1278_v12  ;;  %v5691_v12 = vld [vmem:[#allocation45_spill] sm:$0xff] }
 0x2aa   :  { %v4464_v61 = vadd.f32 %v1282_v48, %v1280_v62  ;;  %v5680_v48 = vld [vmem:[#allocation50_spill] sm:$0xff]  ;;  %v5681_v62 = vld [vmem:[#allocation49_spill] sm:$0xff] }
 0x2ac   :  { %1288 = vst [vmem:[#allocation15 + $0x58] sm:$0xff] %v4464_v61  ;;  %1373 = vmatmul.f32.vlgmr.msra.gmra.mxu1 %v4464_v61  ;;  %1393 = vmatmul.f32.vlgmr.msrb.gmra.mxu2 %v4464_v61 }
 0x2ad   :  { %1413 = vmatmul.f32.vlgmr.msrb.gmra.mxu3 %v4464_v61  ;;  %1629 = vmatpush.msra.mxu1 %v4001_v11  ;;  %v5663_v11 = vld [vmem:[#allocation33_spill] sm:$0xff] }
 0x2ae   :  { %1759 = vmatpush.msrb.mxu2 %v4004_v54  ;;  %1779 = vmatpush.msrb.mxu3 %v4007_v29  ;;  %v5664_v54 = vld [vmem:[#allocation123_spill] sm:$0xff]  ;;  %v5665_v29 = vld [vmem:[#allocation32_spill] sm:$0xff] }
 0x2af   :  { %1630 = vmatpush.msra.mxu1 %v4010_v13  ;;  %v5666_v13 = vld [vmem:[#allocation31_spill] sm:$0xff] }
 0x2b0   :  { %1760 = vmatpush.msrb.mxu2 %v4013_v18  ;;  %1780 = vmatpush.msrb.mxu3 %v4016_v20  ;;  %v5667_v18 = vld [vmem:[#allocation124_spill] sm:$0xff]  ;;  %v5668_v20 = vld [vmem:[#allocation37_spill] sm:$0xff] }
 0x2b1   :  { %1631 = vmatpush.msra.mxu1 %v4317_v59 }
 0x2b2   :  { %1761 = vmatpush.msrb.mxu2 %v4020_v31  ;;  %1781 = vmatpush.msrb.mxu3 %v4023_v50  ;;  %v5669_v31 = vld [vmem:[#allocation36_spill] sm:$0xff]  ;;  %v5670_v50 = vld [vmem:[#allocation125_spill] sm:$0xff] }
 0x2b3   :  { %1632 = vmatpush.msra.mxu1 %v4322_v39 }
 0x2b4   :  { %1762 = vmatpush.msrb.mxu2 %v4027_v2  ;;  %1782 = vmatpush.msrb.mxu3 %v4030_v56  ;;  %v5671_v2 = vld [vmem:[#allocation40_spill] sm:$0xff]  ;;  %v5672_v56 = vld [vmem:[#allocation39_spill] sm:$0xff] }
 0x2b5   :  { %1633 = vmatpush.msra.mxu1 %v4327_v25 }
 0x2b6   :  { %1763 = vmatpush.msrb.mxu2 %v4034_v42  ;;  %1783 = vmatpush.msrb.mxu3 %v4037_v17  ;;  %v5673_v42 = vld [vmem:[#allocation126_spill] sm:$0xff]  ;;  %v5674_v17 = vld [vmem:[#allocation44_spill] sm:$0xff] }
 0x2b7   :  { %1634 = vmatpush.msra.mxu1 %v4332_v55 }
 0x2b8   :  { %1764 = vmatpush.msrb.mxu2 %v4041_v38  ;;  %1784 = vmatpush.msrb.mxu3 %v4044_v63  ;;  %v5675_v38 = vld [vmem:[#allocation43_spill] sm:$0xff] }
 0x2b9   :  { %1635 = vmatpush.msra.mxu1 %v4337_v9  ;;  %v5676_v63 = vld [vmem:[#allocation127_spill] sm:$0xff] }
 0x2ba   :  { %1765 = vmatpush.msrb.mxu2 %v4048_v0  ;;  %1785 = vmatpush.msrb.mxu3 %v4051_v1  ;;  %v5677_v0 = vld [vmem:[#allocation48_spill] sm:$0xff]  ;;  %v5678_v1 = vld [vmem:[#allocation47_spill] sm:$0xff] }
 0x2bb   :  { %1636 = vmatpush.msra.mxu1 %v4342_v23 }
 0x2bc   :  { %1766 = vmatpush.msrb.mxu2 %v4055_v41  ;;  %1786 = vmatpush.msrb.mxu3 %v5663_v11  ;;  %v5679_v41 = vld [vmem:[#allocation128_spill] sm:$0xff] }
 0x2bd   :  { %1637 = vmatpush.msra.mxu1 %v5664_v54 }
 0x2be   :  { %1767 = vmatpush.msrb.mxu2 %v5665_v29  ;;  %1787 = vmatpush.msrb.mxu3 %v5666_v13 }
 0x2bf   :  { %1638 = vmatpush.msra.mxu1 %v5667_v18 }
 0x2c0   :  { %1768 = vmatpush.msrb.mxu2 %v5668_v20  ;;  %1788 = vmatpush.msrb.mxu3 %v5669_v31 }
 0x2c1   :  { %1639 = vmatpush.msra.mxu1 %v5670_v50 }
 0x2c2   :  { %1769 = vmatpush.msrb.mxu2 %v5671_v2  ;;  %1789 = vmatpush.msrb.mxu3 %v5672_v56 }
 0x2c3   :  { %1640 = vmatpush.msra.mxu1 %v5673_v42 }
 0x2c4   :  { %1770 = vmatpush.msrb.mxu2 %v5674_v17  ;;  %1790 = vmatpush.msrb.mxu3 %v5675_v38 }
 0x2c5   :  { %1641 = vmatpush.msra.mxu1 %v5676_v63 }
 0x2c6   :  { %1771 = vmatpush.msrb.mxu2 %v5677_v0  ;;  %1791 = vmatpush.msrb.mxu3 %v5678_v1 }
 0x2c7   :  { %1642 = vmatpush.msra.mxu1 %v5679_v41 }
 0x2c8   :  { %1772 = vmatpush.msrb.mxu2 %v5680_v48  ;;  %1792 = vmatpush.msrb.mxu3 %v5681_v62 }
 0x2c9   :  { %1643 = vmatpush.msra.mxu1 %v5682_v32 }
 0x2ca   :  { %1773 = vmatpush.msrb.mxu2 %v5683_v8  ;;  %1793 = vmatpush.msrb.mxu3 %v5684_v14 }
 0x2cb   :  { %1644 = vmatpush.msra.mxu1 %v5685_v24 }
 0x2cc   :  { %1774 = vmatpush.msrb.mxu2 %v5686_v46  ;;  %1794 = vmatpush.msrb.mxu3 %v5687_v22 }
 0x2fa   :  { %v1354_v46 = vpop.f32.mrf.mxu0 }
 0x2ff   :  { %v1314_v34 = vpop.f32.mrf.mxu2  ;;  %v1334_v4 = vpop.f32.mrf.mxu3 }
 0x300   :  { %v1417_v35 = vadd.f32 %v1314_v34, %v5688_v40  ;;  %v1418_v6 = vadd.f32 %v1334_v4, %v5689_v33 }
 0x302   :  { %v1423_v44 = vadd.f32 %v1417_v35, %v5690_v19  ;;  %v1463_v51 = vadd.f32 %v1418_v6, %v5691_v12  ;;  %v1419_v35 = vadd.f32 %v1354_v46, %v3895_v52 }
 0x304   :  { %v2543_v11 = vmul.f32 -1.442695, %v1423_v44  ;;  %v2545_v29 = vmul.f32 -1.442695, %v1463_v51 }
 0x306   :  { %2640 = vpow2.f32 %v2543_v11 }
 0x307   :  { %2642 = vpow2.f32 %v2545_v29  ;;  %v5692_v29 = vld [vmem:[#allocation70_spill] sm:$0xff] }
 0x30c   :  { %v2641_v13 = vpop.eup %2640 }
 0x30d   :  { %v2643_v20 = vpop.eup %2642  ;;  %v1431_v31 = vadd.f32 1.0, %v2641_v13 }
 0x30e   :  { %v1471_v2 = vadd.f32 1.0, %v2643_v20 }
 0x30f   :  { %2644 = vrcp.f32 %v1431_v31  ;;  %v1444_v48 = vand.u32 2147483648, %v1431_v31  ;;  %v1442_v14 = vand.u32 2147483647, %v1431_v31  ;;  %vm1438_vm2 = vweird.f32 %v1431_v31 }
 0x310   :  { %2646 = vrcp.f32 %v1471_v2  ;;  %v1484_v51 = vand.u32 2147483648, %v1471_v2  ;;  %vm1478_vm6 = vweird.f32 %v1471_v2  ;;  %v1482_v11 = vand.u32 2147483647, %v1471_v2 }
 0x311   :  { %v1445_v4 = vor.u32 1.1754944e-38, %v1444_v48  ;;  %vm1443_vm4 = vcmp.eq.f32.partialorder %v1442_v14, 8.507059e+37  ;;  %v5693_v14 = vld [vmem:[#allocation76_spill] sm:$0xff] }
 0x312   :  { %vm1483_vm8 = vcmp.eq.f32.partialorder %v1482_v11, 8.507059e+37 }
 0x315   :  { %v2645_v56 = vpop.eup %2644 }
 0x316   :  { %v2647_v17 = vpop.eup %2646  ;;  %v1434_v38 = vmul.f32 %v2645_v56, %v1431_v31  ;;  %vm1439_vm1 = vweird.f32 %v2645_v56 }
 0x317   :  { %v1474_v0 = vmul.f32 %v2647_v17, %v1471_v2  ;;  %vm1440_vm3 = vmor %vm1438_vm2, %vm1439_vm1  ;;  %vm1479_vm5 = vweird.f32 %v2647_v17 }
 0x318   :  { %v1435_v1 = vsub.f32 1.0, %v1434_v38  ;;  %vm1480_vm7 = vmor %vm1478_vm6, %vm1479_vm5  ;;  %v1485_v38 = vor.u32 1.1754944e-38, %v1484_v51  ;;  %v5706_v51 = vld [vmem:[#allocation82_spill] sm:$0xff] }
 0x319   :  { %v1475_v62 = vsub.f32 1.0, %v1474_v0 }
 0x31a   :  { %v1436_v8 = vmul.f32 %v2645_v56, %v1435_v1 }
 0x31b   :  { %v1476_v22 = vmul.f32 %v2647_v17, %v1475_v62 }
 0x31c   :  { %v1437_v34 = vadd.f32 %v2645_v56, %v1436_v8 }
 0x31d   :  { %v1477_v44 = vadd.f32 %v2647_v17, %v1476_v22 }
 0x31e   :  { %v1441_v6 = vsel %vm1440_vm3, %v2645_v56, %v1437_v34 }
 0x31f   :  { %v1446_v19 = vsel %vm1443_vm4, %v1445_v4, %v1441_v6  ;;  %v1481_v20 = vsel %vm1480_vm7, %v2647_v17, %v1477_v44 }
 0x320   :  { %v1503_v12 = vmul.f32 %v1446_v19, %v1419_v35  ;;  %v1486_v31 = vsel %vm1483_vm8, %v1485_v38, %v1481_v20  ;;  %v5704_v19 = vld [vmem:[#allocation27_spill] sm:$0xff]  ;;  %v5709_v20 = vld [vmem:[#allocation102_spill] sm:$0xff] }
 0x321   :  { %v1509_v1 = vsub.f32 1.0, %v1486_v31  ;;  %v1513_v8 = vmul.f32 %v1486_v31, %v4398_v5  ;;  %v5694_v5 = vld [vmem:[#allocation96_spill] sm:$0xff]  ;;  %v5710_v31 = vld [vmem:[#allocation103_spill] sm:$0xff] }
 0x322   :  { %v1505_v13 = vadd.f32 %v1503_v12, %v5692_v29  ;;  %v5705_v12 = vld [vmem:[#allocation38_spill] sm:$0xff]  ;;  %v5707_v29 = vld [vmem:[#allocation100_spill] sm:$0xff] }
 0x324   :  { %2648 = vtanh.f32 %v1505_v13  ;;  %v5708_v13 = vld [vmem:[#allocation101_spill] sm:$0xff] }
 0x329   :  { %v1374_v0 = vpop.f32.mrf.mxu1 }
 0x32a   :  { %v2649_v48 = vpop.eup %2648  ;;  %v1420_v56 = vadd.f32 %v1374_v0, %v3891_v49 }
 0x32b   :  { %v1511_v62 = vmul.f32 %v2649_v48, %v1509_v1  ;;  %v5711_v1 = vld [vmem:[#allocation104_spill] sm:$0xff]  ;;  %v5712_v48 = vld [vmem:[#allocation105_spill] sm:$0xff] }
 0x32c   :  { %v1424_v46 = vadd.f32 %v1420_v56, %v5693_v14 }
 0x32d   :  { %v4527_v22 = vadd.f32 %v1513_v8, %v1511_v62  ;;  %v5713_v8 = vld [vmem:[#allocation106_spill] sm:$0xff] }
 0x32e   :  { %v2544_v2 = vmul.f32 -1.442695, %v1424_v46 }
 0x32f   :  { %1518 = vst [vmem:[#allocation15 + $0x30] sm:$0xff] %v4527_v22  ;;  %1545 = vmatmul.f32.vlgmr.msrb.gmra.mxu0 %v4527_v22  ;;  %1565 = vmatmul.f32.vlgmr.msrb.gmra.mxu1 %v4527_v22  ;;  %v1394_v17 = vpop.f32.mrf.mxu2 }
 0x330   :  { %2650 = vpow2.f32 %v2544_v2  ;;  %1585 = vmatmul.f32.vlgmr.msra.gmra.mxu2 %v4527_v22  ;;  %v1421_v34 = vadd.f32 %v1394_v17, %v3935_v60  ;;  %1799 = vmatpush.msrb.mxu0 %v4135_v30  ;;  %v1414_v46 = vpop.f32.mrf.mxu3  ;;  %v5714_v2 = vld [vmem:[#allocation107_spill] sm:$0xff]  ;;  %v5715_v17 = vld [vmem:[#allocation108_spill] sm:$0xff] }
 0x331   :  { %1819 = vmatpush.msrb.mxu1 %v4138_v57  ;;  %1839 = vmatpush.msra.mxu2 %v4141_v47  ;;  %v5695_v47 = vld [vmem:[#allocation46_spill] sm:$0xff] }
 0x332   :  { %v1464_v4 = vadd.f32 %v1421_v34, %v5694_v5  ;;  %1800 = vmatpush.msrb.mxu0 %v4145_v58  ;;  %v5696_v58 = vld [vmem:[#allocation52_spill] sm:$0xff] }
 0x333   :  { %1820 = vmatpush.msrb.mxu1 %v4148_v3  ;;  %1840 = vmatpush.msra.mxu2 %v4151_v28  ;;  %v5697_v3 = vld [vmem:[#allocation56_spill] sm:$0xff] }
 0x334   :  { %v2546_v35 = vmul.f32 -1.442695, %v1464_v4  ;;  %1801 = vmatpush.msrb.mxu0 %v5627_v36  ;;  %v5698_v28 = vld [vmem:[#allocation64_spill] sm:$0xff]  ;;  %v5699_v36 = vld [vmem:[#allocation66_spill] sm:$0xff]  ;;  %v5716_v4 = vld [vmem:[#allocation109_spill] sm:$0xff] }
 0x335   :  { %1821 = vmatpush.msrb.mxu1 %v5628_v27  ;;  %1841 = vmatpush.msra.mxu2 %v5629_v7  ;;  %v5700_v27 = vld [vmem:[#allocation69_spill] sm:$0xff] }
 0x336   :  { %v2651_v30 = vpop.eup %2650  ;;  %2652 = vpow2.f32 %v2546_v35  ;;  %1802 = vmatpush.msrb.mxu0 %v5630_v16  ;;  %v5701_v16 = vld [vmem:[#allocation73_spill] sm:$0xff] }
 0x337   :  { %v1432_v57 = vadd.f32 1.0, %v2651_v30  ;;  %1822 = vmatpush.msrb.mxu1 %v5631_v45  ;;  %1842 = vmatpush.msra.mxu2 %v5632_v21  ;;  %v5702_v45 = vld [vmem:[#allocation78_spill] sm:$0xff]  ;;  %v5703_v21 = vld [vmem:[#allocation28_spill] sm:$0xff] }
 0x338   :  { %1803 = vmatpush.msrb.mxu0 %v5695_v47  ;;  %v5717_v30 = vld [vmem:[#allocation110_spill] sm:$0xff]  ;;  %v5718_v47 = vld [vmem:[#allocation111_spill] sm:$0xff] }
 0x339   :  { %2654 = vrcp.f32 %v1432_v57  ;;  %1823 = vmatpush.msrb.mxu1 %v5696_v58  ;;  %1843 = vmatpush.msra.mxu2 %v5697_v3  ;;  %v1459_v0 = vand.u32 2147483648, %v1432_v57  ;;  %v1457_v62 = vand.u32 2147483647, %v1432_v57  ;;  %vm1453_vm10 = vweird.f32 %v1432_v57 }
 0x33a   :  { %1804 = vmatpush.msrb.mxu0 %v5698_v28  ;;  %v1422_v3 = vadd.f32 %v1414_v46, %v5661_v10  ;;  %v4618_v46 = vld [vmem:[#allocation9 + $0x120] sm:$0xff] }
 0x33b   :  { %1824 = vmatpush.msrb.mxu1 %v5699_v36  ;;  %1844 = vmatpush.msra.mxu2 %v5700_v27  ;;  %v1460_v35 = vor.u32 1.1754944e-38, %v1459_v0  ;;  %vm1458_vm12 = vcmp.eq.f32.partialorder %v1457_v62, 8.507059e+37  ;;  %v5719_v36 = vld [vmem:[#allocation112_spill] sm:$0xff] }
 0x33c   :  { %v2653_v7 = vpop.eup %2652  ;;  %1805 = vmatpush.msrb.mxu0 %v5701_v16  ;;  %v5721_v16 = vld [vmem:[#allocation114_spill] sm:$0xff]  ;;  %v4607_v62 = vld [vmem:[#allocation9 + $0x158] sm:$0xff] }
 0x33d   :  { %v1472_v6 = vadd.f32 1.0, %v2653_v7  ;;  %1825 = vmatpush.msrb.mxu1 %v5702_v45  ;;  %1845 = vmatpush.msra.mxu2 %v5703_v21  ;;  %v5720_v7 = vld [vmem:[#allocation113_spill] sm:$0xff] }
 0x33e   :  { %1806 = vmatpush.msrb.mxu0 %v5704_v19 }
 0x33f   :  { %v2655_v44 = vpop.eup %2654  ;;  %2656 = vrcp.f32 %v1472_v6  ;;  %1826 = vmatpush.msrb.mxu1 %v5705_v12  ;;  %1846 = vmatpush.msra.mxu2 %v5706_v51  ;;  %v1499_v45 = vand.u32 2147483648, %v1472_v6  ;;  %v1497_v19 = vand.u32 2147483647, %v1472_v6  ;;  %v5722_v12 = vld [vmem:[#allocation115_spill] sm:$0xff]  ;;  %vm1493_vm14 = vweird.f32 %v1472_v6  ;;  %v5723_v51 = vld [vmem:[#allocation97_spill] sm:$0xff] }
 0x340   :  { %v1449_v11 = vmul.f32 %v2655_v44, %v1432_v57  ;;  %1807 = vmatpush.msrb.mxu0 %v5707_v29  ;;  %vm1454_vm9 = vweird.f32 %v2655_v44 }
 0x341   :  { %1827 = vmatpush.msrb.mxu1 %v5708_v13  ;;  %1847 = vmatpush.msra.mxu2 %v5709_v20  ;;  %vm1455_vm11 = vmor %vm1453_vm10, %vm1454_vm9  ;;  %v1500_v29 = vor.u32 1.1754944e-38, %v1499_v45  ;;  %vm1498_vm0 = vcmp.eq.f32.partialorder %v1497_v19, 8.507059e+37  ;;  %v5725_v20 = vld [vmem:[#allocation121_spill] sm:$0xff]  ;;  %v5727_v45 = vld [vmem:[#allocation55_spill] sm:$0xff] }
 0x342   :  { %v1450_v38 = vsub.f32 1.0, %v1449_v11  ;;  %1808 = vmatpush.msrb.mxu0 %v5710_v31  ;;  %v5728_v19 = vld [vmem:[#allocation74_spill] sm:$0xff] }
 0x343   :  { %1828 = vmatpush.msrb.mxu1 %v5711_v1  ;;  %1848 = vmatpush.msra.mxu2 %v5712_v48  ;;  %v4598_v48 = vld [vmem:[#allocation9 + $0x170] sm:$0xff] }
 0x344   :  { %v1451_v56 = vmul.f32 %v2655_v44, %v1450_v38  ;;  %1809 = vmatpush.msrb.mxu0 %v5713_v8  ;;  %v4611_v8 = vld [vmem:[#allocation9 + $0x138] sm:$0xff] }
 0x345   :  { %v2657_v14 = vpop.eup %2656  ;;  %1829 = vmatpush.msrb.mxu1 %v5714_v2  ;;  %1849 = vmatpush.msra.mxu2 %v5715_v17  ;;  %v4621_v2 = vld [vmem:[#allocation9 + $0x128] sm:$0xff]  ;;  %v4628_v17 = vld [vmem:[#allocation9 + $0x110] sm:$0xff] }
 0x346   :  { %v1489_v34 = vmul.f32 %v2657_v14, %v1472_v6  ;;  %v1452_v5 = vadd.f32 %v2655_v44, %v1451_v56  ;;  %1810 = vmatpush.msrb.mxu0 %v5716_v4  ;;  %vm1494_vm13 = vweird.f32 %v2657_v14  ;;  %v4604_v56 = vld [vmem:[#allocation9 + $0x150] sm:$0xff]  ;;  %v4649_v4 = vld [vmem:[#allocation9 + $0xc8] sm:$0xff] }
 0x347   :  { %1830 = vmatpush.msrb.mxu1 %v5717_v30  ;;  %1850 = vmatpush.msra.mxu2 %v5718_v47  ;;  %vm1495_vm15 = vmor %vm1493_vm14, %vm1494_vm13  ;;  %v4663_v30 = vld [vmem:[#allocation9 + $0x98] sm:$0xff]  ;;  %v4670_v47 = vld [vmem:[#allocation9 + $0x80] sm:$0xff] }
 0x348   :  { %v1490_v58 = vsub.f32 1.0, %v1489_v34  ;;  %v1456_v28 = vsel %vm1455_vm11, %v2655_v44, %v1452_v5  ;;  %1811 = vmatpush.msrb.mxu0 %v5719_v36  ;;  %v4635_v34 = vld [vmem:[#allocation9 + $0xf8] sm:$0xff]  ;;  %v4642_v5 = vld [vmem:[#allocation9 + $0xe0] sm:$0xff] }
 0x349   :  { %v1461_v27 = vsel %vm1458_vm12, %v1460_v35, %v1456_v28  ;;  %1831 = vmatpush.msrb.mxu1 %v5720_v7  ;;  %1851 = vmatpush.msra.mxu2 %v5721_v16  ;;  %v4656_v35 = vld [vmem:[#allocation9 + $0xb0] sm:$0xff]  ;;  %v4691_v28 = vld [vmem:[#allocation9 + $0x38] sm:$0xff]  ;;  %v4698_v36 = vld [vmem:[#allocation9 + $0x20] sm:$0xff] }
 0x34a   :  { %v1491_v57 = vmul.f32 %v2657_v14, %v1490_v58  ;;  %v1504_v21 = vmul.f32 %v1461_v27, %v1422_v3  ;;  %1812 = vmatpush.msrb.mxu0 %v4267_v37  ;;  %v5724_v37 = vld [vmem:[#allocation120_spill] sm:$0xff]  ;;  %v4677_v58 = vld [vmem:[#allocation9 + $0x68] sm:$0xff]  ;;  %v4684_v3 = vld [vmem:[#allocation9 + $0x50] sm:$0xff] }
 0x34b   :  { %1832 = vmatpush.msrb.mxu1 %v5722_v12  ;;  %1852 = vmatpush.msra.mxu2 %v5657_v43  ;;  %v5726_v43 = vld [vmem:[#allocation122_spill] sm:$0xff] }
 0x34c   :  { %v1492_v44 = vadd.f32 %v2657_v14, %v1491_v57  ;;  %v1506_v11 = vadd.f32 %v1504_v21, %v5723_v51  ;;  %1813 = vmatpush.msrb.mxu0 %v5658_v26  ;;  %v4705_v27 = vld [vmem:[#allocation9 + $0x8] sm:$0xff] }
 0x34d   :  { %1833 = vmatpush.msrb.mxu1 %v5659_v15  ;;  %1853 = vmatpush.msra.mxu2 %v5660_v53  ;;  %v4592_v15 = vld [vmem:[#allocation10 + $0x178] sm:$0xff]  ;;  %v4595_v53 = vld [vmem:[#allocation9 + $0x168] sm:$0xff] }
 0x34e   :  { %v1496_v13 = vsel %vm1495_vm15, %v2657_v14, %v1492_v44  ;;  %2658 = vtanh.f32 %v1506_v11  ;;  %1814 = vmatpush.msrb.mxu0 %v5724_v37  ;;  %v4614_v14 = vld [vmem:[#allocation9 + $0x140] sm:$0xff] }
 0x34f   :  { %1834 = vmatpush.msrb.mxu1 %v5725_v20  ;;  %1854 = vmatpush.msra.mxu2 %v5726_v43  ;;  %v1501_v6 = vsel %vm1498_vm0, %v1500_v29, %v1496_v13 }
 0x350   :  { %v1510_v38 = vsub.f32 1.0, %v1501_v6  ;;  %v1514_v26 = vmul.f32 %v1501_v6, %v4464_v61  ;;  %v4601_v61 = vld [vmem:[#allocation10 + $0x160] sm:$0xff] }
 0x354   :  { %v2659_v31 = vpop.eup %2658 }
 0x355   :  { %v1512_v0 = vmul.f32 %v2659_v31, %v1510_v38 }
 0x357   :  { %v4586_v1 = vadd.f32 %v1514_v26, %v1512_v0 }
 0x359   :  { %1520 = vst [vmem:[#allocation15 + $0x48] sm:$0xff] %v4586_v1  ;;  %1605 = vmatmul.f32.vlgmr.msra.gmra.mxu3 %v4586_v1  ;;  %1625 = vmatmul.f32.vlgmr.msra.gmra.mxu0 %v4586_v1 }
 0x35a   :  { %1645 = vmatmul.f32.vlgmr.msra.gmra.mxu1 %v4586_v1  ;;  %1859 = vmatpush.msra.mxu3 %v4592_v15 }
 0x35b   :  { %1989 = vmatpush.msra.mxu0 %v4595_v53  ;;  %2009 = vmatpush.msra.mxu1 %v4598_v48 }
 0x35c   :  { %1860 = vmatpush.msra.mxu3 %v4601_v61 }
 0x35d   :  { %1990 = vmatpush.msra.mxu0 %v4604_v56  ;;  %2010 = vmatpush.msra.mxu1 %v4607_v62 }
 0x35e   :  { %1861 = vmatpush.msra.mxu3 %v4317_v59  ;;  %v4625_v59 = vld [vmem:[#allocation9 + $0x108] sm:$0xff] }
 0x35f   :  { %1991 = vmatpush.msra.mxu0 %v4611_v8  ;;  %2011 = vmatpush.msra.mxu1 %v4614_v14 }
 0x360   :  { %1862 = vmatpush.msra.mxu3 %v4322_v39  ;;  %v4632_v39 = vld [vmem:[#allocation9 + $0xf0] sm:$0xff] }
 0x361   :  { %1992 = vmatpush.msra.mxu0 %v4618_v46  ;;  %2012 = vmatpush.msra.mxu1 %v4621_v2 }
 0x362   :  { %1863 = vmatpush.msra.mxu3 %v4327_v25  ;;  %v4639_v25 = vld [vmem:[#allocation9 + $0xd8] sm:$0xff] }
 0x363   :  { %1993 = vmatpush.msra.mxu0 %v4625_v59  ;;  %2013 = vmatpush.msra.mxu1 %v4628_v17 }
 0x364   :  { %1864 = vmatpush.msra.mxu3 %v4332_v55  ;;  %v4646_v55 = vld [vmem:[#allocation9 + $0xc0] sm:$0xff] }
 0x365   :  { %1994 = vmatpush.msra.mxu0 %v4632_v39  ;;  %2014 = vmatpush.msra.mxu1 %v4635_v34 }
 0x366   :  { %1865 = vmatpush.msra.mxu3 %v4337_v9  ;;  %v4653_v9 = vld [vmem:[#allocation9 + $0xa8] sm:$0xff] }
 0x367   :  { %1995 = vmatpush.msra.mxu0 %v4639_v25  ;;  %2015 = vmatpush.msra.mxu1 %v4642_v5 }
 0x368   :  { %1866 = vmatpush.msra.mxu3 %v4342_v23  ;;  %v4660_v23 = vld [vmem:[#allocation9 + $0x90] sm:$0xff] }
 0x369   :  { %1996 = vmatpush.msra.mxu0 %v4646_v55  ;;  %2016 = vmatpush.msra.mxu1 %v4649_v4 }
 0x36a   :  { %1867 = vmatpush.msra.mxu3 %v5664_v54  ;;  %v4667_v54 = vld [vmem:[#allocation9 + $0x78] sm:$0xff] }
 0x36b   :  { %1997 = vmatpush.msra.mxu0 %v4653_v9  ;;  %2017 = vmatpush.msra.mxu1 %v4656_v35 }
 0x36c   :  { %1868 = vmatpush.msra.mxu3 %v5667_v18  ;;  %v4674_v18 = vld [vmem:[#allocation9 + $0x60] sm:$0xff] }
 0x36d   :  { %1998 = vmatpush.msra.mxu0 %v4660_v23  ;;  %2018 = vmatpush.msra.mxu1 %v4663_v30 }
 0x36e   :  { %1869 = vmatpush.msra.mxu3 %v5670_v50  ;;  %v4681_v50 = vld [vmem:[#allocation9 + $0x48] sm:$0xff] }
 0x36f   :  { %1999 = vmatpush.msra.mxu0 %v4667_v54  ;;  %2019 = vmatpush.msra.mxu1 %v4670_v47 }
 0x370   :  { %1870 = vmatpush.msra.mxu3 %v5673_v42  ;;  %v4688_v42 = vld [vmem:[#allocation9 + $0x30] sm:$0xff] }
 0x371   :  { %2000 = vmatpush.msra.mxu0 %v4674_v18  ;;  %2020 = vmatpush.msra.mxu1 %v4677_v58 }
 0x372   :  { %1871 = vmatpush.msra.mxu3 %v5676_v63  ;;  %v4695_v63 = vld [vmem:[#allocation9 + $0x18] sm:$0xff] }
 0x373   :  { %2001 = vmatpush.msra.mxu0 %v4681_v50  ;;  %2021 = vmatpush.msra.mxu1 %v4684_v3 }
 0x374   :  { %1872 = vmatpush.msra.mxu3 %v5679_v41  ;;  %v4702_v41 = vld [vmem:[#allocation9] sm:$0xff] }
 0x375   :  { %2002 = vmatpush.msra.mxu0 %v4688_v42  ;;  %2022 = vmatpush.msra.mxu1 %v4691_v28 }
 0x376   :  { %1873 = vmatpush.msra.mxu3 %v5682_v32 }
 0x377   :  { %2003 = vmatpush.msra.mxu0 %v4695_v63  ;;  %2023 = vmatpush.msra.mxu1 %v4698_v36 }
 0x378   :  { %1874 = vmatpush.msra.mxu3 %v5685_v24 }
 0x379   :  { %2004 = vmatpush.msra.mxu0 %v4702_v41  ;;  %2024 = vmatpush.msra.mxu1 %v4705_v27 }
 0x3ac   :  { %v1546_v7 = vpop.f32.mrf.mxu0  ;;  %v1566_v32 = vpop.f32.mrf.mxu1 }
 0x3ad   :  { %v1649_v16 = vadd.f32 %v1546_v7, %v5688_v40  ;;  %v1650_v57 = vadd.f32 %v1566_v32, %v5689_v33 }
 0x3af   :  { %v1655_v21 = vadd.f32 %v1649_v16, %v5727_v45  ;;  %v1695_v12 = vadd.f32 %v1650_v57, %v5728_v19 }
 0x3b1   :  { %v2547_v44 = vmul.f32 -1.442695, %v1655_v21  ;;  %v2549_v24 = vmul.f32 -1.442695, %v1695_v12 }
 0x3b3   :  { %2660 = vpow2.f32 %v2547_v44  ;;  %v1586_v16 = vpop.f32.mrf.mxu2 }
 0x3b4   :  { %2662 = vpow2.f32 %v2549_v24  ;;  %v1651_v21 = vadd.f32 %v1586_v16, %v3895_v52 }
 0x3b9   :  { %v2661_v51 = vpop.eup %2660 }
 0x3ba   :  { %v2663_v11 = vpop.eup %2662  ;;  %v1663_v29 = vadd.f32 1.0, %v2661_v51 }
 0x3bb   :  { %v1703_v13 = vadd.f32 1.0, %v2663_v11 }
 0x3bc   :  { %2664 = vrcp.f32 %v1663_v29  ;;  %v1676_v0 = vand.u32 2147483648, %v1663_v29  ;;  %v1674_v7 = vand.u32 2147483647, %v1663_v29  ;;  %vm1670_vm2 = vweird.f32 %v1663_v29 }
 0x3bd   :  { %2666 = vrcp.f32 %v1703_v13  ;;  %v1716_v24 = vand.u32 2147483648, %v1703_v13  ;;  %vm1710_vm6 = vweird.f32 %v1703_v13  ;;  %v1714_v11 = vand.u32 2147483647, %v1703_v13 }
 0x3be   :  { %v1677_v45 = vor.u32 1.1754944e-38, %v1676_v0  ;;  %vm1675_vm4 = vcmp.eq.f32.partialorder %v1674_v7, 8.507059e+37 }
 0x3bf   :  { %vm1715_vm8 = vcmp.eq.f32.partialorder %v1714_v11, 8.507059e+37  ;;  %v4734_v11 = vld [vmem:[#allocation9 + $0x160] sm:$0xff] }
 0x3c2   :  { %v2665_v37 = vpop.eup %2664 }
 0x3c3   :  { %v2667_v20 = vpop.eup %2666  ;;  %v1666_v43 = vmul.f32 %v2665_v37, %v1663_v29  ;;  %vm1671_vm1 = vweird.f32 %v2665_v37 }
 0x3c4   :  { %v1706_v6 = vmul.f32 %v2667_v20, %v1703_v13  ;;  %vm1672_vm3 = vmor %vm1670_vm2, %vm1671_vm1  ;;  %vm1711_vm5 = vweird.f32 %v2667_v20 }
 0x3c5   :  { %v1667_v38 = vsub.f32 1.0, %v1666_v43  ;;  %vm1712_vm7 = vmor %vm1710_vm6, %vm1711_vm5  ;;  %v5729_v43 = vld [vmem:[#allocation63_spill] sm:$0xff] }
 0x3c6   :  { %v1707_v31 = vsub.f32 1.0, %v1706_v6 }
 0x3c7   :  { %v1668_v26 = vmul.f32 %v2665_v37, %v1667_v38 }
 0x3c8   :  { %v1708_v32 = vmul.f32 %v2667_v20, %v1707_v31  ;;  %v1717_v31 = vor.u32 1.1754944e-38, %v1716_v24  ;;  %v5731_v24 = vld [vmem:[#allocation51_spill] sm:$0xff] }
 0x3c9   :  { %v1669_v57 = vadd.f32 %v2665_v37, %v1668_v26 }
 0x3ca   :  { %v1709_v44 = vadd.f32 %v2667_v20, %v1708_v32 }
 0x3cb   :  { %v1673_v19 = vsel %vm1672_vm3, %v2665_v37, %v1669_v57  ;;  %v5730_v57 = vld [vmem:[#allocation94_spill] sm:$0xff] }
 0x3cc   :  { %v1678_v12 = vsel %vm1675_vm4, %v1677_v45, %v1673_v19  ;;  %v1713_v38 = vsel %vm1712_vm7, %v2667_v20, %v1709_v44  ;;  %v4730_v44 = vld [vmem:[#allocation10 + $0x170] sm:$0xff] }
 0x3cd   :  { %v1735_v51 = vmul.f32 %v1678_v12, %v1651_v21  ;;  %v1718_v29 = vsel %vm1715_vm8, %v1717_v31, %v1713_v38  ;;  %v4724_v12 = vld [vmem:[#allocation9 + $0x178] sm:$0xff]  ;;  %v4743_v31 = vld [vmem:[#allocation9 + $0x148] sm:$0xff] }
 0x3ce   :  { %v1741_v0 = vsub.f32 1.0, %v1718_v29  ;;  %v1745_v32 = vmul.f32 %v1718_v29, %v4527_v22  ;;  %v4727_v22 = vld [vmem:[#allocation10 + $0x168] sm:$0xff]  ;;  %5733 = vst [vmem:[#allocation35_spill] sm:$0xff] %v4743_v31  ;;  %v4746_v29 = vld [vmem:[#allocation10 + $0x138] sm:$0xff] }
 0x3cf   :  { %v1737_v6 = vadd.f32 %v1735_v51, %v5729_v43  ;;  %v4737_v43 = vld [vmem:[#allocation10 + $0x150] sm:$0xff]  ;;  %5734 = vst [vmem:[#allocation29_spill] sm:$0xff] %v4746_v29 }
 0x3d1   :  { %2668 = vtanh.f32 %v1737_v6  ;;  %v4740_v6 = vld [vmem:[#allocation10 + $0x158] sm:$0xff] }
 0x3d2   :  { %5732 = vst [vmem:[#allocation42_spill] sm:$0xff] %v4740_v6 }
 0x3d6   :  { %v1626_v26 = vpop.f32.mrf.mxu0 }
 0x3d7   :  { %v2669_v16 = vpop.eup %2668  ;;  %v1653_v37 = vadd.f32 %v1626_v26, %v3935_v60 }
 0x3d8   :  { %v1743_v7 = vmul.f32 %v2669_v16, %v1741_v0  ;;  %v4749_v0 = vld [vmem:[#allocation10 + $0x140] sm:$0xff]  ;;  %v4752_v16 = vld [vmem:[#allocation9 + $0x130] sm:$0xff] }
 0x3d9   :  { %v1696_v45 = vadd.f32 %v1653_v37, %v5730_v57  ;;  %5735 = vst [vmem:[#allocation25_spill] sm:$0xff] %v4749_v0  ;;  %v4763_v57 = vld [vmem:[#allocation9 + $0x118] sm:$0xff] }
 0x3da   :  { %v4717_v21 = vadd.f32 %v1745_v32, %v1743_v7  ;;  %5736 = vst [vmem:[#allocation34_spill] sm:$0xff] %v4752_v16  ;;  %v4757_v7 = vld [vmem:[#allocation10 + $0x120] sm:$0xff]  ;;  %v4760_v32 = vld [vmem:[#allocation10 + $0x128] sm:$0xff] }
 0x3db   :  { %v2550_v13 = vmul.f32 -1.442695, %v1696_v45  ;;  %5737 = vst [vmem:[#allocation98_spill] sm:$0xff] %v4757_v7  ;;  %v4766_v45 = vld [vmem:[#allocation10 + $0x108] sm:$0xff] }
 0x3dc   :  { %1749 = vst [vmem:[#allocation15 + $0x40] sm:$0xff] %v4717_v21  ;;  %1775 = vmatmul.f32.vlgmr.msrb.gmra.mxu2 %v4717_v21  ;;  %1795 = vmatmul.f32.vlgmr.msrb.gmra.mxu3 %v4717_v21  ;;  %v1606_v20 = vpop.f32.mrf.mxu3 }
 0x3dd   :  { %2670 = vpow2.f32 %v2550_v13  ;;  %1815 = vmatmul.f32.vlgmr.msrb.gmra.mxu0 %v4717_v21  ;;  %v1652_v19 = vadd.f32 %v1606_v20, %v3891_v49  ;;  %2029 = vmatpush.msrb.mxu2 %v4724_v12  ;;  %5738 = vst [vmem:[#allocation77_spill] sm:$0xff] %v4760_v32  ;;  %v4769_v13 = vld [vmem:[#allocation10 + $0x110] sm:$0xff]  ;;  %v4773_v20 = vld [vmem:[#allocation9 + $0x100] sm:$0xff] }
 0x3de   :  { %2049 = vmatpush.msrb.mxu3 %v4727_v22  ;;  %2069 = vmatpush.msrb.mxu0 %v4730_v44  ;;  %5739 = vst [vmem:[#allocation60_spill] sm:$0xff] %v4763_v57 }
 0x3df   :  { %v1656_v51 = vadd.f32 %v1652_v19, %v5731_v24  ;;  %2030 = vmatpush.msrb.mxu2 %v4734_v11  ;;  %5740 = vst [vmem:[#allocation59_spill] sm:$0xff] %v4766_v45  ;;  %v4776_v19 = vld [vmem:[#allocation10 + $0xf0] sm:$0xff]  ;;  %v4779_v24 = vld [vmem:[#allocation10 + $0xf8] sm:$0xff] }
 0x3e0   :  { %2050 = vmatpush.msrb.mxu3 %v4737_v43  ;;  %2070 = vmatpush.msrb.mxu0 %v4740_v6  ;;  %5741 = vst [vmem:[#allocation62_spill] sm:$0xff] %v4769_v13 }
 0x3e1   :  { %v2548_v38 = vmul.f32 -1.442695, %v1656_v51  ;;  %2031 = vmatpush.msrb.mxu2 %v4743_v31  ;;  %5742 = vst [vmem:[#allocation61_spill] sm:$0xff] %v4773_v20  ;;  %v4869_v31 = vld [vmem:[#allocation10 + $0x18] sm:$0xff] }
 0x3e2   :  { %2051 = vmatpush.msrb.mxu3 %v4746_v29  ;;  %2071 = vmatpush.msrb.mxu0 %v4749_v0  ;;  %5743 = vst [vmem:[#allocation68_spill] sm:$0xff] %v4776_v19  ;;  %v4848_v0 = vld [vmem:[#allocation10 + $0x48] sm:$0xff]  ;;  %v4859_v29 = vld [vmem:[#allocation10 + $0x30] sm:$0xff] }
 0x3e3   :  { %v2671_v26 = vpop.eup %2670  ;;  %2672 = vpow2.f32 %v2548_v38  ;;  %2032 = vmatpush.msrb.mxu2 %v4752_v16  ;;  %5744 = vst [vmem:[#allocation71_spill] sm:$0xff] %v4779_v24  ;;  %v4782_v38 = vld [vmem:[#allocation9 + $0xe8] sm:$0xff]  ;;  %v4844_v16 = vld [vmem:[#allocation9 + $0x58] sm:$0xff] }
 0x3e4   :  { %v4755_v37 = vadd.f32 1.0, %v2671_v26  ;;  %2052 = vmatpush.msrb.mxu3 %v4757_v7  ;;  %2072 = vmatpush.msrb.mxu0 %v4760_v32  ;;  %5745 = vst [vmem:[#allocation116_spill] sm:$0xff] %v4782_v38  ;;  %v4838_v7 = vld [vmem:[#allocation10 + $0x60] sm:$0xff] }
 0x3e5   :  { %2033 = vmatpush.msrb.mxu2 %v4763_v57  ;;  %v4828_v57 = vld [vmem:[#allocation10 + $0x78] sm:$0xff]  ;;  %5761 = vst [vmem:[#allocation44_spill] sm:$0xff] %v4838_v7 }
 0x3e6   :  { %2053 = vmatpush.msrb.mxu3 %v4766_v45  ;;  %2073 = vmatpush.msrb.mxu0 %v4769_v13  ;;  %2674 = vrcp.f32 %v4755_v37  ;;  %v4787_v13 = vld [vmem:[#allocation10 + $0xd8] sm:$0xff]  ;;  %v4814_v45 = vld [vmem:[#allocation9 + $0xa0] sm:$0xff]  ;;  %5758 = vst [vmem:[#allocation40_spill] sm:$0xff] %v4828_v57  ;;  %vm1725_vm14 = vweird.f32 %v4755_v37 }
 0x3e7   :  { %2034 = vmatpush.msrb.mxu2 %v4773_v20  ;;  %5746 = vst [vmem:[#allocation117_spill] sm:$0xff] %v4787_v13  ;;  %v4790_v20 = vld [vmem:[#allocation10 + $0xe0] sm:$0xff] }
 0x3e8   :  { %2054 = vmatpush.msrb.mxu3 %v4776_v19  ;;  %2074 = vmatpush.msrb.mxu0 %v4779_v24  ;;  %5747 = vst [vmem:[#allocation118_spill] sm:$0xff] %v4790_v20  ;;  %v4793_v19 = vld [vmem:[#allocation9 + $0xd0] sm:$0xff]  ;;  %v4797_v24 = vld [vmem:[#allocation10 + $0xc0] sm:$0xff] }
 0x3e9   :  { %v2673_v51 = vpop.eup %2672  ;;  %2035 = vmatpush.msrb.mxu2 %v4782_v38  ;;  %5748 = vst [vmem:[#allocation119_spill] sm:$0xff] %v4793_v19 }
 0x3ea   :  { %v4785_v26 = vadd.f32 1.0, %v2673_v51  ;;  %2055 = vmatpush.msrb.mxu3 %v4787_v13  ;;  %2075 = vmatpush.msrb.mxu0 %v4790_v20  ;;  %5749 = vst [vmem:[#allocation99_spill] sm:$0xff] %v4797_v24  ;;  %v4800_v51 = vld [vmem:[#allocation10 + $0xc8] sm:$0xff]  ;;  %v4805_v13 = vld [vmem:[#allocation9 + $0xb8] sm:$0xff] }
 0x3eb   :  { %2036 = vmatpush.msrb.mxu2 %v4793_v19  ;;  %5750 = vst [vmem:[#allocation33_spill] sm:$0xff] %v4800_v51  ;;  %v4808_v20 = vld [vmem:[#allocation10 + $0xa8] sm:$0xff]  ;;  %v4811_v19 = vld [vmem:[#allocation10 + $0xb0] sm:$0xff] }
 0x3ec   :  { %2676 = vrcp.f32 %v4785_v26  ;;  %2056 = vmatpush.msrb.mxu3 %v4797_v24  ;;  %2076 = vmatpush.msrb.mxu0 %v4800_v51  ;;  %v4803_v38 = vpop.eup %2674  ;;  %5751 = vst [vmem:[#allocation123_spill] sm:$0xff] %v4805_v13  ;;  %v4819_v24 = vld [vmem:[#allocation10 + $0x90] sm:$0xff]  ;;  %vm1685_vm10 = vweird.f32 %v4785_v26 }
 0x3ed   :  { %2037 = vmatpush.msrb.mxu2 %v4805_v13  ;;  %5752 = vst [vmem:[#allocation32_spill] sm:$0xff] %v4808_v20  ;;  %v1721_v51 = vmul.f32 %v4803_v38, %v4755_v37  ;;  %v4822_v13 = vld [vmem:[#allocation10 + $0x98] sm:$0xff]  ;;  %vm1726_vm13 = vweird.f32 %v4803_v38 }
 0x3ee   :  { %2057 = vmatpush.msrb.mxu3 %v4808_v20  ;;  %5753 = vst [vmem:[#allocation31_spill] sm:$0xff] %v4811_v19  ;;  %2077 = vmatpush.msrb.mxu0 %v4811_v19  ;;  %v4825_v20 = vld [vmem:[#allocation9 + $0x88] sm:$0xff]  ;;  %vm1727_vm15 = vmor %vm1725_vm14, %vm1726_vm13 }
 0x3ef   :  { %5754 = vst [vmem:[#allocation124_spill] sm:$0xff] %v4814_v45  ;;  %2038 = vmatpush.msrb.mxu2 %v4814_v45  ;;  %v4831_v45 = vld [vmem:[#allocation10 + $0x80] sm:$0xff] }
 0x3f0   :  { %5755 = vst [vmem:[#allocation37_spill] sm:$0xff] %v4819_v24  ;;  %2058 = vmatpush.msrb.mxu3 %v4819_v24  ;;  %2078 = vmatpush.msrb.mxu0 %v4822_v13  ;;  %v4835_v24 = vld [vmem:[#allocation9 + $0x70] sm:$0xff] }
 0x3f1   :  { %5756 = vst [vmem:[#allocation36_spill] sm:$0xff] %v4822_v13  ;;  %2039 = vmatpush.msrb.mxu2 %v4825_v20  ;;  %v1722_v13 = vsub.f32 1.0, %v1721_v51  ;;  %v4851_v51 = vld [vmem:[#allocation10 + $0x50] sm:$0xff] }
 0x3f2   :  { %5757 = vst [vmem:[#allocation125_spill] sm:$0xff] %v4825_v20  ;;  %v2677_v19 = vpop.eup %2676  ;;  %2059 = vmatpush.msrb.mxu3 %v4828_v57  ;;  %2079 = vmatpush.msrb.mxu0 %v4831_v45  ;;  %v4841_v20 = vld [vmem:[#allocation10 + $0x68] sm:$0xff] }
 0x3f3   :  { %5759 = vst [vmem:[#allocation39_spill] sm:$0xff] %v4831_v45  ;;  %v1681_v32 = vmul.f32 %v2677_v19, %v4785_v26  ;;  %2040 = vmatpush.msrb.mxu2 %v4835_v24  ;;  %v1691_v45 = vand.u32 2147483648, %v4785_v26  ;;  %vm1686_vm9 = vweird.f32 %v2677_v19 }
 0x3f4   :  { %5760 = vst [vmem:[#allocation126_spill] sm:$0xff] %v4835_v24  ;;  %2060 = vmatpush.msrb.mxu3 %v4838_v7  ;;  %2080 = vmatpush.msrb.mxu0 %v4841_v20  ;;  %v1689_v24 = vand.u32 2147483647, %v4785_v26  ;;  %vm1687_vm11 = vmor %vm1685_vm10, %vm1686_vm9 }
 0x3f5   :  { %5762 = vst [vmem:[#allocation43_spill] sm:$0xff] %v4841_v20  ;;  %v1682_v57 = vsub.f32 1.0, %v1681_v32  ;;  %2041 = vmatpush.msrb.mxu2 %v4844_v16  ;;  %v4855_v20 = vld [vmem:[#allocation9 + $0x40] sm:$0xff]  ;;  %v1723_v32 = vmul.f32 %v4803_v38, %v1722_v13 }
 0x3f6   :  { %5763 = vst [vmem:[#allocation127_spill] sm:$0xff] %v4844_v16  ;;  %2061 = vmatpush.msrb.mxu3 %v4848_v0  ;;  %2081 = vmatpush.msrb.mxu0 %v4851_v51  ;;  %v1646_v16 = vpop.f32.mrf.mxu1  ;;  %v4872_v13 = vld [vmem:[#allocation10 + $0x20] sm:$0xff]  ;;  %vm1690_vm12 = vcmp.eq.f32.partialorder %v1689_v24, 8.507059e+37  ;;  %v1729_v24 = vand.u32 2147483647, %v4755_v37 }
 0x3f7   :  { %5764 = vst [vmem:[#allocation48_spill] sm:$0xff] %v4848_v0  ;;  %v1683_v7 = vmul.f32 %v2677_v19, %v1682_v57  ;;  %2042 = vmatpush.msrb.mxu2 %v4855_v20  ;;  %v4862_v0 = vld [vmem:[#allocation10 + $0x38] sm:$0xff]  ;;  %v4866_v57 = vld [vmem:[#allocation9 + $0x28] sm:$0xff] }
 0x3f8   :  { %5765 = vst [vmem:[#allocation47_spill] sm:$0xff] %v4851_v51  ;;  %2062 = vmatpush.msrb.mxu3 %v4859_v29  ;;  %2082 = vmatpush.msrb.mxu0 %v4862_v0  ;;  %vm1730_vm0 = vcmp.eq.f32.partialorder %v1729_v24, 8.507059e+37 }
 0x3f9   :  { %5766 = vst [vmem:[#allocation128_spill] sm:$0xff] %v4855_v20  ;;  %v1684_v51 = vadd.f32 %v2677_v19, %v1683_v7  ;;  %2043 = vmatpush.msrb.mxu2 %v4866_v57  ;;  %v1692_v20 = vor.u32 1.1754944e-38, %v1691_v45  ;;  %v4876_v7 = vld [vmem:[#allocation9 + $0x10] sm:$0xff]  ;;  %v1724_v45 = vadd.f32 %v4803_v38, %v1723_v32 }
 0x3fa   :  { %5767 = vst [vmem:[#allocation50_spill] sm:$0xff] %v4859_v29  ;;  %2063 = vmatpush.msrb.mxu3 %v4869_v31  ;;  %2083 = vmatpush.msrb.mxu0 %v4872_v13  ;;  %v1654_v29 = vadd.f32 %v1646_v16, %v5661_v10  ;;  %v1731_v16 = vand.u32 2147483648, %v4755_v37 }
 0x3fb   :  { %5768 = vst [vmem:[#allocation49_spill] sm:$0xff] %v4862_v0  ;;  %v1688_v0 = vsel %vm1687_vm11, %v2677_v19, %v1684_v51  ;;  %2044 = vmatpush.msrb.mxu2 %v4876_v7  ;;  %v5775_v51 = vld [vmem:[#allocation95_spill] sm:$0xff] }
 0x3fc   :  { %5769 = vst [vmem:[#allocation129_spill] sm:$0xff] %v4866_v57  ;;  %v1693_v26 = vsel %vm1690_vm12, %v1692_v20, %v1688_v0  ;;  %v4881_v57 = vld [vmem:[#allocation10] sm:$0xff]  ;;  %v1728_v20 = vsel %vm1727_vm15, %v4803_v38, %v1724_v45  ;;  %v1732_v32 = vor.u32 1.1754944e-38, %v1731_v16 }
 0x3fd   :  { %5770 = vst [vmem:[#allocation54_spill] sm:$0xff] %v4869_v31  ;;  %2064 = vmatpush.msrb.mxu3 %v4881_v57  ;;  %v4884_v31 = vld [vmem:[#allocation10 + $0x8] sm:$0xff]  ;;  %v1736_v19 = vmul.f32 %v1693_v26, %v1654_v29 }
 0x3fe   :  { %5771 = vst [vmem:[#allocation53_spill] sm:$0xff] %v4872_v13  ;;  %2084 = vmatpush.msrb.mxu0 %v4884_v31 }
 0x3ff   :  { %5772 = vst [vmem:[#allocation130_spill] sm:$0xff] %v4876_v7  ;;  %v1738_v0 = vadd.f32 %v1736_v19, %v5775_v51 }
 0x400   :  { %5773 = vst [vmem:[#allocation58_spill] sm:$0xff] %v4881_v57  ;;  %v1733_v57 = vsel %vm1730_vm0, %v1732_v32, %v1728_v20  ;;  %v5778_v20 = vld [vmem:[#allocation75_spill] sm:$0xff] }
 0x401   :  { %5774 = vst [vmem:[#allocation57_spill] sm:$0xff] %v4884_v31  ;;  %2678 = vtanh.f32 %v1738_v0  ;;  %v1742_v7 = vsub.f32 1.0, %v1733_v57  ;;  %v1746_v31 = vmul.f32 %v1733_v57, %v4586_v1  ;;  %v4910_v1 = vld [vmem:[#allocation10 + $0x130] sm:$0xff] }
 0x407   :  { %v2679_v13 = vpop.eup %2678 }
 0x408   :  { %v1744_v10 = vmul.f32 %v2679_v13, %v1742_v7 }
 0x40a   :  { %v4893_v6 = vadd.f32 %v1746_v31, %v1744_v10  ;;  %v4905_v10 = vld [vmem:[#allocation10 + $0x148] sm:$0xff] }
 0x40c   :  { %1750 = vst [vmem:[#allocation15 + $0x38] sm:$0xff] %v4893_v6  ;;  %1835 = vmatmul.f32.vlgmr.msrb.gmra.mxu1 %v4893_v6  ;;  %1855 = vmatmul.f32.vlgmr.msra.gmra.mxu2 %v4893_v6 }
 0x40d   :  { %1875 = vmatmul.f32.vlgmr.msra.gmra.mxu3 %v4893_v6  ;;  %2089 = vmatpush.msrb.mxu1 %v4592_v15 }
 0x40e   :  { %2218 = vmatpush.msra.mxu2 %v4595_v53  ;;  %2238 = vmatpush.msra.mxu3 %v4598_v48  ;;  %v4915_v53 = vld [vmem:[#allocation10 + $0x118] sm:$0xff]  ;;  %v4920_v48 = vld [vmem:[#allocation10 + $0x100] sm:$0xff] }
 0x40f   :  { %2090 = vmatpush.msrb.mxu1 %v4601_v61 }
 0x410   :  { %2219 = vmatpush.msra.mxu2 %v4604_v56  ;;  %2239 = vmatpush.msra.mxu3 %v4607_v62  ;;  %v4925_v56 = vld [vmem:[#allocation10 + $0xe8] sm:$0xff]  ;;  %v4930_v62 = vld [vmem:[#allocation10 + $0xd0] sm:$0xff] }
 0x411   :  { %2091 = vmatpush.msrb.mxu1 %v4905_v10 }
 0x412   :  { %2220 = vmatpush.msra.mxu2 %v4611_v8  ;;  %2240 = vmatpush.msra.mxu3 %v4614_v14  ;;  %v4935_v8 = vld [vmem:[#allocation10 + $0xb8] sm:$0xff]  ;;  %v4940_v14 = vld [vmem:[#allocation10 + $0xa0] sm:$0xff] }
 0x413   :  { %2092 = vmatpush.msrb.mxu1 %v4910_v1 }
 0x414   :  { %2221 = vmatpush.msra.mxu2 %v4618_v46  ;;  %2241 = vmatpush.msra.mxu3 %v4621_v2  ;;  %v4945_v46 = vld [vmem:[#allocation10 + $0x88] sm:$0xff]  ;;  %v4950_v2 = vld [vmem:[#allocation10 + $0x70] sm:$0xff] }
 0x415   :  { %2093 = vmatpush.msrb.mxu1 %v4915_v53 }
 0x416   :  { %2222 = vmatpush.msra.mxu2 %v4625_v59  ;;  %2242 = vmatpush.msra.mxu3 %v4628_v17  ;;  %v4955_v59 = vld [vmem:[#allocation10 + $0x58] sm:$0xff]  ;;  %v4960_v17 = vld [vmem:[#allocation10 + $0x40] sm:$0xff] }
 0x417   :  { %2094 = vmatpush.msrb.mxu1 %v4920_v48 }
 0x418   :  { %2223 = vmatpush.msra.mxu2 %v4632_v39  ;;  %2243 = vmatpush.msra.mxu3 %v4635_v34  ;;  %v4965_v39 = vld [vmem:[#allocation10 + $0x28] sm:$0xff]  ;;  %v4970_v34 = vld [vmem:[#allocation10 + $0x10] sm:$0xff] }
 0x419   :  { %2095 = vmatpush.msrb.mxu1 %v4925_v56 }
 0x41a   :  { %2224 = vmatpush.msra.mxu2 %v4639_v25  ;;  %2244 = vmatpush.msra.mxu3 %v4642_v5 }
 0x41b   :  { %2096 = vmatpush.msrb.mxu1 %v4930_v62 }
 0x41c   :  { %2225 = vmatpush.msra.mxu2 %v4646_v55  ;;  %2245 = vmatpush.msra.mxu3 %v4649_v4 }
 0x41d   :  { %2097 = vmatpush.msrb.mxu1 %v4935_v8 }
 0x41e   :  { %2226 = vmatpush.msra.mxu2 %v4653_v9  ;;  %2246 = vmatpush.msra.mxu3 %v4656_v35  ;;  %v5776_v9 = vld [vmem:[#allocation65_spill] sm:$0xff] }
 0x41f   :  { %2098 = vmatpush.msrb.mxu1 %v4940_v14 }
 0x420   :  { %2227 = vmatpush.msra.mxu2 %v4660_v23  ;;  %2247 = vmatpush.msra.mxu3 %v4663_v30  ;;  %v5777_v23 = vld [vmem:[#allocation72_spill] sm:$0xff] }
 0x421   :  { %2099 = vmatpush.msrb.mxu1 %v4945_v46 }
 0x422   :  { %2228 = vmatpush.msra.mxu2 %v4667_v54  ;;  %2248 = vmatpush.msra.mxu3 %v4670_v47 }
 0x423   :  { %2100 = vmatpush.msrb.mxu1 %v4950_v2 }
 0x424   :  { %2229 = vmatpush.msra.mxu2 %v4674_v18  ;;  %2249 = vmatpush.msra.mxu3 %v4677_v58 }
 0x425   :  { %2101 = vmatpush.msrb.mxu1 %v4955_v59 }
 0x426   :  { %2230 = vmatpush.msra.mxu2 %v4681_v50  ;;  %2250 = vmatpush.msra.mxu3 %v4684_v3 }
 0x427   :  { %2102 = vmatpush.msrb.mxu1 %v4960_v17 }
 0x428   :  { %2231 = vmatpush.msra.mxu2 %v4688_v42  ;;  %2251 = vmatpush.msra.mxu3 %v4691_v28 }
 0x429   :  { %2103 = vmatpush.msrb.mxu1 %v4965_v39 }
 0x42a   :  { %2232 = vmatpush.msra.mxu2 %v4695_v63  ;;  %2252 = vmatpush.msra.mxu3 %v4698_v36 }
 0x42b   :  { %2104 = vmatpush.msrb.mxu1 %v4970_v34 }
 0x42c   :  { %2233 = vmatpush.msra.mxu2 %v4702_v41  ;;  %2253 = vmatpush.msra.mxu3 %v4705_v27 }
 0x45a   :  { %v1816_v38 = vpop.f32.mrf.mxu0 }
 0x45b   :  { %v1881_v26 = vadd.f32 %v1816_v38, %v3895_v52  ;;  %v5790_v38 = vld [vmem:[#allocation62_spill] sm:$0xff] }
 0x45f   :  { %v1776_v25 = vpop.f32.mrf.mxu2  ;;  %v1796_v5 = vpop.f32.mrf.mxu3 }
 0x460   :  { %v1879_v55 = vadd.f32 %v1776_v25, %v5688_v40  ;;  %v1880_v4 = vadd.f32 %v1796_v5, %v5689_v33 }
 0x462   :  { %v1885_v35 = vadd.f32 %v1879_v55, %v5776_v9  ;;  %v1925_v30 = vadd.f32 %v1880_v4, %v5777_v23 }
 0x464   :  { %v2551_v54 = vmul.f32 -1.442695, %v1885_v35  ;;  %v2553_v47 = vmul.f32 -1.442695, %v1925_v30 }
 0x466   :  { %2680 = vpow2.f32 %v2551_v54 }
 0x467   :  { %2682 = vpow2.f32 %v2553_v47  ;;  %v5779_v47 = vld [vmem:[#allocation41_spill] sm:$0xff] }
 0x46c   :  { %v2681_v18 = vpop.eup %2680 }
 0x46d   :  { %v2683_v58 = vpop.eup %2682  ;;  %v1893_v50 = vadd.f32 1.0, %v2681_v18 }
 0x46e   :  { %v1933_v3 = vadd.f32 1.0, %v2683_v58 }
 0x46f   :  { %2684 = vrcp.f32 %v1893_v50  ;;  %v1906_v27 = vand.u32 2147483648, %v1893_v50  ;;  %v1904_v37 = vand.u32 2147483647, %v1893_v50  ;;  %vm1900_vm2 = vweird.f32 %v1893_v50 }
 0x470   :  { %2686 = vrcp.f32 %v1933_v3  ;;  %v1946_v51 = vand.u32 2147483648, %v1933_v3  ;;  %vm1940_vm6 = vweird.f32 %v1933_v3  ;;  %v1944_v0 = vand.u32 2147483647, %v1933_v3 }
 0x471   :  { %v1907_v7 = vor.u32 1.1754944e-38, %v1906_v27  ;;  %vm1905_vm4 = vcmp.eq.f32.partialorder %v1904_v37, 8.507059e+37  ;;  %v5783_v27 = vld [vmem:[#allocation29_spill] sm:$0xff] }
 0x472   :  { %v1947_v5 = vor.u32 1.1754944e-38, %v1946_v51  ;;  %vm1945_vm8 = vcmp.eq.f32.partialorder %v1944_v0, 8.507059e+37  ;;  %v5787_v37 = vld [vmem:[#allocation77_spill] sm:$0xff]  ;;  %v5797_v51 = vld [vmem:[#allocation119_spill] sm:$0xff] }
 0x475   :  { %v2685_v42 = vpop.eup %2684 }
 0x476   :  { %v2687_v28 = vpop.eup %2686  ;;  %v1896_v63 = vmul.f32 %v2685_v42, %v1893_v50  ;;  %vm1901_vm1 = vweird.f32 %v2685_v42 }
 0x477   :  { %v1936_v36 = vmul.f32 %v2687_v28, %v1933_v3  ;;  %vm1902_vm3 = vmor %vm1900_vm2, %vm1901_vm1  ;;  %vm1941_vm5 = vweird.f32 %v2687_v28 }
 0x478   :  { %v1897_v41 = vsub.f32 1.0, %v1896_v63  ;;  %vm1942_vm7 = vmor %vm1940_vm6, %vm1941_vm5  ;;  %v5781_v63 = vld [vmem:[#allocation42_spill] sm:$0xff] }
 0x479   :  { %v1937_v31 = vsub.f32 1.0, %v1936_v36 }
 0x47a   :  { %v1898_v29 = vmul.f32 %v2685_v42, %v1897_v41  ;;  %v5782_v41 = vld [vmem:[#allocation35_spill] sm:$0xff] }
 0x47b   :  { %v1938_v57 = vmul.f32 %v2687_v28, %v1937_v31  ;;  %v5784_v31 = vld [vmem:[#allocation25_spill] sm:$0xff] }
 0x47c   :  { %v1899_v13 = vadd.f32 %v2685_v42, %v1898_v29  ;;  %v5786_v29 = vld [vmem:[#allocation98_spill] sm:$0xff] }
 0x47d   :  { %v1939_v19 = vadd.f32 %v2687_v28, %v1938_v57  ;;  %v5791_v57 = vld [vmem:[#allocation61_spill] sm:$0xff] }
 0x47e   :  { %v1903_v45 = vsel %vm1902_vm3, %v2685_v42, %v1899_v13  ;;  %v5792_v13 = vld [vmem:[#allocation68_spill] sm:$0xff] }
 0x47f   :  { %v1908_v16 = vsel %vm1905_vm4, %v1907_v7, %v1903_v45  ;;  %v1943_v25 = vsel %vm1942_vm7, %v2687_v28, %v1939_v19  ;;  %v5793_v7 = vld [vmem:[#allocation71_spill] sm:$0xff]  ;;  %v5794_v45 = vld [vmem:[#allocation116_spill] sm:$0xff]  ;;  %v5795_v19 = vld [vmem:[#allocation117_spill] sm:$0xff] }
 0x480   :  { %v1965_v24 = vmul.f32 %v1908_v16, %v1881_v26  ;;  %v1948_v55 = vsel %vm1945_vm8, %v1947_v5, %v1943_v25  ;;  %v5800_v5 = vld [vmem:[#allocation123_spill] sm:$0xff] }
 0x481   :  { %v1971_v9 = vsub.f32 1.0, %v1948_v55  ;;  %v1975_v54 = vmul.f32 %v1948_v55, %v4717_v21  ;;  %v5780_v21 = vld [vmem:[#allocation92_spill] sm:$0xff] }
 0x482   :  { %v1967_v32 = vadd.f32 %v1965_v24, %v5778_v20  ;;  %v5796_v24 = vld [vmem:[#allocation118_spill] sm:$0xff]  ;;  %v5798_v20 = vld [vmem:[#allocation99_spill] sm:$0xff]  ;;  %v5801_v55 = vld [vmem:[#allocation32_spill] sm:$0xff] }
 0x484   :  { %2688 = vtanh.f32 %v1967_v32  ;;  %v5799_v32 = vld [vmem:[#allocation33_spill] sm:$0xff] }
 0x489   :  { %v1836_v4 = vpop.f32.mrf.mxu1 }
 0x48a   :  { %v2689_v35 = vpop.eup %2688  ;;  %v1882_v23 = vadd.f32 %v1836_v4, %v3891_v49  ;;  %v5802_v4 = vld [vmem:[#allocation31_spill] sm:$0xff] }
 0x48b   :  { %v1973_v30 = vmul.f32 %v2689_v35, %v1971_v9  ;;  %v5803_v35 = vld [vmem:[#allocation124_spill] sm:$0xff] }
 0x48c   :  { %v1886_v18 = vadd.f32 %v1882_v23, %v5779_v47 }
 0x48d   :  { %v4984_v58 = vadd.f32 %v1975_v54, %v1973_v30  ;;  %v5804_v30 = vld [vmem:[#allocation37_spill] sm:$0xff]  ;;  %v5805_v54 = vld [vmem:[#allocation36_spill] sm:$0xff] }
 0x48e   :  { %v2552_v50 = vmul.f32 -1.442695, %v1886_v18 }
 0x48f   :  { %1979 = vst [vmem:[#allocation15 + $0x50] sm:$0xff] %v4984_v58  ;;  %2005 = vmatmul.f32.vlgmr.msra.gmra.mxu0 %v4984_v58  ;;  %2025 = vmatmul.f32.vlgmr.msra.gmra.mxu1 %v4984_v58  ;;  %v1856_v3 = vpop.f32.mrf.mxu2 }
 0x490   :  { %2690 = vpow2.f32 %v2552_v50  ;;  %2045 = vmatmul.f32.vlgmr.msrb.gmra.mxu2 %v4984_v58  ;;  %v1883_v42 = vadd.f32 %v1856_v3, %v3935_v60  ;;  %2258 = vmatpush.msra.mxu0 %v4724_v12  ;;  %v5806_v50 = vld [vmem:[#allocation125_spill] sm:$0xff] }
 0x491   :  { %2278 = vmatpush.msra.mxu1 %v4727_v22  ;;  %2298 = vmatpush.msrb.mxu2 %v4730_v44  ;;  %v5785_v22 = vld [vmem:[#allocation34_spill] sm:$0xff] }
 0x492   :  { %v1926_v28 = vadd.f32 %v1883_v42, %v5780_v21  ;;  %2259 = vmatpush.msra.mxu0 %v4734_v11  ;;  %v5788_v11 = vld [vmem:[#allocation60_spill] sm:$0xff]  ;;  %v1876_v42 = vpop.f32.mrf.mxu3 }
 0x493   :  { %2279 = vmatpush.msra.mxu1 %v4737_v43  ;;  %2299 = vmatpush.msrb.mxu2 %v5781_v63  ;;  %v5789_v43 = vld [vmem:[#allocation59_spill] sm:$0xff]  ;;  %v5807_v21 = vld [vmem:[#allocation40_spill] sm:$0xff] }
 0x494   :  { %v2554_v36 = vmul.f32 -1.442695, %v1926_v28  ;;  %2260 = vmatpush.msra.mxu0 %v5782_v41  ;;  %v5808_v28 = vld [vmem:[#allocation39_spill] sm:$0xff]  ;;  %v5809_v41 = vld [vmem:[#allocation126_spill] sm:$0xff] }
 0x495   :  { %2280 = vmatpush.msra.mxu1 %v5783_v27  ;;  %2300 = vmatpush.msrb.mxu2 %v5784_v31  ;;  %v5810_v31 = vld [vmem:[#allocation44_spill] sm:$0xff] }
 0x496   :  { %v2691_v12 = vpop.eup %2690  ;;  %2692 = vpow2.f32 %v2554_v36  ;;  %2261 = vmatpush.msra.mxu0 %v5785_v22 }
 0x497   :  { %v1894_v44 = vadd.f32 1.0, %v2691_v12  ;;  %2281 = vmatpush.msra.mxu1 %v5786_v29  ;;  %2301 = vmatpush.msrb.mxu2 %v5787_v37  ;;  %v5811_v12 = vld [vmem:[#allocation43_spill] sm:$0xff]  ;;  %v5812_v29 = vld [vmem:[#allocation30_spill] sm:$0xff] }
 0x498   :  { %2262 = vmatpush.msra.mxu0 %v5788_v11  ;;  %v1884_v37 = vadd.f32 %v1876_v42, %v5812_v29 }
 0x499   :  { %2694 = vrcp.f32 %v1894_v44  ;;  %2282 = vmatpush.msra.mxu1 %v5789_v43  ;;  %2302 = vmatpush.msrb.mxu2 %v5790_v38  ;;  %v1921_v23 = vand.u32 2147483648, %v1894_v44  ;;  %v1919_v18 = vand.u32 2147483647, %v1894_v44  ;;  %vm1915_vm10 = vweird.f32 %v1894_v44  ;;  %v5813_v43 = vld [vmem:[#allocation127_spill] sm:$0xff] }
 0x49a   :  { %2263 = vmatpush.msra.mxu0 %v5791_v57  ;;  %v5814_v57 = vld [vmem:[#allocation48_spill] sm:$0xff] }
 0x49b   :  { %2283 = vmatpush.msra.mxu1 %v5792_v13  ;;  %2303 = vmatpush.msrb.mxu2 %v5793_v7  ;;  %v1922_v27 = vor.u32 1.1754944e-38, %v1921_v23  ;;  %vm1920_vm12 = vcmp.eq.f32.partialorder %v1919_v18, 8.507059e+37  ;;  %v5815_v13 = vld [vmem:[#allocation47_spill] sm:$0xff]  ;;  %v5824_v23 = vld [vmem:[#allocation58_spill] sm:$0xff] }
 0x49c   :  { %v2693_v26 = vpop.eup %2692  ;;  %2264 = vmatpush.msra.mxu0 %v5794_v45  ;;  %v5816_v45 = vld [vmem:[#allocation128_spill] sm:$0xff] }
 0x49d   :  { %v1934_v16 = vadd.f32 1.0, %v2693_v26  ;;  %2284 = vmatpush.msra.mxu1 %v5795_v19  ;;  %2304 = vmatpush.msrb.mxu2 %v5796_v24  ;;  %v5817_v24 = vld [vmem:[#allocation50_spill] sm:$0xff] }
 0x49e   :  { %2265 = vmatpush.msra.mxu0 %v5797_v51  ;;  %v5818_v51 = vld [vmem:[#allocation49_spill] sm:$0xff] }
 0x49f   :  { %v2695_v0 = vpop.eup %2694  ;;  %2696 = vrcp.f32 %v1934_v16  ;;  %2285 = vmatpush.msra.mxu1 %v5798_v20  ;;  %2305 = vmatpush.msrb.mxu2 %v5799_v32  ;;  %v1961_v7 = vand.u32 2147483648, %v1934_v16  ;;  %v1959_v19 = vand.u32 2147483647, %v1934_v16  ;;  %vm1955_vm14 = vweird.f32 %v1934_v16  ;;  %v5819_v20 = vld [vmem:[#allocation93_spill] sm:$0xff] }
 0x4a0   :  { %v1911_v25 = vmul.f32 %v2695_v0, %v1894_v44  ;;  %2266 = vmatpush.msra.mxu0 %v5800_v5  ;;  %vm1916_vm9 = vweird.f32 %v2695_v0  ;;  %v5821_v5 = vld [vmem:[#allocation54_spill] sm:$0xff] }
 0x4a1   :  { %2286 = vmatpush.msra.mxu1 %v5801_v55  ;;  %2306 = vmatpush.msrb.mxu2 %v5802_v4  ;;  %vm1917_vm11 = vmor %vm1915_vm10, %vm1916_vm9  ;;  %v5822_v55 = vld [vmem:[#allocation53_spill] sm:$0xff]  ;;  %v1962_v4 = vor.u32 1.1754944e-38, %v1961_v7  ;;  %vm1960_vm0 = vcmp.eq.f32.partialorder %v1959_v19, 8.507059e+37 }
 0x4a2   :  { %v1912_v9 = vsub.f32 1.0, %v1911_v25  ;;  %2267 = vmatpush.msra.mxu0 %v5803_v35  ;;  %v5820_v25 = vld [vmem:[#allocation129_spill] sm:$0xff]  ;;  %v5823_v35 = vld [vmem:[#allocation130_spill] sm:$0xff] }
 0x4a3   :  { %2287 = vmatpush.msra.mxu1 %v5804_v30  ;;  %2307 = vmatpush.msrb.mxu2 %v5805_v54  ;;  %v5825_v30 = vld [vmem:[#allocation57_spill] sm:$0xff] }
 0x4a4   :  { %v1913_v47 = vmul.f32 %v2695_v0, %v1912_v9  ;;  %2268 = vmatpush.msra.mxu0 %v5806_v50  ;;  %v5828_v7 = vld [vmem:[#allocation81_spill] sm:$0xff] }
 0x4a5   :  { %v2697_v3 = vpop.eup %2696  ;;  %2288 = vmatpush.msra.mxu1 %v5807_v21  ;;  %2308 = vmatpush.msrb.mxu2 %v5808_v28 }
 0x4a6   :  { %v1951_v63 = vmul.f32 %v2697_v3, %v1934_v16  ;;  %v1914_v36 = vadd.f32 %v2695_v0, %v1913_v47  ;;  %2269 = vmatpush.msra.mxu0 %v5809_v41  ;;  %vm1956_vm13 = vweird.f32 %v2697_v3 }
 0x4a7   :  { %2289 = vmatpush.msra.mxu1 %v5810_v31  ;;  %2309 = vmatpush.msrb.mxu2 %v5811_v12  ;;  %vm1957_vm15 = vmor %vm1955_vm14, %vm1956_vm13 }
 0x4a8   :  { %v1952_v22 = vsub.f32 1.0, %v1951_v63  ;;  %v1918_v11 = vsel %vm1917_vm11, %v2695_v0, %v1914_v36  ;;  %2270 = vmatpush.msra.mxu0 %v5813_v43 }
 0x4a9   :  { %v1923_v38 = vsel %vm1920_vm12, %v1922_v27, %v1918_v11  ;;  %2290 = vmatpush.msra.mxu1 %v5814_v57  ;;  %2310 = vmatpush.msrb.mxu2 %v5815_v13 }
 0x4aa   :  { %v1953_v44 = vmul.f32 %v2697_v3, %v1952_v22  ;;  %v1966_v26 = vmul.f32 %v1923_v38, %v1884_v37  ;;  %2271 = vmatpush.msra.mxu0 %v5816_v45 }
 0x4ab   :  { %2291 = vmatpush.msra.mxu1 %v5817_v24  ;;  %2311 = vmatpush.msrb.mxu2 %v5818_v51 }
 0x4ac   :  { %v1954_v0 = vadd.f32 %v2697_v3, %v1953_v44  ;;  %v1968_v32 = vadd.f32 %v1966_v26, %v5819_v20  ;;  %2272 = vmatpush.msra.mxu0 %v5820_v25 }
 0x4ad   :  { %2292 = vmatpush.msra.mxu1 %v5821_v5  ;;  %2312 = vmatpush.msrb.mxu2 %v5822_v55  ;;  %v5829_v55 = vld [vmem:[#allocation90_spill] sm:$0xff] }
 0x4ae   :  { %v1958_v9 = vsel %vm1957_vm15, %v2697_v3, %v1954_v0  ;;  %2698 = vtanh.f32 %v1968_v32  ;;  %2273 = vmatpush.msra.mxu0 %v5823_v35 }
 0x4af   :  { %2293 = vmatpush.msra.mxu1 %v5824_v23  ;;  %2313 = vmatpush.msrb.mxu2 %v5825_v30  ;;  %v1963_v16 = vsel %vm1960_vm0, %v1962_v4, %v1958_v9 }
 0x4b0   :  { %v1972_v54 = vsub.f32 1.0, %v1963_v16  ;;  %v1976_v50 = vmul.f32 %v1963_v16, %v4893_v6  ;;  %v5830_v16 = vld [vmem:[#allocation24_spill] sm:$0xff] }
 0x4b4   :  { %v2699_v47 = vpop.eup %2698 }
 0x4b5   :  { %v1974_v18 = vmul.f32 %v2699_v47, %v1972_v54 }
 0x4b7   :  { %v5043_v42 = vadd.f32 %v1976_v50, %v1974_v18 }
 0x4b9   :  { %1980 = vst [vmem:[#allocation15 + $0x28] sm:$0xff] %v5043_v42  ;;  %2065 = vmatmul.f32.vlgmr.msrb.gmra.mxu3 %v5043_v42  ;;  %2085 = vmatmul.f32.vlgmr.msrb.gmra.mxu0 %v5043_v42 }
 0x4ba   :  { %2105 = vmatmul.f32.vlgmr.msrb.gmra.mxu1 %v5043_v42  ;;  %2318 = vmatpush.msrb.mxu3 %v4592_v15 }
 0x4bc   :  { %2319 = vmatpush.msrb.mxu3 %v4601_v61 }
 0x4be   :  { %2320 = vmatpush.msrb.mxu3 %v4905_v10 }
 0x4c0   :  { %2321 = vmatpush.msrb.mxu3 %v4910_v1  ;;  %v5826_v1 = vld [vmem:[#allocation79_spill] sm:$0xff] }
 0x4c2   :  { %2322 = vmatpush.msrb.mxu3 %v4915_v53 }
 0x4c4   :  { %2323 = vmatpush.msrb.mxu3 %v4920_v48  ;;  %v5827_v48 = vld [vmem:[#allocation80_spill] sm:$0xff] }
 0x4c6   :  { %2324 = vmatpush.msrb.mxu3 %v4925_v56 }
 0x4c8   :  { %2325 = vmatpush.msrb.mxu3 %v4930_v62 }
 0x4ca   :  { %2326 = vmatpush.msrb.mxu3 %v4935_v8 }
 0x4cc   :  { %2327 = vmatpush.msrb.mxu3 %v4940_v14 }
 0x4ce   :  { %2328 = vmatpush.msrb.mxu3 %v4945_v46 }
 0x4d0   :  { %2329 = vmatpush.msrb.mxu3 %v4950_v2 }
 0x4d2   :  { %2330 = vmatpush.msrb.mxu3 %v4955_v59 }
 0x4d4   :  { %2331 = vmatpush.msrb.mxu3 %v4960_v17 }
 0x4d6   :  { %2332 = vmatpush.msrb.mxu3 %v4965_v39 }
 0x4d8   :  { %2333 = vmatpush.msrb.mxu3 %v4970_v34 }
 0x50c   :  { %v2006_v15 = vpop.f32.mrf.mxu0  ;;  %v2026_v61 = vpop.f32.mrf.mxu1 }
 0x50d   :  { %v2109_v6 = vadd.f32 %v2006_v15, %v5688_v40  ;;  %v2110_v10 = vadd.f32 %v2026_v61, %v5689_v33 }
 0x50f   :  { %v2115_v53 = vadd.f32 %v2109_v6, %v5826_v1  ;;  %v2155_v56 = vadd.f32 %v2110_v10, %v5827_v48 }
 0x511   :  { %v2555_v62 = vmul.f32 -1.442695, %v2115_v53  ;;  %v2557_v8 = vmul.f32 -1.442695, %v2155_v56 }
 0x513   :  { %2700 = vpow2.f32 %v2555_v62  ;;  %v2046_v31 = vpop.f32.mrf.mxu2 }
 0x514   :  { %2702 = vpow2.f32 %v2557_v8  ;;  %v2111_v37 = vadd.f32 %v2046_v31, %v3895_v52 }
 0x519   :  { %v2701_v14 = vpop.eup %2700 }
 0x51a   :  { %v2703_v46 = vpop.eup %2702  ;;  %v2123_v2 = vadd.f32 1.0, %v2701_v14 }
 0x51b   :  { %v2163_v59 = vadd.f32 1.0, %v2703_v46 }
 0x51c   :  { %2704 = vrcp.f32 %v2123_v2  ;;  %v2136_v63 = vand.u32 2147483648, %v2123_v2  ;;  %v2134_v41 = vand.u32 2147483647, %v2123_v2  ;;  %vm2130_vm2 = vweird.f32 %v2123_v2 }
 0x51d   :  { %2706 = vrcp.f32 %v2163_v59  ;;  %v2176_v57 = vand.u32 2147483648, %v2163_v59  ;;  %vm2170_vm6 = vweird.f32 %v2163_v59  ;;  %v2174_v44 = vand.u32 2147483647, %v2163_v59 }
 0x51e   :  { %v2137_v22 = vor.u32 1.1754944e-38, %v2136_v63  ;;  %vm2135_vm4 = vcmp.eq.f32.partialorder %v2134_v41, 8.507059e+37 }
 0x51f   :  { %v2177_v19 = vor.u32 1.1754944e-38, %v2176_v57  ;;  %vm2175_vm8 = vcmp.eq.f32.partialorder %v2174_v44, 8.507059e+37 }
 0x522   :  { %v2705_v17 = vpop.eup %2704 }
 0x523   :  { %v2707_v39 = vpop.eup %2706  ;;  %v2126_v34 = vmul.f32 %v2705_v17, %v2123_v2  ;;  %vm2131_vm1 = vweird.f32 %v2705_v17 }
 0x524   :  { %v2166_v3 = vmul.f32 %v2707_v39, %v2163_v59  ;;  %vm2132_vm3 = vmor %vm2130_vm2, %vm2131_vm1  ;;  %vm2171_vm5 = vweird.f32 %v2707_v39 }
 0x525   :  { %v2127_v21 = vsub.f32 1.0, %v2126_v34  ;;  %vm2172_vm7 = vmor %vm2170_vm6, %vm2171_vm5 }
 0x526   :  { %v2167_v28 = vsub.f32 1.0, %v2166_v3 }
 0x527   :  { %v2128_v36 = vmul.f32 %v2705_v17, %v2127_v21 }
 0x528   :  { %v2168_v27 = vmul.f32 %v2707_v39, %v2167_v28 }
 0x529   :  { %v2129_v12 = vadd.f32 %v2705_v17, %v2128_v36  ;;  %v5831_v36 = vld [vmem:[#allocation91_spill] sm:$0xff] }
 0x52a   :  { %v2169_v38 = vadd.f32 %v2707_v39, %v2168_v27 }
 0x52b   :  { %v2133_v11 = vsel %vm2132_vm3, %v2705_v17, %v2129_v12 }
 0x52c   :  { %v2138_v43 = vsel %vm2135_vm4, %v2137_v22, %v2133_v11  ;;  %v2173_v45 = vsel %vm2172_vm7, %v2707_v39, %v2169_v38 }
 0x52d   :  { %v2195_v13 = vmul.f32 %v2138_v43, %v2111_v37  ;;  %v2178_v24 = vsel %vm2175_vm8, %v2177_v19, %v2173_v45  ;;  %v5833_v19 = vld [vmem:[#allocation84_spill] sm:$0xff] }
 0x52e   :  { %v2201_v51 = vsub.f32 1.0, %v2178_v24  ;;  %v2205_v5 = vmul.f32 %v2178_v24, %v4984_v58 }
 0x52f   :  { %v2197_v26 = vadd.f32 %v2195_v13, %v5828_v7 }
 0x531   :  { %2708 = vtanh.f32 %v2197_v26  ;;  %v5832_v26 = vld [vmem:[#allocation83_spill] sm:$0xff] }
 0x536   :  { %v2086_v0 = vpop.f32.mrf.mxu0 }
 0x537   :  { %v2709_v20 = vpop.eup %2708  ;;  %v2113_v32 = vadd.f32 %v2086_v0, %v3935_v60  ;;  %v2106_v46 = vpop.f32.mrf.mxu1 }
 0x538   :  { %v2203_v25 = vmul.f32 %v2709_v20, %v2201_v51  ;;  %v2114_v17 = vadd.f32 %v2106_v46, %v5812_v29 }
 0x539   :  { %v2156_v4 = vadd.f32 %v2113_v32, %v5829_v55 }
 0x53a   :  { %v5074_v9 = vadd.f32 %v2205_v5, %v2203_v25 }
 0x53b   :  { %v2558_v35 = vmul.f32 -1.442695, %v2156_v4 }
 0x53c   :  { %2209 = vst [vmem:[#allocation15 + $0x60] sm:$0xff] %v5074_v9  ;;  %2234 = vmatmul.f32.vlgmr.msra.gmra.mxu2 %v5074_v9  ;;  %2254 = vmatmul.f32.vlgmr.msra.gmra.mxu3 %v5074_v9  ;;  %v2066_v23 = vpop.f32.mrf.mxu3 }
 0x53d   :  { %2710 = vpow2.f32 %v2558_v35  ;;  %2274 = vmatmul.f32.vlgmr.msra.gmra.mxu0 %v5074_v9  ;;  %v2112_v30 = vadd.f32 %v2066_v23, %v3891_v49 }
 0x53f   :  { %v2116_v54 = vadd.f32 %v2112_v30, %v5830_v16 }
 0x541   :  { %v2556_v58 = vmul.f32 -1.442695, %v2116_v54 }
 0x543   :  { %v2711_v47 = vpop.eup %2710  ;;  %2712 = vpow2.f32 %v2556_v58 }
 0x544   :  { %v2164_v18 = vadd.f32 1.0, %v2711_v47 }
 0x546   :  { %2714 = vrcp.f32 %v2164_v18  ;;  %v2191_v21 = vand.u32 2147483648, %v2164_v18  ;;  %vm2185_vm14 = vweird.f32 %v2164_v18  ;;  %v2189_v63 = vand.u32 2147483647, %v2164_v18 }
 0x548   :  { %v2192_v31 = vor.u32 1.1754944e-38, %v2191_v21  ;;  %vm2190_vm0 = vcmp.eq.f32.partialorder %v2189_v63, 8.507059e+37 }
 0x549   :  { %v2713_v50 = vpop.eup %2712 }
 0x54a   :  { %v2124_v15 = vadd.f32 1.0, %v2713_v50 }
 0x54c   :  { %2716 = vrcp.f32 %v2124_v15  ;;  %v2715_v61 = vpop.eup %2714  ;;  %v2151_v56 = vand.u32 2147483648, %v2124_v15  ;;  %v2149_v8 = vand.u32 2147483647, %v2124_v15  ;;  %vm2145_vm10 = vweird.f32 %v2124_v15 }
 0x54d   :  { %v2181_v6 = vmul.f32 %v2715_v61, %v2164_v18  ;;  %vm2186_vm13 = vweird.f32 %v2715_v61 }
 0x54e   :  { %v2152_v59 = vor.u32 1.1754944e-38, %v2151_v56  ;;  %vm2150_vm12 = vcmp.eq.f32.partialorder %v2149_v8, 8.507059e+37  ;;  %vm2187_vm15 = vmor %vm2185_vm14, %vm2186_vm13 }
 0x54f   :  { %v2182_v53 = vsub.f32 1.0, %v2181_v6 }
 0x551   :  { %v2183_v14 = vmul.f32 %v2715_v61, %v2182_v53 }
 0x552   :  { %v2717_v10 = vpop.eup %2716 }
 0x553   :  { %v2141_v1 = vmul.f32 %v2717_v10, %v2124_v15  ;;  %vm2146_vm9 = vweird.f32 %v2717_v10  ;;  %v2184_v3 = vadd.f32 %v2715_v61, %v2183_v14 }
 0x554   :  { %vm2147_vm11 = vmor %vm2145_vm10, %vm2146_vm9 }
 0x555   :  { %v2142_v48 = vsub.f32 1.0, %v2141_v1  ;;  %v2188_v27 = vsel %vm2187_vm15, %v2715_v61, %v2184_v3 }
 0x556   :  { %v2193_v12 = vsel %vm2190_vm0, %v2192_v31, %v2188_v27 }
 0x557   :  { %v2143_v62 = vmul.f32 %v2717_v10, %v2142_v48  ;;  %v2202_v22 = vsub.f32 1.0, %v2193_v12  ;;  %v2206_v43 = vmul.f32 %v2193_v12, %v5043_v42  ;;  %v5834_v48 = vld [vmem:[#allocation85_spill] sm:$0xff] }
 0x559   :  { %v2144_v2 = vadd.f32 %v2717_v10, %v2143_v62 }
 0x55b   :  { %v2148_v39 = vsel %vm2147_vm11, %v2717_v10, %v2144_v2 }
 0x55c   :  { %v2153_v34 = vsel %vm2150_vm12, %v2152_v59, %v2148_v39 }
 0x55d   :  { %v2196_v28 = vmul.f32 %v2153_v34, %v2114_v17  ;;  %v5835_v34 = vld [vmem:[#allocation26_spill] sm:$0xff] }
 0x55f   :  { %v2198_v41 = vadd.f32 %v2196_v28, %v5831_v36 }
 0x561   :  { %2718 = vtanh.f32 %v2198_v41  ;;  %v5836_v41 = vld [vmem:[#allocation86_spill] sm:$0xff] }
 0x567   :  { %v2719_v37 = vpop.eup %2718 }
 0x568   :  { %v2204_v11 = vmul.f32 %v2719_v37, %v2202_v22 }
 0x56a   :  { %v5085_v38 = vadd.f32 %v2206_v43, %v2204_v11 }
 0x56c   :  { %2210 = vst [vmem:[#allocation15 + $0x18] sm:$0xff] %v5085_v38  ;;  %2294 = vmatmul.f32.vlgmr.msra.gmra.mxu1 %v5085_v38  ;;  %2314 = vmatmul.f32.vlgmr.msrb.gmra.mxu2 %v5085_v38 }
 0x56d   :  { %2334 = vmatmul.f32.vlgmr.msrb.gmra.mxu3 %v5085_v38 }
 0x5ba   :  { %v2275_v54 = vpop.f32.mrf.mxu0 }
 0x5bb   :  { %v2340_v50 = vadd.f32 %v2275_v54, %v3895_v52 }
 0x5bf   :  { %v2235_v57 = vpop.f32.mrf.mxu2  ;;  %v2255_v13 = vpop.f32.mrf.mxu3 }
 0x5c0   :  { %v2338_v44 = vadd.f32 %v2235_v57, %v5688_v40  ;;  %v2339_v7 = vadd.f32 %v2255_v13, %v5689_v33 }
 0x5c2   :  { %v2344_v45 = vadd.f32 %v2338_v44, %v5832_v26  ;;  %v2384_v42 = vadd.f32 %v2339_v7, %v5833_v19 }
 0x5c4   :  { %v2559_v24 = vmul.f32 -1.442695, %v2344_v45  ;;  %v2561_v51 = vmul.f32 -1.442695, %v2384_v42 }
 0x5c6   :  { %2720 = vpow2.f32 %v2559_v24 }
 0x5c7   :  { %2722 = vpow2.f32 %v2561_v51 }
 0x5cc   :  { %v2721_v0 = vpop.eup %2720 }
 0x5cd   :  { %v2723_v20 = vpop.eup %2722  ;;  %v2352_v32 = vadd.f32 1.0, %v2721_v0 }
 0x5ce   :  { %v2392_v25 = vadd.f32 1.0, %v2723_v20 }
 0x5cf   :  { %2724 = vrcp.f32 %v2352_v32  ;;  %v2365_v33 = vand.u32 2147483648, %v2352_v32  ;;  %v2363_v16 = vand.u32 2147483647, %v2352_v32  ;;  %vm2359_vm2 = vweird.f32 %v2352_v32 }
 0x5d0   :  { %2726 = vrcp.f32 %v2392_v25  ;;  %v2405_v1 = vand.u32 2147483648, %v2392_v25  ;;  %vm2399_vm6 = vweird.f32 %v2392_v25  ;;  %v2403_v53 = vand.u32 2147483647, %v2392_v25 }
 0x5d1   :  { %v2366_v18 = vor.u32 1.1754944e-38, %v2365_v33  ;;  %vm2364_vm4 = vcmp.eq.f32.partialorder %v2363_v16, 8.507059e+37 }
 0x5d2   :  { %v2406_v8 = vor.u32 1.1754944e-38, %v2405_v1  ;;  %vm2404_vm8 = vcmp.eq.f32.partialorder %v2403_v53, 8.507059e+37 }
 0x5d5   :  { %v2725_v5 = vpop.eup %2724 }
 0x5d6   :  { %v2727_v55 = vpop.eup %2726  ;;  %v2355_v4 = vmul.f32 %v2725_v5, %v2352_v32  ;;  %vm2360_vm1 = vweird.f32 %v2725_v5 }
 0x5d7   :  { %v2395_v40 = vmul.f32 %v2727_v55, %v2392_v25  ;;  %vm2361_vm3 = vmor %vm2359_vm2, %vm2360_vm1  ;;  %vm2400_vm5 = vweird.f32 %v2727_v55 }
 0x5d8   :  { %v2356_v35 = vsub.f32 1.0, %v2355_v4  ;;  %vm2401_vm7 = vmor %vm2399_vm6, %vm2400_vm5  ;;  %v5837_v4 = vld [vmem:[#allocation87_spill] sm:$0xff] }
 0x5d9   :  { %v2396_v23 = vsub.f32 1.0, %v2395_v40 }
 0x5da   :  { %v2357_v30 = vmul.f32 %v2725_v5, %v2356_v35 }
 0x5db   :  { %v2397_v58 = vmul.f32 %v2727_v55, %v2396_v23 }
 0x5dc   :  { %v2358_v47 = vadd.f32 %v2725_v5, %v2357_v30 }
 0x5dd   :  { %v2398_v6 = vadd.f32 %v2727_v55, %v2397_v58 }
 0x5de   :  { %v2362_v15 = vsel %vm2361_vm3, %v2725_v5, %v2358_v47 }
 0x5df   :  { %v2367_v61 = vsel %vm2364_vm4, %v2366_v18, %v2362_v15  ;;  %v2402_v62 = vsel %vm2401_vm7, %v2727_v55, %v2398_v6 }
 0x5e0   :  { %v2424_v10 = vmul.f32 %v2367_v61, %v2340_v50  ;;  %v2407_v14 = vsel %vm2404_vm8, %v2406_v8, %v2402_v62 }
 0x5e1   :  { %v2430_v46 = vsub.f32 1.0, %v2407_v14  ;;  %v2434_v39 = vmul.f32 %v2407_v14, %v5074_v9 }
 0x5e2   :  { %v2426_v56 = vadd.f32 %v2424_v10, %v5834_v48 }
 0x5e4   :  { %2728 = vtanh.f32 %v2426_v56 }
 0x5e9   :  { %v2295_v2 = vpop.f32.mrf.mxu1 }
 0x5ea   :  { %v2729_v52 = vpop.eup %2728  ;;  %v2341_v59 = vadd.f32 %v2295_v2, %v3891_v49 }
 0x5eb   :  { %v2432_v17 = vmul.f32 %v2729_v52, %v2430_v46 }
 0x5ec   :  { %v2345_v3 = vadd.f32 %v2341_v59, %v5835_v34 }
 0x5ed   :  { %v2436_v21 = vadd.f32 %v2434_v39, %v2432_v17 }
 0x5ee   :  { %v2560_v28 = vmul.f32 -1.442695, %v2345_v3 }
 0x5ef   :  { %2438 = vst [vmem:[#allocation15 + $0x70] sm:$0xff] %v2436_v21  ;;  %v2315_v63 = vpop.f32.mrf.mxu2 }
 0x5f0   :  { %2440 = vst [vmem:[#allocation16] sm:$0xff] %v2436_v21  ;;  %2730 = vpow2.f32 %v2560_v28  ;;  %v2342_v36 = vadd.f32 %v2315_v63, %v3935_v60  ;;  %v2335_v26 = vpop.f32.mrf.mxu3 }
 0x5f1   :  { %v2343_v24 = vadd.f32 %v2335_v26, %v5812_v29 }
 0x5f2   :  { %v2385_v27 = vadd.f32 %v2342_v36, %v5836_v41 }
 0x5f4   :  { %v2562_v31 = vmul.f32 -1.442695, %v2385_v27 }
 0x5f6   :  { %v2731_v12 = vpop.eup %2730  ;;  %2732 = vpow2.f32 %v2562_v31 }
 0x5f7   :  { %v2353_v22 = vadd.f32 1.0, %v2731_v12 }
 0x5f9   :  { %2734 = vrcp.f32 %v2353_v22  ;;  %v2380_v57 = vand.u32 2147483648, %v2353_v22  ;;  %v2378_v44 = vand.u32 2147483647, %v2353_v22  ;;  %vm2374_vm10 = vweird.f32 %v2353_v22 }
 0x5fb   :  { %v2381_v19 = vor.u32 1.1754944e-38, %v2380_v57  ;;  %vm2379_vm12 = vcmp.eq.f32.partialorder %v2378_v44, 8.507059e+37 }
 0x5fc   :  { %v2733_v49 = vpop.eup %2732 }
 0x5fd   :  { %v2393_v37 = vadd.f32 1.0, %v2733_v49 }
 0x5ff   :  { %v2735_v9 = vpop.eup %2734  ;;  %2736 = vrcp.f32 %v2393_v37  ;;  %v2420_v32 = vand.u32 2147483648, %v2393_v37  ;;  %v2418_v5 = vand.u32 2147483647, %v2393_v37  ;;  %vm2414_vm14 = vweird.f32 %v2393_v37 }
 0x600   :  { %v2370_v11 = vmul.f32 %v2735_v9, %v2353_v22  ;;  %vm2375_vm9 = vweird.f32 %v2735_v9 }
 0x601   :  { %vm2376_vm11 = vmor %vm2374_vm10, %vm2375_vm9  ;;  %v2421_v35 = vor.u32 1.1754944e-38, %v2420_v32  ;;  %vm2419_vm0 = vcmp.eq.f32.partialorder %v2418_v5, 8.507059e+37 }
 0x602   :  { %v2371_v43 = vsub.f32 1.0, %v2370_v11 }
 0x604   :  { %v2372_v13 = vmul.f32 %v2735_v9, %v2371_v43 }
 0x605   :  { %v2737_v7 = vpop.eup %2736 }
 0x606   :  { %v2410_v60 = vmul.f32 %v2737_v7, %v2393_v37  ;;  %v2373_v45 = vadd.f32 %v2735_v9, %v2372_v13  ;;  %vm2415_vm13 = vweird.f32 %v2737_v7 }
 0x607   :  { %vm2416_vm15 = vmor %vm2414_vm14, %vm2415_vm13 }
 0x608   :  { %v2411_v42 = vsub.f32 1.0, %v2410_v60  ;;  %v2377_v51 = vsel %vm2376_vm11, %v2735_v9, %v2373_v45 }
 0x609   :  { %v2382_v0 = vsel %vm2379_vm12, %v2381_v19, %v2377_v51 }
 0x60a   :  { %v2412_v20 = vmul.f32 %v2737_v7, %v2411_v42  ;;  %v2425_v25 = vmul.f32 %v2382_v0, %v2343_v24 }
 0x60c   :  { %v2413_v55 = vadd.f32 %v2737_v7, %v2412_v20  ;;  %v2427_v40 = vadd.f32 %v2425_v25, %v5837_v4 }
 0x60e   :  { %v2417_v33 = vsel %vm2416_vm15, %v2737_v7, %v2413_v55  ;;  %2738 = vtanh.f32 %v2427_v40 }
 0x60f   :  { %v2422_v23 = vsel %vm2419_vm0, %v2421_v35, %v2417_v33 }
 0x610   :  { %v2431_v30 = vsub.f32 1.0, %v2422_v23  ;;  %v2435_v54 = vmul.f32 %v2422_v23, %v5085_v38 }
 0x614   :  { %v2739_v29 = vpop.eup %2738 }
 0x615   :  { %v2433_v16 = vmul.f32 %v2739_v29, %v2431_v30 }
 0x617   :  { %v2437_v58 = vadd.f32 %v2435_v54, %v2433_v16 }
 0x619   :  { %2439 = vst [vmem:[#allocation15 + $0x8] sm:$0xff] %v2437_v58 }
 0x61a   :  { %2442 = vst [vmem:[#allocation16 + $0x8] sm:$0xff] %v2437_v58  ;;  %2455 = dma.vmem_to_hbm [thread:$0]  %s2448_s5, 2048, %s2450_s12, [#allocation6], %s3151_s17, %s3151_s17, %s3152_s18  }
 0x61b   :  { %2468 = dma.vmem_to_hbm [thread:$0]  %s2461_s14, 256, %s2463_s16, [#allocation17], %s3143_s3, %s3143_s3, %s3144_s22  }
 0x61c   :  { %3132 = dma.done.wait [#allocation6], 2048  }
 0x61d   :  { %3133 = vsyncadd [#allocation6], 4294965248 }
 0x61e   :  { %3134 = dma.done.wait [#allocation17], 256  }
 0x61f   :  { %3135 = vsyncadd [#allocation17], 4294967040 }
 0x620   :  { %2477 = vsyncpa [#allocation5], 1 }
 0x621   :  { %2478 = vsyncpa [#allocation8], 1 }
 0x622   :  { %2479 = vsyncpa [#allocation11], 1 }
 0x623   :  { %2480 = vsyncpa [#allocation14], 1 }
 0x624   :  { %2481 = vsyncpa [#allocation6], 1 }
 0x625   :  { %2482 = vsyncpa [#allocation17], 1 }

</bundles_post_ra>
